<compile_context>
chip_gen: v6e
topology: v6e:2x2x1
jax: 0.10.0
libtpu: 0.0.40
codegen_flags: <defaults>
</compile_context>

<pallas_src>
import jax
import jax.numpy as jnp
import numpy as np
from jax import lax
from jax.experimental import pallas as pl
from jax.experimental.pallas import tpu as pltpu


def _round_up(x, m):
    return ((x + m - 1) // m) * m


def _make_char_encoder_kernel(n_layers, kernel_size, seq_len, cin_pads,
                              cout_pads, c_max, compute_dtype):
    K = kernel_size
    L = seq_len
    pad = K // 2

    def kernel(*refs):
        ids_ref, table_ref = refs[0], refs[1]
        layer_refs = refs[2:2 + 2 * n_layers]   # (w, b) per layer
        out_ref = refs[2 + 2 * n_layers]
        xpad_ref = refs[3 + 2 * n_layers]       # (TB, L + 2*pad, c_max) scratch

        TB = ids_ref.shape[0]
        Vp, Ep = table_ref.shape

        # Zero only the halo rows of the padded activation scratch (full lane
        # width, so this is an unmasked store); the interior is fully
        # overwritten each layer.
        if pad > 0:
            halo = jnp.zeros((TB, pad, c_max), compute_dtype)
            xpad_ref[:, :pad, :] = halo
            xpad_ref[:, pad + L:, :] = halo

        # ---- embedding lookup: lane-dense one-hot matmul --------------------
        # TODO(synk): for large vocabularies replace the one-hot matmul with a
        # gather (scalar-prefetched ids + indexed VMEM reads / DMA row gather).
        ids_e = ids_ref[...][:, :, None]                            # (TB, L, 1)
        iota_v = lax.broadcasted_iota(jnp.int32, (TB, L, Vp), 2)
        onehot = (ids_e == iota_v).astype(compute_dtype).reshape(TB * L, Vp)
        emb = jnp.dot(onehot, table_ref[...],
                      preferred_element_type=jnp.float32)           # (TB*L, Ep)
        xpad_ref[:, pad:pad + L, :Ep] = emb.astype(compute_dtype).reshape(TB, L, Ep)

        # ---- conv stack: K accumulated shifted-window matmuls per layer -----
        for li in range(n_layers):
            w_ref = layer_refs[2 * li]        # (K*cin_pad, cout_pad), bf16
            b_ref = layer_refs[2 * li + 1]    # (1, cout_pad), f32
            cin_p = cin_pads[li]
            cout_p = cout_pads[li]

            acc = None
            for k in range(K):
                # Ref-sliced load: fetch only the shifted (TB, L, cin_p) window.
                x_k = xpad_ref[:, k:k + L, :cin_p].reshape(TB * L, cin_p)
                w_k = w_ref[k * cin_p:(k + 1) * cin_p, :]
                d = jnp.dot(x_k, w_k, preferred_element_type=jnp.float32)
                acc = d if acc is None else acc + d                  # f32 accum

            y = jnp.maximum(acc + b_ref[...], 0.0)                   # bias+ReLU, f32

            if li + 1 < n_layers:
                xpad_ref[:, pad:pad + L, :cout_p] = (
                    y.astype(compute_dtype).reshape(TB, L, cout_p))
            else:
                # F.max_pool1d(output, seq_len).squeeze()  ==  max over L.
                # Padded Cout columns are exactly zero (zero weights + zero
                # bias + ReLU) and are sliced away by the wrapper.
                out_ref[...] = jnp.max(y.reshape(TB, L, cout_p), axis=1)

    return kernel


def char_encoder_forward(ids, emb_table, conv_params, kernel_size, *,
                         block_b=None, compute_dtype=jnp.bfloat16):
    """ids: (B, L) int32; emb_table: (V, E) f32; conv_params: list of (w, b)
    in torch Conv1d layout w: (Cout, Cin, K), b: (Cout,).  Returns (B, C_out) f32."""
    assert kernel_size % 2 == 1, "only odd kernel_size matches torch padding=K//2"
    B, L = ids.shape
    V, E = emb_table.shape
    n_layers = len(conv_params)
    assert conv_params[0][0].shape[1] == E, "channels[0] must equal embedding_size"

    K = kernel_size
    pad = K // 2

    # ---- host-side padding & repack: everything 128-lane aligned ------------
    V_pad = _round_up(V, 128)
    E_pad = _round_up(E, 128)
    table_p = jnp.pad(jnp.asarray(emb_table, jnp.float32),
                      ((0, V_pad - V), (0, E_pad - E))).astype(compute_dtype)

    # (Cout, Cin, K) -> K stacked (Cin_pad, Cout_pad) blocks (zero-padded), so
    # the kernel's per-k matmul is a plain (M, Cin_pad) @ (Cin_pad, Cout_pad).
    flat_params = []
    cin_pads, cout_pads = [], []
    prev_c, prev_c_pad = E, E_pad
    for w, b in conv_params:
        cout, cin, kk = w.shape
        assert kk == K and cin == prev_c
        cin_p = prev_c_pad
        cout_p = _round_up(cout, 128)
        w_kio = jnp.transpose(jnp.asarray(w, jnp.float32), (2, 1, 0))   # (K, Cin, Cout)
        w_kio = jnp.pad(w_kio, ((0, 0), (0, cin_p - cin), (0, cout_p - cout)))
        w2 = w_kio.reshape(K * cin_p, cout_p).astype(compute_dtype)
        b2 = jnp.pad(jnp.asarray(b, jnp.float32),
                     (0, cout_p - cout)).reshape(1, cout_p)
        flat_params += [w2, b2]
        cin_pads.append(cin_p)
        cout_pads.append(cout_p)
        prev_c, prev_c_pad = cout, cout_p

    c_out = conv_params[-1][0].shape[0]
    c_out_pad = cout_pads[-1]
    c_max = max([E_pad] + cout_pads)

    # ---- tiling: one fat grid step by default --------------------------------
    # v5e/v6e: single TensorCore -> tb = B removes all extra per-step overhead.
    # v7x: pass block_b ~= B//2 so the "parallel" axis shards across both TCs.
    if block_b is None:
        tb = B
    else:
        tb = min(block_b, B)
        assert tb == B or tb % 8 == 0, "partial word tile must be a multiple of 8"
    # Note: if B % tb != 0 the trailing grid step computes on padded rows which
    # are sliced away below (correct, just wasted work).
    grid = (pl.cdiv(B, tb),)

    in_specs = [
        pl.BlockSpec((tb, L), lambda i: (i, 0)),          # ids tile
        pl.BlockSpec((V_pad, E_pad), lambda i: (0, 0)),   # embedding table (resident)
    ]
    for w2, b2 in zip(flat_params[0::2], flat_params[1::2]):
        in_specs.append(pl.BlockSpec(w2.shape, lambda i: (0, 0)))
        in_specs.append(pl.BlockSpec(b2.shape, lambda i: (0, 0)))

    kernel = _make_char_encoder_kernel(n_layers, K, L, cin_pads, cout_pads,
                                       c_max, compute_dtype)

    out = pl.pallas_call(
        kernel,
        out_shape=jax.ShapeDtypeStruct((B, c_out_pad), jnp.float32),
        grid=grid,
        in_specs=in_specs,
        out_specs=pl.BlockSpec((tb, c_out_pad), lambda i: (i, 0)),
        scratch_shapes=[pltpu.VMEM((tb, L + 2 * pad, c_max), compute_dtype)],
        compiler_params=pltpu.CompilerParams(
            dimension_semantics=("parallel",),
            vmem_limit_bytes=32 * 1024 * 1024,
        ),
    )(ids, table_p, *flat_params)

    return out[:, :c_out]


# ------------------ pure-JAX reference (for correctness check) ------------------
def char_encoder_ref(ids, emb_table, conv_params, kernel_size,
                     compute_dtype=jnp.bfloat16):
    pad = kernel_size // 2
    q = lambda a: a.astype(compute_dtype).astype(jnp.float32)   # bf16-quantize, f32 math
    x = jnp.take(q(emb_table), ids, axis=0)        # (B, L, E)
    x = jnp.transpose(x, (0, 2, 1))                # (B, C, L) -- torch NCL
    n = len(conv_params)
    for li, (w, b) in enumerate(conv_params):
        y = lax.conv_general_dilated(
            x, q(w), window_strides=(1,), padding=[(pad, pad)],
            dimension_numbers=("NCH", "OIH", "NCH"),
            precision=lax.Precision.HIGHEST)
        y = jnp.maximum(y + jnp.asarray(b, jnp.float32)[None, :, None], 0.0)
        x = q(y) if li + 1 < n else y
    return jnp.max(x, axis=-1)                     # (B, C_last)


def _kaiming_uniform(key, shape, fan_in):
    bound = float(np.sqrt(6.0 / fan_in))
    return jax.random.uniform(key, shape, jnp.float32, -bound, bound)


if __name__ == "__main__":
    # Module hyperparameters (small, consistent with the forward pass).
    num_chars = 32
    embedding_size = 16
    padding_idx = 0          # forward-only: init_weights overwrote the padding row
    channels = [16, 32, 32]  # channels[0] == embedding_size
    kernel_size = 3
    B, L = 32, 8             # batch of words, chars per word

    key = jax.random.PRNGKey(0)
    n_layers = len(channels) - 1
    keys = jax.random.split(key, 2 + 2 * n_layers)
    k_emb, k_ids, layer_keys = keys[0], keys[1], keys[2:]

    # Deterministic parameter init (kaiming-uniform-ish, like init_weights).
    emb_table = _kaiming_uniform(k_emb, (num_chars, embedding_size), embedding_size)
    conv_params = []
    for i in range(n_layers):
        cin, cout = channels[i], channels[i + 1]
        fan_in = cin * kernel_size
        w = _kaiming_uniform(layer_keys[2 * i], (cout, cin, kernel_size), fan_in)  # torch layout
        bb = float(1.0 / np.sqrt(fan_in))
        b = jax.random.uniform(layer_keys[2 * i + 1], (cout,), jnp.float32, -bb, bb)
        conv_params.append((w, b))

    ids = jax.random.randint(k_ids, (B, L), 0, num_chars, dtype=jnp.int32)

    out = char_encoder_forward(ids, emb_table, conv_params, kernel_size)
    out = jax.block_until_ready(out)
    assert out.shape == (B, channels[-1]), out.shape

    ref = jax.block_until_ready(
        char_encoder_ref(ids, emb_table, conv_params, kernel_size))
    np.testing.assert_allclose(np.asarray(out), np.asarray(ref), rtol=1e-3, atol=1e-3)

    print("KERNEL_OK")
</pallas_src>

<mosaic_0001>
module attributes {stable_mosaic.version = 11 : i64} {
  func.func @kernel(%arg0: i32, %arg1: memref<32x8xi32, #tpu.memory_space<vmem>>, %arg2: memref<128x128xbf16, #tpu.memory_space<vmem>>, %arg3: memref<384x128xbf16, #tpu.memory_space<vmem>>, %arg4: memref<1x128xf32, #tpu.memory_space<vmem>>, %arg5: memref<384x128xbf16, #tpu.memory_space<vmem>>, %arg6: memref<1x128xf32, #tpu.memory_space<vmem>>, %arg7: memref<32x128xf32, #tpu.memory_space<vmem>>, %arg8: memref<32x10x128xbf16, #tpu.memory_space<vmem>>) attributes {dimension_semantics = [#tpu.dimension_semantics<parallel>], iteration_bounds = array<i64: 1>, scalar_prefetch = 0 : i64, scratch_operands = 1 : i64, tpu.core_type = #tpu.core_type<tc>, window_params = [{transform_indices = @transform_0, window_bounds = array<i64: 32, 8>}, {pipeline_mode = #tpu.pipeline_mode<synchronous>, transform_indices = @transform_1, window_bounds = array<i64: 128, 128>}, {pipeline_mode = #tpu.pipeline_mode<synchronous>, transform_indices = @transform_2, window_bounds = array<i64: 384, 128>}, {pipeline_mode = #tpu.pipeline_mode<synchronous>, transform_indices = @transform_3, window_bounds = array<i64: 1, 128>}, {pipeline_mode = #tpu.pipeline_mode<synchronous>, transform_indices = @transform_4, window_bounds = array<i64: 384, 128>}, {pipeline_mode = #tpu.pipeline_mode<synchronous>, transform_indices = @transform_5, window_bounds = array<i64: 1, 128>}, {transform_indices = @transform_6, window_bounds = array<i64: 32, 128>}]} {
    %cst = arith.constant 0.000000e+00 : bf16
    %0 = vector.broadcast %cst : bf16 to vector<32x1x128xbf16>
    %c0 = arith.constant 0 : index
    %c0_0 = arith.constant 0 : index
    %c0_1 = arith.constant 0 : index
    %1 = vector.load %arg8[%c0, %c0_0, %c0_1] : memref<32x10x128xbf16, #tpu.memory_space<vmem>>, vector<32x1x128xbf16>
    tpu.vector_store %arg8[%c0, %c0_0, %c0_1], %0 {strides = array<i32>} : memref<32x10x128xbf16, #tpu.memory_space<vmem>>, vector<32x1x128xbf16>,
    %c0_2 = arith.constant 0 : index
    %c9 = arith.constant 9 : index
    %c0_3 = arith.constant 0 : index
    %2 = vector.load %arg8[%c0_2, %c9, %c0_3] : memref<32x10x128xbf16, #tpu.memory_space<vmem>>, vector<32x1x128xbf16>
    tpu.vector_store %arg8[%c0_2, %c9, %c0_3], %0 {strides = array<i32>} : memref<32x10x128xbf16, #tpu.memory_space<vmem>>, vector<32x1x128xbf16>,
    %c0_4 = arith.constant 0 : index
    %c0_5 = arith.constant 0 : index
    %3 = vector.load %arg1[%c0_4, %c0_5] : memref<32x8xi32, #tpu.memory_space<vmem>>, vector<32x8xi32>
    %4 = vector.shape_cast %3 : vector<32x8xi32> to vector<32x8x1xi32>
    %5 = tpu.iota {dimensions = array<i32: 2>} : vector<32x8x128xi32>
    %6 = vector.broadcast %4 : vector<32x8x1xi32> to vector<32x8x128xi32>
    %7 = arith.cmpi eq, %6, %5 : vector<32x8x128xi32>
    %8 = arith.extui %7 : vector<32x8x128xi1> to vector<32x8x128xi32>
    %9 = arith.sitofp %8 : vector<32x8x128xi32> to vector<32x8x128xf32>
    %10 = arith.truncf %9 : vector<32x8x128xf32> to vector<32x8x128xbf16>
    %11 = vector.shape_cast %10 : vector<32x8x128xbf16> to vector<256x128xbf16>
    %c0_6 = arith.constant 0 : index
    %c0_7 = arith.constant 0 : index
    %12 = vector.load %arg2[%c0_6, %c0_7] : memref<128x128xbf16, #tpu.memory_space<vmem>>, vector<128x128xbf16>
    %cst_8 = arith.constant dense<0.000000e+00> : vector<256x128xf32>
    %13 = tpu.matmul %11, %12, %cst_8 {dimension_numbers = #tpu.dot_dimension_numbers<[1], [0], [0], [1], [0, 0, 1, 1], [], []>} : vector<256x128xbf16>, vector<128x128xbf16>, vector<256x128xf32> -> vector<256x128xf32>
    %14 = arith.truncf %13 : vector<256x128xf32> to vector<256x128xbf16>
    %15 = vector.shape_cast %14 : vector<256x128xbf16> to vector<32x8x128xbf16>
    %c0_9 = arith.constant 0 : index
    %c1 = arith.constant 1 : index
    %c0_10 = arith.constant 0 : index
    %16 = vector.load %arg8[%c0_9, %c1, %c0_10] : memref<32x10x128xbf16, #tpu.memory_space<vmem>>, vector<32x8x128xbf16>
    tpu.vector_store %arg8[%c0_9, %c1, %c0_10], %15 {strides = array<i32>} : memref<32x10x128xbf16, #tpu.memory_space<vmem>>, vector<32x8x128xbf16>,
    %c0_11 = arith.constant 0 : index
    %c0_12 = arith.constant 0 : index
    %c0_13 = arith.constant 0 : index
    %17 = vector.load %arg8[%c0_11, %c0_12, %c0_13] : memref<32x10x128xbf16, #tpu.memory_space<vmem>>, vector<32x8x128xbf16>
    %18 = vector.shape_cast %17 : vector<32x8x128xbf16> to vector<256x128xbf16>
    %c0_14 = arith.constant 0 : index
    %c0_15 = arith.constant 0 : index
    %19 = vector.load %arg3[%c0_14, %c0_15] : memref<384x128xbf16, #tpu.memory_space<vmem>>, vector<128x128xbf16>
    %cst_16 = arith.constant dense<0.000000e+00> : vector<256x128xf32>
    %20 = tpu.matmul %18, %19, %cst_16 {dimension_numbers = #tpu.dot_dimension_numbers<[1], [0], [0], [1], [0, 0, 1, 1], [], []>} : vector<256x128xbf16>, vector<128x128xbf16>, vector<256x128xf32> -> vector<256x128xf32>
    %c0_17 = arith.constant 0 : index
    %c1_18 = arith.constant 1 : index
    %c0_19 = arith.constant 0 : index
    %21 = vector.load %arg8[%c0_17, %c1_18, %c0_19] : memref<32x10x128xbf16, #tpu.memory_space<vmem>>, vector<32x8x128xbf16>
    %22 = vector.shape_cast %21 : vector<32x8x128xbf16> to vector<256x128xbf16>
    %c128 = arith.constant 128 : index
    %c0_20 = arith.constant 0 : index
    %23 = vector.load %arg3[%c128, %c0_20] : memref<384x128xbf16, #tpu.memory_space<vmem>>, vector<128x128xbf16>
    %cst_21 = arith.constant dense<0.000000e+00> : vector<256x128xf32>
    %24 = tpu.matmul %22, %23, %cst_21 {dimension_numbers = #tpu.dot_dimension_numbers<[1], [0], [0], [1], [0, 0, 1, 1], [], []>} : vector<256x128xbf16>, vector<128x128xbf16>, vector<256x128xf32> -> vector<256x128xf32>
    %25 = arith.addf %20, %24 : vector<256x128xf32>
    %c0_22 = arith.constant 0 : index
    %c2 = arith.constant 2 : index
    %c0_23 = arith.constant 0 : index
    %26 = vector.load %arg8[%c0_22, %c2, %c0_23] : memref<32x10x128xbf16, #tpu.memory_space<vmem>>, vector<32x8x128xbf16>
    %27 = vector.shape_cast %26 : vector<32x8x128xbf16> to vector<256x128xbf16>
    %c256 = arith.constant 256 : index
    %c0_24 = arith.constant 0 : index
    %28 = vector.load %arg3[%c256, %c0_24] : memref<384x128xbf16, #tpu.memory_space<vmem>>, vector<128x128xbf16>
    %cst_25 = arith.constant dense<0.000000e+00> : vector<256x128xf32>
    %29 = tpu.matmul %27, %28, %cst_25 {dimension_numbers = #tpu.dot_dimension_numbers<[1], [0], [0], [1], [0, 0, 1, 1], [], []>} : vector<256x128xbf16>, vector<128x128xbf16>, vector<256x128xf32> -> vector<256x128xf32>
    %30 = arith.addf %25, %29 : vector<256x128xf32>
    %c0_26 = arith.constant 0 : index
    %c0_27 = arith.constant 0 : index
    %31 = vector.load %arg4[%c0_26, %c0_27] : memref<1x128xf32, #tpu.memory_space<vmem>>, vector<1x128xf32>
    %32 = vector.broadcast %31 : vector<1x128xf32> to vector<256x128xf32>
    %33 = arith.addf %30, %32 : vector<256x128xf32>
    %cst_28 = arith.constant 0.000000e+00 : f32
    %34 = vector.broadcast %cst_28 : f32 to vector<256x128xf32>
    %35 = arith.maximumf %33, %34 : vector<256x128xf32>
    %36 = arith.truncf %35 : vector<256x128xf32> to vector<256x128xbf16>
    %37 = vector.shape_cast %36 : vector<256x128xbf16> to vector<32x8x128xbf16>
    %c0_29 = arith.constant 0 : index
    %c1_30 = arith.constant 1 : index
    %c0_31 = arith.constant 0 : index
    %38 = vector.load %arg8[%c0_29, %c1_30, %c0_31] : memref<32x10x128xbf16, #tpu.memory_space<vmem>>, vector<32x8x128xbf16>
    tpu.vector_store %arg8[%c0_29, %c1_30, %c0_31], %37 {strides = array<i32>} : memref<32x10x128xbf16, #tpu.memory_space<vmem>>, vector<32x8x128xbf16>,
    %c0_32 = arith.constant 0 : index
    %c0_33 = arith.constant 0 : index
    %c0_34 = arith.constant 0 : index
    %39 = vector.load %arg8[%c0_32, %c0_33, %c0_34] : memref<32x10x128xbf16, #tpu.memory_space<vmem>>, vector<32x8x128xbf16>
    %40 = vector.shape_cast %39 : vector<32x8x128xbf16> to vector<256x128xbf16>
    %c0_35 = arith.constant 0 : index
    %c0_36 = arith.constant 0 : index
    %41 = vector.load %arg5[%c0_35, %c0_36] : memref<384x128xbf16, #tpu.memory_space<vmem>>, vector<128x128xbf16>
    %cst_37 = arith.constant dense<0.000000e+00> : vector<256x128xf32>
    %42 = tpu.matmul %40, %41, %cst_37 {dimension_numbers = #tpu.dot_dimension_numbers<[1], [0], [0], [1], [0, 0, 1, 1], [], []>} : vector<256x128xbf16>, vector<128x128xbf16>, vector<256x128xf32> -> vector<256x128xf32>
    %c0_38 = arith.constant 0 : index
    %c1_39 = arith.constant 1 : index
    %c0_40 = arith.constant 0 : index
    %43 = vector.load %arg8[%c0_38, %c1_39, %c0_40] : memref<32x10x128xbf16, #tpu.memory_space<vmem>>, vector<32x8x128xbf16>
    %44 = vector.shape_cast %43 : vector<32x8x128xbf16> to vector<256x128xbf16>
    %c128_41 = arith.constant 128 : index
    %c0_42 = arith.constant 0 : index
    %45 = vector.load %arg5[%c128_41, %c0_42] : memref<384x128xbf16, #tpu.memory_space<vmem>>, vector<128x128xbf16>
    %cst_43 = arith.constant dense<0.000000e+00> : vector<256x128xf32>
    %46 = tpu.matmul %44, %45, %cst_43 {dimension_numbers = #tpu.dot_dimension_numbers<[1], [0], [0], [1], [0, 0, 1, 1], [], []>} : vector<256x128xbf16>, vector<128x128xbf16>, vector<256x128xf32> -> vector<256x128xf32>
    %47 = arith.addf %42, %46 : vector<256x128xf32>
    %c0_44 = arith.constant 0 : index
    %c2_45 = arith.constant 2 : index
    %c0_46 = arith.constant 0 : index
    %48 = vector.load %arg8[%c0_44, %c2_45, %c0_46] : memref<32x10x128xbf16, #tpu.memory_space<vmem>>, vector<32x8x128xbf16>
    %49 = vector.shape_cast %48 : vector<32x8x128xbf16> to vector<256x128xbf16>
    %c256_47 = arith.constant 256 : index
    %c0_48 = arith.constant 0 : index
    %50 = vector.load %arg5[%c256_47, %c0_48] : memref<384x128xbf16, #tpu.memory_space<vmem>>, vector<128x128xbf16>
    %cst_49 = arith.constant dense<0.000000e+00> : vector<256x128xf32>
    %51 = tpu.matmul %49, %50, %cst_49 {dimension_numbers = #tpu.dot_dimension_numbers<[1], [0], [0], [1], [0, 0, 1, 1], [], []>} : vector<256x128xbf16>, vector<128x128xbf16>, vector<256x128xf32> -> vector<256x128xf32>
    %52 = arith.addf %47, %51 : vector<256x128xf32>
    %c0_50 = arith.constant 0 : index
    %c0_51 = arith.constant 0 : index
    %53 = vector.load %arg6[%c0_50, %c0_51] : memref<1x128xf32, #tpu.memory_space<vmem>>, vector<1x128xf32>
    %54 = vector.broadcast %53 : vector<1x128xf32> to vector<256x128xf32>
    %55 = arith.addf %52, %54 : vector<256x128xf32>
    %cst_52 = arith.constant 0.000000e+00 : f32
    %56 = vector.broadcast %cst_52 : f32 to vector<256x128xf32>
    %57 = arith.maximumf %55, %56 : vector<256x128xf32>
    %58 = vector.shape_cast %57 : vector<256x128xf32> to vector<32x8x128xf32>
    %cst_53 = arith.constant dense<0xFF800000> : vector<32x128xf32>
    %59 = vector.multi_reduction <maximumf>, %58, %cst_53 [1] : vector<32x8x128xf32> to vector<32x128xf32>
    %c0_54 = arith.constant 0 : index
    %c0_55 = arith.constant 0 : index
    %60 = vector.load %arg7[%c0_54, %c0_55] : memref<32x128xf32, #tpu.memory_space<vmem>>, vector<32x128xf32>
    tpu.vector_store %arg7[%c0_54, %c0_55], %59 {strides = array<i32>} : memref<32x128xf32, #tpu.memory_space<vmem>>, vector<32x128xf32>,
    return
  }
  func.func @transform_0(%arg0: i32) -> (i32, i32) {
    %c0_i32 = arith.constant 0 : i32
    %c0_i32_0 = arith.constant 0 : i32
    return %arg0, %c0_i32 : i32, i32
  }
  func.func @transform_1(%arg0: i32) -> (i32, i32) {
    %c0_i32 = arith.constant 0 : i32
    %c0_i32_0 = arith.constant 0 : i32
    %c0_i32_1 = arith.constant 0 : i32
    return %c0_i32, %c0_i32_0 : i32, i32
  }
  func.func @transform_2(%arg0: i32) -> (i32, i32) {
    %c0_i32 = arith.constant 0 : i32
    %c0_i32_0 = arith.constant 0 : i32
    %c0_i32_1 = arith.constant 0 : i32
    return %c0_i32, %c0_i32_0 : i32, i32
  }
  func.func @transform_3(%arg0: i32) -> (i32, i32) {
    %c0_i32 = arith.constant 0 : i32
    %c0_i32_0 = arith.constant 0 : i32
    %c0_i32_1 = arith.constant 0 : i32
    return %c0_i32, %c0_i32_0 : i32, i32
  }
  func.func @transform_4(%arg0: i32) -> (i32, i32) {
    %c0_i32 = arith.constant 0 : i32
    %c0_i32_0 = arith.constant 0 : i32
    %c0_i32_1 = arith.constant 0 : i32
    return %c0_i32, %c0_i32_0 : i32, i32
  }
  func.func @transform_5(%arg0: i32) -> (i32, i32) {
    %c0_i32 = arith.constant 0 : i32
    %c0_i32_0 = arith.constant 0 : i32
    %c0_i32_1 = arith.constant 0 : i32
    return %c0_i32, %c0_i32_0 : i32, i32
  }
  func.func @transform_6(%arg0: i32) -> (i32, i32) {
    %c0_i32 = arith.constant 0 : i32
    %c0_i32_0 = arith.constant 0 : i32
    return %arg0, %c0_i32 : i32, i32
  }
}

</mosaic_0001>

<bundles_post_ra>
// kernel: tpu_custom_call.1
= control target key start
LH: loop header
LB: loop body
LE: loop exit
PB: predicated region body
PF: predicated region fallthrough
CT: control target
= control target key end

     0   :  { %11 = vsyncpa [#allocation4], 0  ;;  %s8994_s0 = inlined_call_operand.vmem [shape: s32[32,8], index: 0, kind: input, shape index: {}]   ;;  %s8995_s1 = inlined_call_operand.hbm [shape: bf16[128,128], index: 1, kind: input, shape index: {}]   ;;  %s8996_s2 = inlined_call_operand.hbm [shape: bf16[384,128], index: 2, kind: input, shape index: {}]   ;;  %s8997_s3 = inlined_call_operand.vmem [shape: f32[1,128], index: 3, kind: input, shape index: {}]   ;;  %s8998_s4 = inlined_call_operand.hbm [shape: bf16[384,128], index: 4, kind: input, shape index: {}]   ;;  %s8999_s5 = inlined_call_operand.vmem [shape: f32[1,128], index: 5, kind: input, shape index: {}]   ;;  %s9000_s6 = inlined_call_operand.hbm [shape: f32[32,128], index: 6, kind: output, shape index: {}]  }
   0x1   :  { %12 = vsyncpa [#allocation7], 0 }
   0x2   :  { %13 = vsyncpa [#allocation5], 0  ;;  %s7083_s21 = smov [#allocation6]   ;;  %s7084_s23 = smov [#allocation3]  }
   0x3   :  { %s33_s22 = sshll.u32 %s7083_s21, 4  ;;  %s21_s24 = sshll.u32 %s7084_s23, 4  ;;  %s34_s22 = int_to_ptr.vmem [resolvable:$true] %s33_s22  ;;  %s22_s24 = int_to_ptr.vmem [resolvable:$true] %s21_s24 }
   0x4   :  { %s7005_s25 = scalar_lea.vmem %s34_s22, 3072  ;;  %p7010_p1 = scmp.lt.s32.totalorder %s34_s22, %s34_s22 }
   0x5   :  { %p7006_p0 = scmp.ne.s32.totalorder %s34_s22, %s7005_s25  ;;  %p7011_p2 = scmp.lt.s32.totalorder %s7005_s25, %s7005_s25 }
   0x7   :  { %p7012_p3 = por %p7011_p2, %p7010_p1 }
   0x9   :  { %p7013_p4 = pnand %p7012_p3, %p7006_p0 }
   0xb   :  { %7016 = shalt.err (!%p7013_p4)
}
   0xc   :  { %s7085_s26 = smov 64   ;;  %s7086_s27 = smov 4  }
   0xd   :  { %39 = dma.hbm_to_vmem [thread:$0]  %s8996_s2, 3072, %s34_s22, [#allocation7], %s7085_s26, %s7085_s26, %s7086_s27  }
   0xe   :  { %s7025_s30 = scalar_lea.vmem %s22_s24, 1024  ;;  %p7030_p6 = scmp.lt.s32.totalorder %s22_s24, %s22_s24 }
   0xf   :  { %p7026_p5 = scmp.ne.s32.totalorder %s22_s24, %s7025_s30  ;;  %p7031_p7 = scmp.lt.s32.totalorder %s7025_s30, %s7025_s30 }
  0x11   :  { %p7032_p8 = por %p7031_p7, %p7030_p6 }
  0x13   :  { %p7033_p9 = pnand %p7032_p8, %p7026_p5 }
  0x15   :  { %7036 = shalt.err (!%p7033_p9)
}
  0x16   :  { %27 = dma.hbm_to_vmem [thread:$0]  %s8995_s1, 1024, %s22_s24, [#allocation4], %s7085_s26, %s7085_s26, %s7086_s27  }
  0x17   :  { %s7087_s9 = smov [#allocation8]  }
  0x18   :  { %s47_s10 = sshll.u32 %s7087_s9, 4  ;;  %s48_s10 = int_to_ptr.vmem [resolvable:$true] %s47_s10 }
  0x19   :  { %s7045_s11 = scalar_lea.vmem %s48_s10, 3072  ;;  %p7050_p11 = scmp.lt.s32.totalorder %s48_s10, %s48_s10 }
  0x1a   :  { %p7046_p10 = scmp.ne.s32.totalorder %s48_s10, %s7045_s11  ;;  %p7051_p12 = scmp.lt.s32.totalorder %s7045_s11, %s7045_s11 }
  0x1c   :  { %p7052_p13 = por %p7051_p12, %p7050_p11 }
  0x1e   :  { %p7053_p0 = pnand %p7052_p13, %p7046_p10 }
  0x20   :  { %7056 = shalt.err (!%p7053_p0)
}
  0x21   :  { %53 = dma.hbm_to_vmem [thread:$0]  %s8998_s4, 3072, %s48_s10, [#allocation7], %s7085_s26, %s7085_s26, %s7086_s27  }
  0x22   :  { %7077 = dma.done.wait [#allocation4], 1024  }
  0x23   :  { %7078 = vsyncadd [#allocation4], 4294966272 }
  0x24   :  { %7079 = dma.done.wait [#allocation7], 6144  }
  0x25   :  { %7080 = vsyncadd [#allocation7], 4294961152  ;;  %v267_v0 = vlaneseq  ;;  %v263_v6 = vld [vmem:[%s8994_s0] sm:$0xff]  ;;  %v6897_v10 = vld [vmem:[#allocation3 + $0x38] sm:$0xff]   ;;  %vm66_vm0 = vcmask 1040384   ;;  %v9010_v51 = vmov 0 }
  0x26   :  { %v6898_v14 = vld [vmem:[#allocation3 + $0x30] sm:$0xff]   ;;  %6536 = vmatprep.subr.bf16.mxu0 %v6897_v10  ;;  %v6899_v15 = vld [vmem:[#allocation3 + $0x28] sm:$0xff]   ;;  %6872 = vmatprep.subr.bf16.mxu1 %v6897_v10  ;;  %v6900_v20 = vld [vmem:[#allocation3 + $0x20] sm:$0xff]   ;;  %vm67_vm1 = vsmask.f32 256 }
  0x27   :  { %v268_v1 = vshrl.u32 %v267_v0, 7  ;;  %6537 = vmatpush3.bf16.msra.mxu0 %v6897_v10  ;;  %6880 = vmatpush3.bf16.msra.mxu1 %v6897_v10  ;;  %v264_v21 = vld [vmem:[%s8994_s0 + $0x8] sm:$0xff]  ;;  %v6901_v24 = vld [vmem:[#allocation3 + $0x18] sm:$0xff]   ;;  %v6902_v27 = vld [vmem:[#allocation3 + $0x10] sm:$0xff]   ;;  %vm165_vm3 = vsmask.f32 7938 }
  0x28   :  { %6538 = vmatprep.subr.bf16.mxu0 %v6898_v14  ;;  %6873 = vmatprep.subr.bf16.mxu1 %v6898_v14  ;;  %v6903_v30 = vld [vmem:[#allocation3 + $0x8] sm:$0xff]   ;;  %v6904_v33 = vld [vmem:[#allocation3] sm:$0xff]   ;;  %v265_v34 = vld [vmem:[%s8994_s0 + $0x10] sm:$0xff]  ;;  %v7211_v63 = vand.u32 127, %v267_v0 }
  0x29   :  { %v7137_v2 = vsub.s32 2, %v268_v1  ;;  %v7139_v3 = vsub.s32 0, %v268_v1  ;;  %v7141_v4 = vsub.s32 3, %v268_v1  ;;  %v7143_v5 = vsub.s32 1, %v268_v1  ;;  %v266_v45 = vld [vmem:[%s8994_s0 + $0x18] sm:$0xff]  ;;  %vm7193_vm2 = vmand %vm66_vm0, %vm67_vm1 }
  0x2a   :  { %v7150_v9 = vsub.s32 5, %v268_v1  ;;  %v7154_v13 = vsub.s32 4, %v268_v1  ;;  %v7158_v18 = vsub.s32 7, %v268_v1  ;;  %v7160_v19 = vsub.s32 6, %v268_v1  ;;  %v6905_v50 = vld [vmem:[#allocation6 + $0x38] sm:$0xff]   ;;  %vm7200_vm4 = vmand %vm66_vm0, %vm165_vm3 }
  0x2b   :  { %v284_v7 = vrot.slane %v263_v6, %v7137_v2  ;;  %v270_v8 = vrot.slane %v263_v6, %v7139_v3  ;;  %v291_v11 = vrot.slane %v263_v6, %v7141_v4  ;;  %v277_v12 = vrot.slane %v263_v6, %v7143_v5  ;;  %6539 = vmatpush3.bf16.msra.mxu0 %v6898_v14  ;;  %v75_v52 = vld [vmem:[#allocation2 + $0x10] sm:$0x1]  ;;  %v173_v53 = vld [vmem:[#allocation2 + $0x14] sm:$0x1] }
  0x2c   :  { %v305_v16 = vrot.slane %v263_v6, %v7150_v9  ;;  %v298_v17 = vrot.slane %v263_v6, %v7154_v13  ;;  %6540 = vmatprep.subr.bf16.mxu0 %v6899_v15  ;;  %v319_v22 = vrot.slane %v263_v6, %v7158_v18  ;;  %v312_v23 = vrot.slane %v263_v6, %v7160_v19 }
  0x2d   :  { %286 = vbcast.lane.b32.xlu1 %v284_v7, 256  ;;  %272 = vbcast.lane.b32.xlu0 %v270_v8, 256  ;;  %v333_v25 = vrot.slane %v264_v21, %v7143_v5  ;;  %v326_v26 = vrot.slane %v264_v21, %v7139_v3  ;;  %v347_v28 = vrot.slane %v264_v21, %v7141_v4  ;;  %v9011_v51 = vsel %vm7193_vm2, 4294967295, %v9010_v51 }
  0x2e   :  { %6881 = vmatpush3.bf16.msra.mxu1 %v6898_v14  ;;  %v340_v29 = vrot.slane %v264_v21, %v7137_v2  ;;  %v361_v31 = vrot.slane %v264_v21, %v7150_v9  ;;  %v354_v32 = vrot.slane %v264_v21, %v7154_v13  ;;  %v375_v35 = vrot.slane %v264_v21, %v7158_v18 }
  0x2f   :  { %6541 = vmatpush3.bf16.msra.mxu0 %v6899_v15  ;;  %6874 = vmatprep.subr.bf16.mxu1 %v6899_v15  ;;  %v368_v36 = vrot.slane %v264_v21, %v7160_v19  ;;  %v389_v37 = vrot.slane %v265_v34, %v7143_v5  ;;  %v382_v38 = vrot.slane %v265_v34, %v7139_v3  ;;  %v76_v54 = vsel %vm7193_vm2, 0, %v75_v52 }
  0x30   :  { %6542 = vmatprep.subr.bf16.mxu0 %v6900_v20  ;;  %v403_v39 = vrot.slane %v265_v34, %v7141_v4  ;;  %v396_v40 = vrot.slane %v265_v34, %v7137_v2  ;;  %v417_v41 = vrot.slane %v265_v34, %v7150_v9  ;;  %v410_v42 = vrot.slane %v265_v34, %v7154_v13 }
  0x31   :  { %293 = vbcast.lane.b32.xlu1 %v291_v11, 256  ;;  %279 = vbcast.lane.b32.xlu0 %v277_v12, 256  ;;  %v431_v43 = vrot.slane %v265_v34, %v7158_v18  ;;  %v424_v44 = vrot.slane %v265_v34, %v7160_v19  ;;  %v445_v46 = vrot.slane %v266_v45, %v7143_v5  ;;  %v174_v58 = vsel %vm7200_vm4, 0, %v173_v53  ;;  %v6908_v34 = vld [vmem:[#allocation6 + $0x28] sm:$0xff]   ;;  %v81_v53 = vld [vmem:[#allocation2 + $0x20] sm:$0x1] }
  0x32   :  { %6882 = vmatpush3.bf16.msra.mxu1 %v6899_v15  ;;  %v438_v47 = vrot.slane %v266_v45, %v7139_v3  ;;  %v459_v48 = vrot.slane %v266_v45, %v7141_v4  ;;  %v452_v49 = vrot.slane %v266_v45, %v7137_v2  ;;  %9012 = vst [vmem:[#allocation13_spill] sm:$0xff] %v9011_v51  ;;  %77 = vst [vmem:[#allocation2 + $0x10] sm:$0x1] %v76_v54  ;;  %v6906_v3 = vld [vmem:[#allocation6 + $0x30] sm:$0xff]   ;;  %v7088_v4 = vmov 1.0|1.0  }
  0x33   :  { %6543 = vmatpush3.bf16.msra.mxu0 %v6900_v20  ;;  %6875 = vmatprep.subr.bf16.mxu1 %v6900_v20  ;;  %v473_v56 = vrot.slane %v266_v45, %v7150_v9  ;;  %v466_v57 = vrot.slane %v266_v45, %v7154_v13  ;;  %175 = vst [vmem:[#allocation2 + $0x14] sm:$0x1] %v174_v58  ;;  %v179_v54 = vld [vmem:[#allocation2 + $0x24] sm:$0x1] }
  0x34   :  { %6544 = vmatprep.subr.bf16.mxu0 %v6901_v24  ;;  %v487_v59 = vrot.slane %v266_v45, %v7158_v18  ;;  %v480_v60 = vrot.slane %v266_v45, %v7160_v19  ;;  %v180_v58 = vsel %vm7200_vm4, 0, %v179_v54 }
  0x35   :  { %307 = vbcast.lane.b32.xlu1 %v305_v16, 256  ;;  %300 = vbcast.lane.b32.xlu0 %v298_v17, 256  ;;  %181 = vst [vmem:[#allocation2 + $0x24] sm:$0x1] %v180_v58  ;;  %v7333_v58 = vld [vmem:[#allocation6 + $0xb8] sm:$0xff]  }
  0x36   :  { %6883 = vmatpush3.bf16.msra.mxu1 %v6900_v20 }
  0x37   :  { %6545 = vmatpush3.bf16.msra.mxu0 %v6901_v24  ;;  %6876 = vmatprep.subr.bf16.mxu1 %v6901_v24 }
  0x38   :  { %6546 = vmatprep.subr.bf16.mxu0 %v6902_v27 }
  0x39   :  { %321 = vbcast.lane.b32.xlu1 %v319_v22, 256  ;;  %314 = vbcast.lane.b32.xlu0 %v312_v23, 256  ;;  %v1372_v55 = vld [vmem:[#allocation2 + $0x10] sm:$0xf] }
  0x3a   :  { %6884 = vmatpush3.bf16.msra.mxu1 %v6901_v24 }
  0x3b   :  { %6547 = vmatpush3.bf16.msra.mxu0 %v6902_v27  ;;  %6877 = vmatprep.subr.bf16.mxu1 %v6902_v27 }
  0x3c   :  { %6548 = vmatprep.subr.bf16.mxu0 %v6903_v30 }
  0x3d   :  { %335 = vbcast.lane.b32.xlu1 %v333_v25, 256  ;;  %328 = vbcast.lane.b32.xlu0 %v326_v26, 256 }
  0x3e   :  { %6885 = vmatpush3.bf16.msra.mxu1 %v6902_v27 }
  0x3f   :  { %6549 = vmatpush3.bf16.msra.mxu0 %v6903_v30  ;;  %6878 = vmatprep.subr.bf16.mxu1 %v6903_v30 }
  0x40   :  { %6550 = vmatprep.subr.bf16.mxu0 %v6904_v33 }
  0x41   :  { %349 = vbcast.lane.b32.xlu1 %v347_v28, 256  ;;  %342 = vbcast.lane.b32.xlu0 %v340_v29, 256 }
  0x42   :  { %6886 = vmatpush3.bf16.msra.mxu1 %v6903_v30 }
  0x43   :  { %6551 = vmatpush3.bf16.msra.mxu0 %v6904_v33  ;;  %6879 = vmatprep.subr.bf16.mxu1 %v6904_v33 }
  0x44   :  { %6632 = vmatprep.subr.bf16.mxu0 %v6905_v50 }
  0x45   :  { %363 = vbcast.lane.b32.xlu1 %v361_v31, 256  ;;  %356 = vbcast.lane.b32.xlu0 %v354_v32, 256  ;;  %v69_v32 = vld [vmem:[#allocation2] sm:$0x1] }
  0x46   :  { %6887 = vmatpush3.bf16.msra.mxu1 %v6904_v33  ;;  %v167_v33 = vld [vmem:[#allocation2 + $0x4] sm:$0x1] }
  0x49   :  { %377 = vbcast.lane.b32.xlu1 %v375_v35, 256  ;;  %370 = vbcast.lane.b32.xlu0 %v368_v36, 256  ;;  %v70_v35 = vsel %vm7193_vm2, 0, %v69_v32  ;;  %v168_v36 = vsel %vm7200_vm4, 0, %v167_v33 }
  0x4a   :  { %71 = vst [vmem:[#allocation2] sm:$0x1] %v70_v35  ;;  %169 = vst [vmem:[#allocation2 + $0x4] sm:$0x1] %v168_v36  ;;  %v114_v35 = vld [vmem:[#allocation2 + $0x78] sm:$0x1] }
  0x4b   :  { %v212_v36 = vld [vmem:[#allocation2 + $0x7c] sm:$0x1] }
  0x4d   :  { %391 = vbcast.lane.b32.xlu1 %v389_v37, 256  ;;  %384 = vbcast.lane.b32.xlu0 %v382_v38, 256  ;;  %v6907_v37 = vld [vmem:[#allocation6 + $0x78] sm:$0xff]  }
  0x4e   :  { %v78_v38 = vld [vmem:[#allocation2 + $0x18] sm:$0x1]  ;;  %6584 = vmatprep.subr.bf16.mxu1 %v6907_v37 }
  0x51   :  { %405 = vbcast.lane.b32.xlu1 %v403_v39, 256  ;;  %398 = vbcast.lane.b32.xlu0 %v396_v40, 256  ;;  %v176_v39 = vld [vmem:[#allocation2 + $0x1c] sm:$0x1]  ;;  %v79_v40 = vsel %vm7193_vm2, 0, %v78_v38  ;;  %v213_v38 = vsel %vm7200_vm4, 0, %v212_v36 }
  0x52   :  { %80 = vst [vmem:[#allocation2 + $0x18] sm:$0x1] %v79_v40  ;;  %214 = vst [vmem:[#allocation2 + $0x7c] sm:$0x1] %v213_v38  ;;  %v206_v40 = vld [vmem:[#allocation2 + $0x6c] sm:$0x1] }
  0x53   :  { %v251_v36 = vld [vmem:[#allocation2 + $0xe4] sm:$0x1] }
  0x54   :  { %v252_v38 = vsel %vm7200_vm4, 0, %v251_v36 }
  0x55   :  { %419 = vbcast.lane.b32.xlu1 %v417_v41, 256  ;;  %412 = vbcast.lane.b32.xlu0 %v410_v42, 256  ;;  %v177_v41 = vsel %vm7200_vm4, 0, %v176_v39  ;;  %v72_v42 = vld [vmem:[#allocation2 + $0x8] sm:$0x1] }
  0x56   :  { %178 = vst [vmem:[#allocation2 + $0x1c] sm:$0x1] %v177_v41  ;;  %v73_v45 = vsel %vm7193_vm2, 0, %v72_v42  ;;  %v108_v39 = vld [vmem:[#allocation2 + $0x68] sm:$0x1] }
  0x57   :  { %74 = vst [vmem:[#allocation2 + $0x8] sm:$0x1] %v73_v45  ;;  %v123_v41 = vld [vmem:[#allocation2 + $0x90] sm:$0x1]  ;;  %v109_v42 = vsel %vm7193_vm2, 0, %v108_v39 }
  0x58   :  { %v221_v45 = vld [vmem:[#allocation2 + $0x94] sm:$0x1]  ;;  %110 = vst [vmem:[#allocation2 + $0x68] sm:$0x1] %v109_v42  ;;  %v162_v39 = vld [vmem:[#allocation2 + $0xf8] sm:$0x1] }
  0x59   :  { %433 = vbcast.lane.b32.xlu1 %v431_v43, 256  ;;  %426 = vbcast.lane.b32.xlu0 %v424_v44, 256  ;;  %v170_v43 = vld [vmem:[#allocation2 + $0xc] sm:$0x1]  ;;  %v6910_v44 = vld [vmem:[#allocation6 + $0x20] sm:$0xff]  }
  0x5a   :  { %253 = vst [vmem:[#allocation2 + $0xe4] sm:$0x1] %v252_v38 }
  0x5d   :  { %447 = vbcast.lane.b32.xlu1 %v445_v46, 256  ;;  %440 = vbcast.lane.b32.xlu0 %v438_v47, 256  ;;  %v171_v46 = vsel %vm7200_vm4, 0, %v170_v43  ;;  %v6909_v47 = vld [vmem:[#allocation6 + $0x70] sm:$0xff]   ;;  %v207_v43 = vsel %vm7200_vm4, 0, %v206_v40 }
  0x5e   :  { %172 = vst [vmem:[#allocation2 + $0xc] sm:$0x1] %v171_v46  ;;  %v6922_v46 = vld [vmem:[#allocation6 + $0x40] sm:$0xff]   ;;  %208 = vst [vmem:[#allocation2 + $0x6c] sm:$0x1] %v207_v43 }
  0x5f   :  { %v260_v40 = vld [vmem:[#allocation2 + $0xfc] sm:$0x1]  ;;  %v156_v43 = vld [vmem:[#allocation2 + $0xe8] sm:$0x1] }
  0x60   :  { %v261_v42 = vsel %vm7200_vm4, 0, %v260_v40 }
  0x61   :  { %461 = vbcast.lane.b32.xlu1 %v459_v48, 256  ;;  %454 = vbcast.lane.b32.xlu0 %v452_v49, 256  ;;  %v87_v48 = vld [vmem:[#allocation2 + $0x30] sm:$0x1]  ;;  %262 = vst [vmem:[#allocation2 + $0xfc] sm:$0x1] %v261_v42 }
  0x62   :  { %v88_v49 = vsel %vm7193_vm2, 0, %v87_v48  ;;  %v117_v48 = vld [vmem:[#allocation2 + $0x80] sm:$0x1] }
  0x63   :  { %89 = vst [vmem:[#allocation2 + $0x30] sm:$0x1] %v88_v49  ;;  %v215_v49 = vld [vmem:[#allocation2 + $0x84] sm:$0x1] }
  0x65   :  { %475 = vbcast.lane.b32.xlu1 %v473_v56, 256  ;;  %468 = vbcast.lane.b32.xlu0 %v466_v57, 256  ;;  %v6912_v56 = vld [vmem:[#allocation6 + $0x18] sm:$0xff]   ;;  %v82_v57 = vsel %vm7193_vm2, 0, %v81_v53  ;;  %v216_v53 = vsel %vm7200_vm4, 0, %v215_v49 }
  0x66   :  { %83 = vst [vmem:[#allocation2 + $0x20] sm:$0x1] %v82_v57  ;;  %217 = vst [vmem:[#allocation2 + $0x84] sm:$0x1] %v216_v53 }
  0x69   :  { %489 = vbcast.lane.b32.xlu1 %v487_v59, 256  ;;  %482 = vbcast.lane.b32.xlu0 %v480_v60, 256  ;;  %v6911_v59 = vld [vmem:[#allocation6 + $0x68] sm:$0xff]   ;;  %v90_v60 = vld [vmem:[#allocation2 + $0x38] sm:$0x1] }
  0x9f   :  { %v287_v61 = vpop.permute.xlu1 %286  ;;  %v273_v62 = vpop.permute.xlu0 %272 }
  0xa0   :  { %vm495_vm5 = vcmp.eq.s32.totalorder %v287_v61, %v7211_v63  ;;  %vm493_vm8 = vcmp.eq.s32.totalorder %v273_v62, %v7211_v63  ;;  %v188_v61 = vld [vmem:[#allocation2 + $0x3c] sm:$0x1]  ;;  %v91_v62 = vsel %vm7193_vm2, 0, %v90_v60  ;;  %v218_v60 = vld [vmem:[#allocation2 + $0x8c] sm:$0x1] }
  0xa1   :  { %92 = vst [vmem:[#allocation2 + $0x38] sm:$0x1] %v91_v62 }
  0xa3   :  { %v294_v1 = vpop.permute.xlu1 %293  ;;  %v280_v2 = vpop.permute.xlu0 %279 }
  0xa4   :  { %vm496_vm6 = vcmp.eq.s32.totalorder %v294_v1, %v7211_v63  ;;  %vm494_vm7 = vcmp.eq.s32.totalorder %v280_v2, %v7211_v63  ;;  %v84_v1 = vld [vmem:[#allocation2 + $0x28] sm:$0x1] }
  0xa5   :  { %vm6274_vm9 = vmpackc.low %vm496_vm6, %vm495_vm5  ;;  %v85_v2 = vsel %vm7193_vm2, 0, %v84_v1 }
  0xa6   :  { %vm6272_vm10 = vmpackc.low %vm494_vm7, %vm493_vm8  ;;  %86 = vst [vmem:[#allocation2 + $0x28] sm:$0x1] %v85_v2  ;;  %v233_v2 = vld [vmem:[#allocation2 + $0xb4] sm:$0x1] }
  0xa7   :  { %6552 = vmatprep.mubr.msk.bf16.mxu0 %vm6272_vm10, %v7088_v4  ;;  %v308_v5 = vpop.permute.xlu1 %307  ;;  %v301_v6 = vpop.permute.xlu0 %300 }
  0xa8   :  { %vm498_vm11 = vcmp.eq.s32.totalorder %v308_v5, %v7211_v63  ;;  %6553 = vmatmul.mubr.msk.bf16.vlgmr.msra.gmra.mxu0 %vm6274_vm9, %v7088_v4  ;;  %vm497_vm12 = vcmp.eq.s32.totalorder %v301_v6, %v7211_v63  ;;  %v6914_v5 = vld [vmem:[#allocation6 + $0x10] sm:$0xff]  }
  0xa9   :  { %vm6276_vm13 = vmpackc.low %vm498_vm11, %vm497_vm12  ;;  %6633 = vmatpush3.bf16.msra.mxu0 %v6905_v50  ;;  %v185_v50 = vld [vmem:[#allocation2 + $0x34] sm:$0x1] }
  0xaa   :  { %6556 = vmatprep.mubr.msk.bf16.mxu0 %vm6276_vm13, %v7088_v4  ;;  %6634 = vmatprep.subr.bf16.mxu0 %v6906_v3  ;;  %v186_v52 = vsel %vm7200_vm4, 0, %v185_v50  ;;  %v126_v50 = vld [vmem:[#allocation2 + $0x98] sm:$0x1] }
  0xab   :  { %v322_v0 = vpop.permute.xlu1 %321  ;;  %v315_v7 = vpop.permute.xlu0 %314  ;;  %187 = vst [vmem:[#allocation2 + $0x34] sm:$0x1] %v186_v52  ;;  %v118_v52 = vsel %vm7193_vm2, 0, %v117_v48  ;;  %v127_v54 = vsel %vm7193_vm2, 0, %v126_v50 }
  0xac   :  { %vm500_vm14 = vcmp.eq.s32.totalorder %v322_v0, %v7211_v63  ;;  %vm499_vm15 = vcmp.eq.s32.totalorder %v315_v7, %v7211_v63  ;;  %v99_v0 = vld [vmem:[#allocation2 + $0x50] sm:$0x1]  ;;  %119 = vst [vmem:[#allocation2 + $0x80] sm:$0x1] %v118_v52  ;;  %128 = vst [vmem:[#allocation2 + $0x98] sm:$0x1] %v127_v54 }
  0xad   :  { %vm6278_vm0 = vmpackc.low %vm500_vm14, %vm499_vm15  ;;  %6635 = vmatpush3.bf16.msra.mxu0 %v6906_v3  ;;  %v182_v3 = vld [vmem:[#allocation2 + $0x2c] sm:$0x1]  ;;  %v100_v7 = vsel %vm7193_vm2, 0, %v99_v0 }
  0xae   :  { %6636 = vmatprep.subr.bf16.mxu0 %v6908_v34  ;;  %v183_v6 = vsel %vm7200_vm4, 0, %v182_v3  ;;  %101 = vst [vmem:[#allocation2 + $0x50] sm:$0x1] %v100_v7  ;;  %v234_v3 = vsel %vm7200_vm4, 0, %v233_v2  ;;  %v138_v7 = vld [vmem:[#allocation2 + $0xb8] sm:$0x1] }
  0xaf   :  { %v336_v8 = vpop.permute.xlu1 %335  ;;  %v329_v9 = vpop.permute.xlu0 %328  ;;  %184 = vst [vmem:[#allocation2 + $0x2c] sm:$0x1] %v183_v6  ;;  %235 = vst [vmem:[#allocation2 + $0xb4] sm:$0x1] %v234_v3 }
  0xb0   :  { %vm502_vm1 = vcmp.eq.s32.totalorder %v336_v8, %v7211_v63  ;;  %6557 = vmatmul.mubr.msk.bf16.gmra.mxu0 %vm6278_vm0, %v7088_v4  ;;  %vm501_vm5 = vcmp.eq.s32.totalorder %v329_v9, %v7211_v63  ;;  %v197_v8 = vld [vmem:[#allocation2 + $0x54] sm:$0x1] }
  0xb1   :  { %vm6280_vm6 = vmpackc.low %vm502_vm1, %vm501_vm5  ;;  %6637 = vmatpush3.bf16.msra.mxu0 %v6908_v34  ;;  %v198_v9 = vsel %vm7200_vm4, 0, %v197_v8  ;;  %v6920_v34 = vld [vmem:[#allocation6 + $0x48] sm:$0xff]   ;;  %v236_v8 = vld [vmem:[#allocation2 + $0xbc] sm:$0x1] }
  0xb2   :  { %6560 = vmatprep.mubr.msk.bf16.mxu0 %vm6280_vm6, %v7088_v4  ;;  %6638 = vmatprep.subr.bf16.mxu0 %v6910_v44  ;;  %199 = vst [vmem:[#allocation2 + $0x54] sm:$0x1] %v198_v9  ;;  %v139_v9 = vsel %vm7193_vm2, 0, %v138_v7  ;;  %v1399_v40 = vld [vmem:[#allocation2 + $0x34] sm:$0x1] }
  0xb3   :  { %v350_v10 = vpop.permute.xlu1 %349  ;;  %v343_v11 = vpop.permute.xlu0 %342  ;;  %140 = vst [vmem:[#allocation2 + $0xb8] sm:$0x1] %v139_v9 }
  0xb4   :  { %vm504_vm7 = vcmp.eq.s32.totalorder %v350_v10, %v7211_v63  ;;  %vm503_vm8 = vcmp.eq.s32.totalorder %v343_v11, %v7211_v63  ;;  %v93_v10 = vld [vmem:[#allocation2 + $0x40] sm:$0x1]  ;;  %v191_v11 = vld [vmem:[#allocation2 + $0x44] sm:$0x1] }
  0xb5   :  { %vm6282_vm9 = vmpackc.low %vm504_vm7, %vm503_vm8  ;;  %6639 = vmatpush3.bf16.msra.mxu0 %v6910_v44  ;;  %v124_v44 = vsel %vm7193_vm2, 0, %v123_v41  ;;  %v163_v41 = vsel %vm7193_vm2, 0, %v162_v39 }
  0xb6   :  { %6640 = vmatprep.subr.bf16.mxu0 %v6912_v56  ;;  %125 = vst [vmem:[#allocation2 + $0x90] sm:$0x1] %v124_v44  ;;  %164 = vst [vmem:[#allocation2 + $0xf8] sm:$0x1] %v163_v41  ;;  %v254_v44 = vld [vmem:[#allocation2 + $0xec] sm:$0x1] }
  0xb7   :  { %v364_v12 = vpop.permute.xlu1 %363  ;;  %v357_v13 = vpop.permute.xlu0 %356 }
  0xb8   :  { %vm506_vm10 = vcmp.eq.s32.totalorder %v364_v12, %v7211_v63  ;;  %6561 = vmatmul.mubr.msk.bf16.gmra.mxu0 %vm6282_vm9, %v7088_v4  ;;  %vm505_vm11 = vcmp.eq.s32.totalorder %v357_v13, %v7211_v63  ;;  %v6916_v12 = vld [vmem:[#allocation6 + $0x8] sm:$0xff]   ;;  %v94_v13 = vsel %vm7193_vm2, 0, %v93_v10  ;;  %v237_v10 = vsel %vm7200_vm4, 0, %v236_v8 }
  0xb9   :  { %vm6284_vm12 = vmpackc.low %vm506_vm10, %vm505_vm11  ;;  %6641 = vmatpush3.bf16.msra.mxu0 %v6912_v56  ;;  %95 = vst [vmem:[#allocation2 + $0x40] sm:$0x1] %v94_v13  ;;  %v224_v56 = vld [vmem:[#allocation2 + $0x9c] sm:$0x1] }
  0xba   :  { %6564 = vmatprep.mubr.msk.bf16.mxu0 %vm6284_vm12, %v7088_v4  ;;  %6642 = vmatprep.subr.bf16.mxu0 %v6914_v5  ;;  %v225_v57 = vsel %vm7200_vm4, 0, %v224_v56  ;;  %238 = vst [vmem:[#allocation2 + $0xbc] sm:$0x1] %v237_v10 }
  0xbb   :  { %v378_v14 = vpop.permute.xlu1 %377  ;;  %v371_v15 = vpop.permute.xlu0 %370  ;;  %226 = vst [vmem:[#allocation2 + $0x9c] sm:$0x1] %v225_v57 }
  0xbc   :  { %vm508_vm13 = vcmp.eq.s32.totalorder %v378_v14, %v7211_v63  ;;  %vm507_vm14 = vcmp.eq.s32.totalorder %v371_v15, %v7211_v63  ;;  %v192_v14 = vsel %vm7200_vm4, 0, %v191_v11  ;;  %v6915_v15 = vld [vmem:[#allocation6 + $0x58] sm:$0xff]   ;;  %v132_v11 = vld [vmem:[#allocation2 + $0xa8] sm:$0x1] }
  0xbd   :  { %vm6286_vm15 = vmpackc.low %vm508_vm13, %vm507_vm14  ;;  %6643 = vmatpush3.bf16.msra.mxu0 %v6914_v5  ;;  %193 = vst [vmem:[#allocation2 + $0x44] sm:$0x1] %v192_v14  ;;  %v227_v5 = vld [vmem:[#allocation2 + $0xa4] sm:$0x1]  ;;  %v133_v13 = vsel %vm7193_vm2, 0, %v132_v11 }
  0xbe   :  { %6644 = vmatprep.subr.bf16.mxu0 %v6916_v12  ;;  %v228_v0 = vsel %vm7200_vm4, 0, %v227_v5  ;;  %134 = vst [vmem:[#allocation2 + $0xa8] sm:$0x1] %v133_v13  ;;  %v1360_v5 = vld [vmem:[#allocation2] sm:$0xf] }
  0xbf   :  { %v392_v16 = vpop.permute.xlu1 %391  ;;  %v385_v17 = vpop.permute.xlu0 %384  ;;  %229 = vst [vmem:[#allocation2 + $0xa4] sm:$0x1] %v228_v0 }
  0xc0   :  { %vm510_vm0 = vcmp.eq.s32.totalorder %v392_v16, %v7211_v63  ;;  %6565 = vmatmul.mubr.msk.bf16.gmra.mxu0 %vm6286_vm15, %v7088_v4  ;;  %vm509_vm1 = vcmp.eq.s32.totalorder %v385_v17, %v7211_v63  ;;  %v102_v16 = vld [vmem:[#allocation2 + $0x58] sm:$0x1]  ;;  %v200_v17 = vld [vmem:[#allocation2 + $0x5c] sm:$0x1] }
  0xc1   :  { %vm6288_vm5 = vmpackc.low %vm510_vm0, %vm509_vm1  ;;  %6645 = vmatpush3.bf16.msra.mxu0 %v6916_v12  ;;  %v230_v12 = vld [vmem:[#allocation2 + $0xac] sm:$0x1] }
  0xc2   :  { %6568 = vmatprep.mubr.msk.bf16.mxu1 %vm6288_vm5, %v7088_v4  ;;  %v231_v14 = vsel %vm7200_vm4, 0, %v230_v12 }
  0xc3   :  { %v406_v18 = vpop.permute.xlu1 %405  ;;  %v399_v19 = vpop.permute.xlu0 %398  ;;  %232 = vst [vmem:[#allocation2 + $0xac] sm:$0x1] %v231_v14 }
  0xc4   :  { %vm512_vm6 = vcmp.eq.s32.totalorder %v406_v18, %v7211_v63  ;;  %vm511_vm7 = vcmp.eq.s32.totalorder %v399_v19, %v7211_v63  ;;  %v103_v18 = vsel %vm7193_vm2, 0, %v102_v16  ;;  %v201_v19 = vsel %vm7200_vm4, 0, %v200_v17  ;;  %v245_v16 = vld [vmem:[#allocation2 + $0xd4] sm:$0x1] }
  0xc5   :  { %vm6290_vm8 = vmpackc.low %vm512_vm6, %vm511_vm7  ;;  %104 = vst [vmem:[#allocation2 + $0x58] sm:$0x1] %v103_v18  ;;  %v246_v18 = vsel %vm7200_vm4, 0, %v245_v16 }
  0xc6   :  { %6569 = vmatmul.mubr.msk.bf16.vlgmr.msra.gmra.mxu1 %vm6290_vm8, %v7088_v4  ;;  %202 = vst [vmem:[#allocation2 + $0x5c] sm:$0x1] %v201_v19  ;;  %v141_v19 = vld [vmem:[#allocation2 + $0xc0] sm:$0x1]  ;;  %247 = vst [vmem:[#allocation2 + $0xd4] sm:$0x1] %v246_v18 }
  0xc7   :  { %v420_v20 = vpop.permute.xlu1 %419  ;;  %v413_v21 = vpop.permute.xlu0 %412  ;;  %6585 = vmatpush3.bf16.msra.mxu1 %v6907_v37  ;;  %v115_v37 = vsel %vm7193_vm2, 0, %v114_v35  ;;  %v153_v35 = vld [vmem:[#allocation2 + $0xe0] sm:$0x1] }
  0xc8   :  { %vm514_vm9 = vcmp.eq.s32.totalorder %v420_v20, %v7211_v63  ;;  %vm513_vm10 = vcmp.eq.s32.totalorder %v413_v21, %v7211_v63  ;;  %6586 = vmatprep.subr.bf16.mxu1 %v6909_v47  ;;  %v96_v20 = vld [vmem:[#allocation2 + $0x48] sm:$0x1]  ;;  %v194_v21 = vld [vmem:[#allocation2 + $0x4c] sm:$0x1]  ;;  %116 = vst [vmem:[#allocation2 + $0x78] sm:$0x1] %v115_v37 }
  0xc9   :  { %vm6292_vm11 = vmpackc.low %vm514_vm9, %vm513_vm10  ;;  %v154_v37 = vsel %vm7193_vm2, 0, %v153_v35 }
  0xca   :  { %6572 = vmatprep.mubr.msk.bf16.mxu1 %vm6292_vm11, %v7088_v4  ;;  %155 = vst [vmem:[#allocation2 + $0xe0] sm:$0x1] %v154_v37  ;;  %v1396_v37 = vld [vmem:[#allocation2 + $0x30] sm:$0xf] }
  0xcb   :  { %v434_v22 = vpop.permute.xlu1 %433  ;;  %v427_v23 = vpop.permute.xlu0 %426  ;;  %6587 = vmatpush3.bf16.msra.mxu1 %v6909_v47  ;;  %v222_v47 = vsel %vm7200_vm4, 0, %v221_v45  ;;  %v157_v45 = vsel %vm7193_vm2, 0, %v156_v43 }
  0xcc   :  { %vm516_vm12 = vcmp.eq.s32.totalorder %v434_v22, %v7211_v63  ;;  %vm515_vm13 = vcmp.eq.s32.totalorder %v427_v23, %v7211_v63  ;;  %6588 = vmatprep.subr.bf16.mxu1 %v6911_v59  ;;  %v6918_v22 = vld [vmem:[#allocation6] sm:$0xff]   ;;  %v97_v23 = vsel %vm7193_vm2, 0, %v96_v20  ;;  %223 = vst [vmem:[#allocation2 + $0x94] sm:$0x1] %v222_v47  ;;  %158 = vst [vmem:[#allocation2 + $0xe8] sm:$0x1] %v157_v45 }
  0xcd   :  { %vm6294_vm14 = vmpackc.low %vm516_vm12, %vm515_vm13  ;;  %98 = vst [vmem:[#allocation2 + $0x48] sm:$0x1] %v97_v23  ;;  %6646 = vmatprep.subr.bf16.mxu0 %v6918_v22  ;;  %v239_v20 = vld [vmem:[#allocation2 + $0xc4] sm:$0x1]  ;;  %v150_v23 = vld [vmem:[#allocation2 + $0xd8] sm:$0x1] }
  0xce   :  { %6573 = vmatmul.mubr.msk.bf16.gmra.mxu1 %vm6294_vm14, %v7088_v4  ;;  %6647 = vmatpush3.bf16.msra.mxu0 %v6918_v22  ;;  %v240_v22 = vsel %vm7200_vm4, 0, %v239_v20  ;;  %vm1358_vm14 = vcmask 1043456   ;;  %v1381_v20 = vld [vmem:[#allocation2 + $0x1c] sm:$0x1] }
  0xcf   :  { %v448_v24 = vpop.permute.xlu1 %447  ;;  %v441_v25 = vpop.permute.xlu0 %440  ;;  %6589 = vmatpush3.bf16.msra.mxu1 %v6911_v59  ;;  %v120_v59 = vld [vmem:[#allocation2 + $0x88] sm:$0x1]  ;;  %241 = vst [vmem:[#allocation2 + $0xc4] sm:$0x1] %v240_v22 }
  0xd0   :  { %vm518_vm15 = vcmp.eq.s32.totalorder %v448_v24, %v7211_v63  ;;  %vm517_vm0 = vcmp.eq.s32.totalorder %v441_v25, %v7211_v63  ;;  %v195_v24 = vsel %vm7200_vm4, 0, %v194_v21  ;;  %v6917_v25 = vld [vmem:[#allocation6 + $0x50] sm:$0xff]   ;;  %v121_v62 = vsel %vm7193_vm2, 0, %v120_v59 }
  0xd1   :  { %vm6296_vm1 = vmpackc.low %vm518_vm15, %vm517_vm0  ;;  %196 = vst [vmem:[#allocation2 + $0x4c] sm:$0x1] %v195_v24  ;;  %v142_v21 = vsel %vm7193_vm2, 0, %v141_v19  ;;  %v248_v24 = vld [vmem:[#allocation2 + $0xdc] sm:$0x1] }
  0xd2   :  { %6576 = vmatprep.mubr.msk.bf16.mxu1 %vm6296_vm1, %v7088_v4  ;;  %122 = vst [vmem:[#allocation2 + $0x88] sm:$0x1] %v121_v62  ;;  %143 = vst [vmem:[#allocation2 + $0xc0] sm:$0x1] %v142_v21  ;;  %v1378_v19 = vld [vmem:[#allocation2 + $0x18] sm:$0xf] }
  0xd3   :  { %v462_v26 = vpop.permute.xlu1 %461  ;;  %v455_v27 = vpop.permute.xlu0 %454  ;;  %vm7389_vm15 = vmand %vm1358_vm14, %vm165_vm3  ;;  %vm1632_vm3 = vsmask.f32 3328  ;;  %vm2773_vm1 = vcmask 1042432  }
  0xd4   :  { %vm520_vm5 = vcmp.eq.s32.totalorder %v462_v26, %v7211_v63  ;;  %vm519_vm6 = vcmp.eq.s32.totalorder %v455_v27, %v7211_v63  ;;  %v111_v26 = vld [vmem:[#allocation2 + $0x70] sm:$0x1]  ;;  %v209_v27 = vld [vmem:[#allocation2 + $0x74] sm:$0x1] }
  0xd5   :  { %vm6298_vm7 = vmpackc.low %vm520_vm5, %vm519_vm6  ;;  %vm2774_vm5 = vcmask 1046532  }
  0xd6   :  { %6577 = vmatmul.mubr.msk.bf16.gmra.mxu1 %vm6298_vm7, %v7088_v4  ;;  %vm7906_vm6 = vmor %vm2773_vm1, %vm2774_vm5  ;;  %vm5867_vm7 = vcmask 1042434  }
  0xd7   :  { %v476_v28 = vpop.permute.xlu1 %475  ;;  %v469_v29 = vpop.permute.xlu0 %468 }
  0xd8   :  { %vm522_vm8 = vcmp.eq.s32.totalorder %v476_v28, %v7211_v63  ;;  %vm521_vm9 = vcmp.eq.s32.totalorder %v469_v29, %v7211_v63  ;;  %v112_v28 = vsel %vm7193_vm2, 0, %v111_v26  ;;  %v210_v29 = vsel %vm7200_vm4, 0, %v209_v27  ;;  %v144_v27 = vld [vmem:[#allocation2 + $0xc8] sm:$0x1] }
  0xd9   :  { %vm6300_vm10 = vmpackc.low %vm522_vm8, %vm521_vm9  ;;  %113 = vst [vmem:[#allocation2 + $0x70] sm:$0x1] %v112_v28  ;;  %v249_v26 = vsel %vm7200_vm4, 0, %v248_v24  ;;  %v242_v28 = vld [vmem:[#allocation2 + $0xcc] sm:$0x1]  ;;  %vm5869_vm8 = vcmask 1043459  }
  0xda   :  { %6580 = vmatprep.mubr.msk.bf16.mxu1 %vm6300_vm10, %v7088_v4  ;;  %211 = vst [vmem:[#allocation2 + $0x74] sm:$0x1] %v210_v29  ;;  %250 = vst [vmem:[#allocation2 + $0xdc] sm:$0x1] %v249_v26  ;;  %v145_v29 = vsel %vm7193_vm2, 0, %v144_v27  ;;  %vm5871_vm9 = vcmask 1044484  }
  0xdb   :  { %v490_v30 = vpop.permute.xlu1 %489  ;;  %v483_v31 = vpop.permute.xlu0 %482  ;;  %146 = vst [vmem:[#allocation2 + $0xc8] sm:$0x1] %v145_v29  ;;  %v1369_v29 = vld [vmem:[#allocation2 + $0xc] sm:$0x1]  ;;  %vm5873_vm10 = vcmask 1045509  }
  0xdc   :  { %vm524_vm11 = vcmp.eq.s32.totalorder %v490_v30, %v7211_v63  ;;  %vm523_vm12 = vcmp.eq.s32.totalorder %v483_v31, %v7211_v63  ;;  %v189_v63 = vsel %vm7200_vm4, 0, %v188_v61  ;;  %v105_v30 = vld [vmem:[#allocation2 + $0x60] sm:$0x1]  ;;  %v203_v31 = vld [vmem:[#allocation2 + $0x64] sm:$0x1] }
  0xdd   :  { %vm6302_vm13 = vmpackc.low %vm524_vm11, %vm523_vm12  ;;  %190 = vst [vmem:[#allocation2 + $0x3c] sm:$0x1] %v189_v63  ;;  %v106_v32 = vsel %vm7193_vm2, 0, %v105_v30  ;;  %v204_v33 = vsel %vm7200_vm4, 0, %v203_v31  ;;  %v135_v61 = vld [vmem:[#allocation2 + $0xb0] sm:$0x1] }
  0xde   :  { %6581 = vmatmul.mubr.msk.bf16.gmra.mxu1 %vm6302_vm13, %v7088_v4  ;;  %v6913_v4 = vld [vmem:[#allocation6 + $0x60] sm:$0xff]   ;;  %107 = vst [vmem:[#allocation2 + $0x60] sm:$0x1] %v106_v32  ;;  %205 = vst [vmem:[#allocation2 + $0x64] sm:$0x1] %v204_v33  ;;  %v219_v63 = vsel %vm7200_vm4, 0, %v218_v60 }
  0xdf   :  { %6590 = vmatprep.subr.bf16.mxu1 %v6913_v4  ;;  %v136_v1 = vsel %vm7193_vm2, 0, %v135_v61  ;;  %220 = vst [vmem:[#allocation2 + $0x8c] sm:$0x1] %v219_v63  ;;  %v243_v30 = vsel %vm7200_vm4, 0, %v242_v28  ;;  %v159_v31 = vld [vmem:[#allocation2 + $0xf0] sm:$0x1] }
  0xe0   :  { %6591 = vmatpush3.bf16.msra.mxu1 %v6913_v4  ;;  %137 = vst [vmem:[#allocation2 + $0xb0] sm:$0x1] %v136_v1  ;;  %v129_v4 = vld [vmem:[#allocation2 + $0xa0] sm:$0x1]  ;;  %v257_v32 = vld [vmem:[#allocation2 + $0xf4] sm:$0x1] }
  0xe1   :  { %6592 = vmatprep.subr.bf16.mxu1 %v6915_v15  ;;  %v130_v6 = vsel %vm7193_vm2, 0, %v129_v4  ;;  %244 = vst [vmem:[#allocation2 + $0xcc] sm:$0x1] %v243_v30  ;;  %v160_v33 = vsel %vm7193_vm2, 0, %v159_v31  ;;  %v9015_v60 = vmov 0  ;;  %vm5875_vm11 = vcmask 1046534  }
  0xe2   :  { %131 = vst [vmem:[#allocation2 + $0xa0] sm:$0x1] %v130_v6  ;;  %161 = vst [vmem:[#allocation2 + $0xf0] sm:$0x1] %v160_v33  ;;  %v9016_v60 = vsel %vm7389_vm15, 4294967295, %v9015_v60  ;;  %vm5877_vm12 = vcmask 1047559  }
  0xe3   :  { %9017 = vst [vmem:[#allocation14_spill] sm:$0xff] %v9016_v60  ;;  %v1375_v61 = vld [vmem:[#allocation2 + $0x14] sm:$0x1]  ;;  %v1363_v6 = vld [vmem:[#allocation2 + $0x4] sm:$0x1] }
  0xe4   :  { %6593 = vmatpush3.bf16.msra.mxu1 %v6915_v15  ;;  %v147_v15 = vld [vmem:[#allocation2 + $0xd0] sm:$0x1]  ;;  %v1366_v28 = vld [vmem:[#allocation2 + $0x8] sm:$0xf] }
  0xe5   :  { %6594 = vmatprep.subr.bf16.mxu1 %v6917_v25  ;;  %v148_v17 = vsel %vm7193_vm2, 0, %v147_v15 }
  0xe6   :  { %149 = vst [vmem:[#allocation2 + $0xd0] sm:$0x1] %v148_v17 }
  0xe8   :  { %6595 = vmatpush3.bf16.msra.mxu1 %v6917_v25  ;;  %v151_v25 = vsel %vm7193_vm2, 0, %v150_v23 }
  0xe9   :  { %6596 = vmatprep.subr.bf16.mxu1 %v6920_v34  ;;  %152 = vst [vmem:[#allocation2 + $0xd8] sm:$0x1] %v151_v25 }
  0xec   :  { %6597 = vmatpush3.bf16.msra.mxu1 %v6920_v34  ;;  %v258_v34 = vsel %vm7200_vm4, 0, %v257_v32 }
  0xed   :  { %6598 = vmatprep.subr.bf16.mxu1 %v6922_v46  ;;  %259 = vst [vmem:[#allocation2 + $0xf4] sm:$0x1] %v258_v34 }
  0xf0   :  { %6599 = vmatpush3.bf16.msra.mxu1 %v6922_v46  ;;  %v255_v46 = vsel %vm7200_vm4, 0, %v254_v44  ;;  %vm1633_vm4 = vsmask.f32 7440 }
  0xf1   :  { %6680 = vmatprep.subr.bf16.mxu1 %v7333_v58  ;;  %256 = vst [vmem:[#allocation2 + $0xec] sm:$0x1] %v255_v46  ;;  %v1384_v46 = vld [vmem:[#allocation2 + $0x20] sm:$0xf]  ;;  %vm7508_vm0 = vmor %vm1632_vm3, %vm1633_vm4 }
 0x168   :  { %v6554_v47 = vpop.f32.mrf.mxu0 }
 0x169   :  { %v6306_v48 = vpack.c.bf16 %v6554_v47, %v6554_v47  ;;  %v1387_v47 = vld [vmem:[#allocation2 + $0x24] sm:$0x1] }
 0x16a   :  { %v815_v49 = vpop.f32.mrf.mxu0 }
 0x16b   :  { %v1055_v50 = vshrl.u32 %v6306_v48, 16  ;;  %v6304_v52 = vpack.c.bf16 %v815_v49, %v815_v49  ;;  %v1058_v56 = vshll.u32 %v6306_v48, 16 }
 0x16c   :  { %v6555_v53 = vpop.f32.mrf.mxu0 }
 0x16d   :  { %v1057_v54 = vrot.slane %v1055_v50, 7  ;;  %v1039_v57 = vshrl.u32 %v6304_v52, 16  ;;  %v6307_v59 = vpack.c.bf16 %v6555_v53, %v6555_v53  ;;  %v1042_v62 = vshll.u32 %v6304_v52, 16 }
 0x16e   :  { %v818_v63 = vpop.f32.mrf.mxu0 }
 0x16f   :  { %v1060_v1 = vor.u32 %v1058_v56, %v1057_v54  ;;  %v1061_v2 = vrot.slane %v1057_v54, 4  ;;  %v1041_v3 = vrot.slane %v1039_v57, 7  ;;  %v1063_v4 = vshrl.u32 %v6307_v59, 16 }
 0x170   :  { %v6305_v0 = vpack.c.bf16 %v818_v63, %v818_v63  ;;  %v6558_v7 = vpop.f32.mrf.mxu0  ;;  %v1066_v13 = vshll.u32 %v6307_v59, 16 }
 0x171   :  { %v1373_v8 = vsel %vm7389_vm15, %v1060_v1, %v1372_v55  ;;  %v1376_v9 = vsel %vm7193_vm2, %v1061_v2, %v1375_v61  ;;  %v1044_v10 = vor.u32 %v1042_v62, %v1041_v3  ;;  %v1045_v11 = vrot.slane %v1041_v3, 4 }
 0x172   :  { %1374 = vst [vmem:[#allocation2 + $0x10] sm:$0xf] %v1373_v8  ;;  %1377 = vst [vmem:[#allocation2 + $0x14] sm:$0x1] %v1376_v9  ;;  %v1065_v12 = vrot.slane %v1063_v4, 7  ;;  %v1047_v14 = vshrl.u32 %v6305_v0, 16  ;;  %v6310_v15 = vpack.c.bf16 %v6558_v7, %v6558_v7  ;;  %v831_v16 = vpop.f32.mrf.mxu0 }
 0x173   :  { %v1361_v17 = vsel %vm7389_vm15, %v1044_v10, %v1360_v5  ;;  %v1364_v18 = vsel %vm7193_vm2, %v1045_v11, %v1363_v6  ;;  %v1050_v21 = vshll.u32 %v6305_v0, 16  ;;  %v6308_v22 = vpack.c.bf16 %v831_v16, %v831_v16  ;;  %v1402_v4 = vld [vmem:[#allocation2 + $0x38] sm:$0xf]  ;;  %v1405_v5 = vld [vmem:[#allocation2 + $0x3c] sm:$0x1] }
 0x174   :  { %1362 = vst [vmem:[#allocation2] sm:$0xf] %v1361_v17  ;;  %1365 = vst [vmem:[#allocation2 + $0x4] sm:$0x1] %v1364_v18  ;;  %v1068_v23 = vor.u32 %v1066_v13, %v1065_v12  ;;  %v1069_v24 = vrot.slane %v1065_v12, 4  ;;  %v1049_v25 = vrot.slane %v1047_v14, 7  ;;  %v6559_v27 = vpop.f32.mrf.mxu0 }
 0x175   :  { %v1087_v26 = vshrl.u32 %v6310_v15, 16  ;;  %v1090_v30 = vshll.u32 %v6310_v15, 16  ;;  %v1071_v31 = vshrl.u32 %v6308_v22, 16  ;;  %v6311_v32 = vpack.c.bf16 %v6559_v27, %v6559_v27  ;;  %v1390_v11 = vld [vmem:[#allocation2 + $0x28] sm:$0xf] }
 0x176   :  { %v1379_v33 = vsel %vm7389_vm15, %v1068_v23, %v1378_v19  ;;  %v1382_v34 = vsel %vm7193_vm2, %v1069_v24, %v1381_v20  ;;  %v1052_v35 = vor.u32 %v1050_v21, %v1049_v25  ;;  %v1053_v36 = vrot.slane %v1049_v25, 4  ;;  %v834_v38 = vpop.f32.mrf.mxu0  ;;  %v1393_v12 = vld [vmem:[#allocation2 + $0x2c] sm:$0x1] }
 0x177   :  { %1380 = vst [vmem:[#allocation2 + $0x18] sm:$0xf] %v1379_v33  ;;  %1383 = vst [vmem:[#allocation2 + $0x1c] sm:$0x1] %v1382_v34  ;;  %v1089_v39 = vrot.slane %v1087_v26, 7  ;;  %v1073_v41 = vrot.slane %v1071_v31, 7  ;;  %v6309_v49 = vpack.c.bf16 %v834_v38, %v834_v38 }
 0x178   :  { %v1074_v42 = vshll.u32 %v6308_v22, 16  ;;  %v1095_v43 = vshrl.u32 %v6311_v32, 16  ;;  %v1367_v44 = vsel %vm7389_vm15, %v1052_v35, %v1366_v28  ;;  %v1370_v45 = vsel %vm7193_vm2, %v1053_v36, %v1369_v29  ;;  %v6562_v50 = vpop.f32.mrf.mxu0  ;;  %v1420_v22 = vld [vmem:[#allocation2 + $0x50] sm:$0xf]  ;;  %v1423_v28 = vld [vmem:[#allocation2 + $0x54] sm:$0x1] }
 0x179   :  { %v1098_v48 = vshll.u32 %v6311_v32, 16  ;;  %1368 = vst [vmem:[#allocation2 + $0x8] sm:$0xf] %v1367_v44  ;;  %1371 = vst [vmem:[#allocation2 + $0xc] sm:$0x1] %v1370_v45  ;;  %v1092_v52 = vor.u32 %v1090_v30, %v1089_v39  ;;  %v1093_v53 = vrot.slane %v1089_v39, 4  ;;  %v6314_v61 = vpack.c.bf16 %v6562_v50, %v6562_v50 }
 0x17a   :  { %v1076_v54 = vor.u32 %v1074_v42, %v1073_v41  ;;  %v1077_v56 = vrot.slane %v1073_v41, 4  ;;  %v1097_v57 = vrot.slane %v1095_v43, 7  ;;  %v1079_v59 = vshrl.u32 %v6309_v49, 16  ;;  %v847_v62 = vpop.f32.mrf.mxu0  ;;  %v7417_v10 = vld [vmem:[#allocation2 + $0x10] sm:$0xf] }
 0x17b   :  { %v1082_v55 = vshll.u32 %v6309_v49, 16  ;;  %v1397_v63 = vsel %vm7389_vm15, %v1092_v52, %v1396_v37  ;;  %v1400_v1 = vsel %vm7193_vm2, %v1093_v53, %v1399_v40  ;;  %v1119_v8 = vshrl.u32 %v6314_v61, 16  ;;  %v1408_v30 = vld [vmem:[#allocation2 + $0x40] sm:$0xf]  ;;  %v1411_v36 = vld [vmem:[#allocation2 + $0x44] sm:$0x1] }
 0x17c   :  { %v1385_v2 = vsel %vm7389_vm15, %v1076_v54, %v1384_v46  ;;  %v1388_v3 = vsel %vm7193_vm2, %v1077_v56, %v1387_v47  ;;  %1398 = vst [vmem:[#allocation2 + $0x30] sm:$0xf] %v1397_v63  ;;  %1401 = vst [vmem:[#allocation2 + $0x34] sm:$0x1] %v1400_v1  ;;  %v1100_v6 = vor.u32 %v1098_v48, %v1097_v57  ;;  %v1101_v0 = vrot.slane %v1097_v57, 4  ;;  %v6563_v9 = vpop.f32.mrf.mxu0 }
 0x17d   :  { %1386 = vst [vmem:[#allocation2 + $0x20] sm:$0xf] %v1385_v2  ;;  %1389 = vst [vmem:[#allocation2 + $0x24] sm:$0x1] %v1388_v3  ;;  %v1081_v7 = vrot.slane %v1079_v59, 7  ;;  %v1122_v13 = vshll.u32 %v6314_v61, 16  ;;  %v6312_v14 = vpack.c.bf16 %v847_v62, %v847_v62  ;;  %v6315_v15 = vpack.c.bf16 %v6563_v9, %v6563_v9 }
 0x17e   :  { %v1403_v16 = vsel %vm7389_vm15, %v1100_v6, %v1402_v4  ;;  %v1406_v17 = vsel %vm7193_vm2, %v1101_v0, %v1405_v5  ;;  %v850_v20 = vpop.f32.mrf.mxu0  ;;  %v1121_v21 = vrot.slane %v1119_v8, 7  ;;  %v1664_v25 = vshrl.u32 %v7417_v10, 16  ;;  %v1426_v48 = vld [vmem:[#allocation2 + $0x58] sm:$0xf]  ;;  %v1429_v49 = vld [vmem:[#allocation2 + $0x5c] sm:$0x1] }
 0x17f   :  { %v1084_v18 = vor.u32 %v1082_v55, %v1081_v7  ;;  %v1085_v19 = vrot.slane %v1081_v7, 4  ;;  %1404 = vst [vmem:[#allocation2 + $0x38] sm:$0xf] %v1403_v16  ;;  %1407 = vst [vmem:[#allocation2 + $0x3c] sm:$0x1] %v1406_v17  ;;  %v1103_v23 = vshrl.u32 %v6312_v14, 16  ;;  %v6313_v31 = vpack.c.bf16 %v850_v20, %v850_v20 }
 0x180   :  { %v1127_v24 = vshrl.u32 %v6315_v15, 16  ;;  %v1106_v29 = vshll.u32 %v6312_v14, 16  ;;  %v6566_v32 = vpop.f32.mrf.mxu0  ;;  %v1124_v33 = vor.u32 %v1122_v13, %v1121_v21  ;;  %v1125_v34 = vrot.slane %v1121_v21, 4  ;;  %v7428_v43 = vld [vmem:[#allocation2 + $0x8] sm:$0xf] }
 0x181   :  { %v1391_v26 = vsel %vm7389_vm15, %v1084_v18, %v1390_v11  ;;  %v1394_v27 = vsel %vm7193_vm2, %v1085_v19, %v1393_v12  ;;  %v1105_v35 = vrot.slane %v1103_v23, 7  ;;  %v1130_v38 = vshll.u32 %v6315_v15, 16  ;;  %v1414_v55 = vld [vmem:[#allocation2 + $0x48] sm:$0xf]  ;;  %v1417_v61 = vld [vmem:[#allocation2 + $0x4c] sm:$0x1] }
 0x182   :  { %1392 = vst [vmem:[#allocation2 + $0x28] sm:$0xf] %v1391_v26  ;;  %1395 = vst [vmem:[#allocation2 + $0x2c] sm:$0x1] %v1394_v27  ;;  %v1129_v37 = vrot.slane %v1127_v24, 7  ;;  %v1111_v39 = vshrl.u32 %v6313_v31, 16  ;;  %v6318_v41 = vpack.c.bf16 %v6566_v32, %v6566_v32  ;;  %v863_v42 = vpop.f32.mrf.mxu0  ;;  %v1421_v44 = vsel %vm7389_vm15, %v1124_v33, %v1420_v22 }
 0x183   :  { %v1114_v40 = vshll.u32 %v6313_v31, 16  ;;  %v1424_v45 = vsel %vm7193_vm2, %v1125_v34, %v1423_v28  ;;  %v1108_v46 = vor.u32 %v1106_v29, %v1105_v35  ;;  %v1109_v47 = vrot.slane %v1105_v35, 4  ;;  %1422 = vst [vmem:[#allocation2 + $0x50] sm:$0xf] %v1421_v44  ;;  %v7443_v5 = vld [vmem:[#allocation2] sm:$0xf] }
 0x184   :  { %1425 = vst [vmem:[#allocation2 + $0x54] sm:$0x1] %v1424_v45  ;;  %v1132_v50 = vor.u32 %v1130_v38, %v1129_v37  ;;  %v1133_v52 = vrot.slane %v1129_v37, 4  ;;  %v1113_v53 = vrot.slane %v1111_v39, 7  ;;  %v1151_v54 = vshrl.u32 %v6318_v41, 16  ;;  %v6567_v56 = vpop.f32.mrf.mxu0 }
 0x185   :  { %v1409_v57 = vsel %vm7389_vm15, %v1108_v46, %v1408_v30  ;;  %v1412_v59 = vsel %vm7193_vm2, %v1109_v47, %v1411_v36  ;;  %v6316_v62 = vpack.c.bf16 %v863_v42, %v863_v42  ;;  %v1650_v63 = vshrl.u32 %v7428_v43, 16  ;;  %v7445_v11 = vld [vmem:[#allocation2 + $0x18] sm:$0xf]  ;;  %v1444_v15 = vld [vmem:[#allocation2 + $0x70] sm:$0xf] }
 0x186   :  { %1410 = vst [vmem:[#allocation2 + $0x40] sm:$0xf] %v1409_v57  ;;  %1413 = vst [vmem:[#allocation2 + $0x44] sm:$0x1] %v1412_v59  ;;  %v1427_v1 = vsel %vm7389_vm15, %v1132_v50, %v1426_v48  ;;  %v1430_v2 = vsel %vm7193_vm2, %v1133_v52, %v1429_v49  ;;  %v1116_v3 = vor.u32 %v1114_v40, %v1113_v53  ;;  %v1117_v4 = vrot.slane %v1113_v53, 4  ;;  %v6570_v6 = vpop.f32.mrf.mxu1  ;;  %v866_v12 = vpop.f32.mrf.mxu0 }
 0x187   :  { %1428 = vst [vmem:[#allocation2 + $0x58] sm:$0xf] %v1427_v1  ;;  %1431 = vst [vmem:[#allocation2 + $0x5c] sm:$0x1] %v1430_v2  ;;  %v1153_v0 = vrot.slane %v1151_v54, 7  ;;  %v1154_v7 = vshll.u32 %v6318_v41, 16  ;;  %v6038_v18 = vcombine.low %v7443_v5, %v7428_v43  ;;  %v6039_v27 = vcombine.low %v7417_v10, %v7445_v11 }
 0x188   :  { %v1135_v8 = vshrl.u32 %v6316_v62, 16  ;;  %v1138_v9 = vshll.u32 %v6316_v62, 16  ;;  %v1415_v13 = vsel %vm7389_vm15, %v1116_v3, %v1414_v55  ;;  %v1418_v14 = vsel %vm7193_vm2, %v1117_v4, %v1417_v61  ;;  %v1447_v16 = vld [vmem:[#allocation2 + $0x74] sm:$0x1]  ;;  %v1432_v23 = vld [vmem:[#allocation2 + $0x60] sm:$0xf]  ;;  %v879_v30 = vpop.f32.mrf.mxu1 }
 0x189   :  { %v1653_v17 = vshll.u32 %v7428_v43, 16  ;;  %1416 = vst [vmem:[#allocation2 + $0x48] sm:$0xf] %v1415_v13  ;;  %1419 = vst [vmem:[#allocation2 + $0x4c] sm:$0x1] %v1418_v14  ;;  %v1156_v19 = vor.u32 %v1154_v7, %v1153_v0  ;;  %v1157_v20 = vrot.slane %v1153_v0, 4  ;;  %6648 = vmatprep.mubr.bf16.mxu0 %v6038_v18  ;;  %v6319_v28 = vpack.c.bf16 %v6567_v56, %v6567_v56 }
 0x18a   :  { %v1137_v21 = vrot.slane %v1135_v8, 7  ;;  %v1667_v22 = vshll.u32 %v7417_v10, 16  ;;  %v1435_v24 = vld [vmem:[#allocation2 + $0x64] sm:$0x1]  ;;  %v1678_v26 = vshrl.u32 %v7445_v11, 16  ;;  %v6317_v29 = vpack.c.bf16 %v866_v12, %v866_v12  ;;  %6649 = vmatmul.mubr.bf16.vlgmr.msra.gmra.mxu0 %v6039_v27  ;;  %v6571_v3 = vpop.f32.mrf.mxu1 }
 0x18b   :  { %v1445_v31 = vsel %vm7389_vm15, %v1156_v19, %v1444_v15  ;;  %v1448_v32 = vsel %vm7193_vm2, %v1157_v20, %v1447_v16  ;;  %v7462_v35 = vld [vmem:[#allocation2 + $0x20] sm:$0xf]  ;;  %v1681_v36 = vshll.u32 %v7445_v11, 16  ;;  %v1159_v37 = vshrl.u32 %v6319_v28, 16  ;;  %v1450_v42 = vld [vmem:[#allocation2 + $0x78] sm:$0xf] }
 0x18c   :  { %v1140_v33 = vor.u32 %v1138_v9, %v1137_v21  ;;  %v1141_v34 = vrot.slane %v1137_v21, 4  ;;  %1446 = vst [vmem:[#allocation2 + $0x70] sm:$0xf] %v1445_v31  ;;  %1449 = vst [vmem:[#allocation2 + $0x74] sm:$0x1] %v1448_v32  ;;  %v1162_v38 = vshll.u32 %v6319_v28, 16  ;;  %v6322_v46 = vpack.c.bf16 %v6570_v6, %v6570_v6  ;;  %v882_v32 = vpop.f32.mrf.mxu1 }
 0x18d   :  { %v1143_v39 = vshrl.u32 %v6317_v29, 16  ;;  %v1453_v44 = vld [vmem:[#allocation2 + $0x7c] sm:$0x1]  ;;  %v1438_v45 = vld [vmem:[#allocation2 + $0x68] sm:$0xf]  ;;  %v6320_v47 = vpack.c.bf16 %v879_v30, %v879_v30  ;;  %v1161_v48 = vrot.slane %v1159_v37, 7  ;;  %v6323_v27 = vpack.c.bf16 %v6571_v3, %v6571_v3 }
 0x18e   :  { %v1433_v40 = vsel %vm7389_vm15, %v1140_v33, %v1432_v23  ;;  %v1436_v41 = vsel %vm7193_vm2, %v1141_v34, %v1435_v24  ;;  %v1146_v50 = vshll.u32 %v6317_v29, 16  ;;  %v7469_v52 = vld [vmem:[#allocation2 + $0x28] sm:$0xf]  ;;  %v1692_v53 = vshrl.u32 %v7462_v35, 16  ;;  %v1441_v54 = vld [vmem:[#allocation2 + $0x6c] sm:$0x1] }
 0x18f   :  { %1434 = vst [vmem:[#allocation2 + $0x60] sm:$0xf] %v1433_v40  ;;  %1437 = vst [vmem:[#allocation2 + $0x64] sm:$0x1] %v1436_v41  ;;  %v1145_v49 = vrot.slane %v1143_v39, 7  ;;  %v1183_v56 = vshrl.u32 %v6322_v46, 16  ;;  %v1164_v61 = vor.u32 %v1162_v38, %v1161_v48  ;;  %v6040_v24 = vcombine.low %v7462_v35, %v7469_v52 }
 0x190   :  { %v1186_v57 = vshll.u32 %v6322_v46, 16  ;;  %v1167_v59 = vshrl.u32 %v6320_v47, 16  ;;  %v1695_v55 = vshll.u32 %v7462_v35, 16  ;;  %v1165_v62 = vrot.slane %v1161_v48, 4  ;;  %v1468_v6 = vld [vmem:[#allocation2 + $0x90] sm:$0xf] }
 0x191   :  { %v1148_v1 = vor.u32 %v1146_v50, %v1145_v49  ;;  %v1149_v2 = vrot.slane %v1145_v49, 4  ;;  %v1185_v4 = vrot.slane %v1183_v56, 7  ;;  %v1170_v7 = vshll.u32 %v6320_v47, 16  ;;  %v1471_v15 = vld [vmem:[#allocation2 + $0x94] sm:$0x1]  ;;  %6652 = vmatprep.mubr.bf16.mxu0 %v6040_v24 }
 0x192   :  { %v1169_v0 = vrot.slane %v1167_v59, 7  ;;  %v1706_v8 = vshrl.u32 %v7469_v52, 16  ;;  %v1451_v9 = vsel %vm7389_vm15, %v1164_v61, %v1450_v42  ;;  %v1454_v12 = vsel %vm7193_vm2, %v1165_v62, %v1453_v44  ;;  %v1456_v16 = vld [vmem:[#allocation2 + $0x80] sm:$0xf]  ;;  %v1459_v18 = vld [vmem:[#allocation2 + $0x84] sm:$0x1]  ;;  %v6574_v61 = vpop.f32.mrf.mxu1 }
 0x193   :  { %v1439_v13 = vsel %vm7389_vm15, %v1148_v1, %v1438_v45  ;;  %v1442_v14 = vsel %vm7193_vm2, %v1149_v2, %v1441_v54  ;;  %1452 = vst [vmem:[#allocation2 + $0x78] sm:$0xf] %v1451_v9  ;;  %1455 = vst [vmem:[#allocation2 + $0x7c] sm:$0x1] %v1454_v12  ;;  %v1188_v19 = vor.u32 %v1186_v57, %v1185_v4  ;;  %v1189_v20 = vrot.slane %v1185_v4, 4 }
 0x194   :  { %1440 = vst [vmem:[#allocation2 + $0x68] sm:$0xf] %v1439_v13  ;;  %1443 = vst [vmem:[#allocation2 + $0x6c] sm:$0x1] %v1442_v14  ;;  %v1172_v21 = vor.u32 %v1170_v7, %v1169_v0  ;;  %v1173_v23 = vrot.slane %v1169_v0, 4  ;;  %v1636_v30 = vshrl.u32 %v7443_v5, 16 }
 0x195   :  { %v1600_v28 = vld [vmem:[#allocation2 + $0x4] sm:$0x1]  ;;  %v1601_v29 = vld [vmem:[#allocation2 + $0xc] sm:$0x1]  ;;  %v1639_v31 = vshll.u32 %v7443_v5, 16  ;;  %v1469_v33 = vsel %vm7389_vm15, %v1188_v19, %v1468_v6  ;;  %v1472_v34 = vsel %vm7193_vm2, %v1189_v20, %v1471_v15  ;;  %v1709_v5 = vshll.u32 %v7469_v52, 16  ;;  %v895_v20 = vpop.f32.mrf.mxu1 }
 0x196   :  { %v1457_v37 = vsel %vm7389_vm15, %v1172_v21, %v1456_v16  ;;  %v1460_v38 = vsel %vm7193_vm2, %v1173_v23, %v1459_v18  ;;  %v7494_v39 = vld [vmem:[#allocation2 + $0x30] sm:$0xf]  ;;  %1470 = vst [vmem:[#allocation2 + $0x90] sm:$0xf] %v1469_v33  ;;  %1473 = vst [vmem:[#allocation2 + $0x94] sm:$0x1] %v1472_v34  ;;  %v6326_v33 = vpack.c.bf16 %v6574_v61, %v6574_v61 }
 0x197   :  { %1458 = vst [vmem:[#allocation2 + $0x80] sm:$0xf] %v1457_v37  ;;  %1461 = vst [vmem:[#allocation2 + $0x84] sm:$0x1] %v1460_v38  ;;  %v1191_v40 = vshrl.u32 %v6323_v27, 16  ;;  %v1638_v41 = vrot.slane %v1636_v30, 4  ;;  %v6324_v34 = vpack.c.bf16 %v895_v20, %v895_v20 }
 0x198   :  { %v1641_v42 = vrot.slane %v1639_v31, 5  ;;  %v1474_v44 = vld [vmem:[#allocation2 + $0x98] sm:$0xf]  ;;  %v1645_v45 = vshll.u32 %v1600_v28, 16  ;;  %v1652_v46 = vrot.slane %v1650_v63, 4  ;;  %v1655_v47 = vrot.slane %v1653_v17, 5 }
 0x199   :  { %v1659_v48 = vshll.u32 %v1601_v29, 16  ;;  %v7501_v49 = vld [vmem:[#allocation2 + $0x38] sm:$0xf]  ;;  %v1193_v50 = vrot.slane %v1191_v40, 7  ;;  %v1194_v54 = vshll.u32 %v6323_v27, 16  ;;  %v1720_v59 = vshrl.u32 %v7494_v39, 16 }
 0x19a   :  { %v1477_v56 = vld [vmem:[#allocation2 + $0x9c] sm:$0x1]  ;;  %v1642_v57 = vor.u32 %v1641_v42, %v1638_v41  ;;  %v1647_v62 = vrot.slane %v1645_v45, 5  ;;  %v1656_v1 = vor.u32 %v1655_v47, %v1652_v46  ;;  %v1723_v3 = vshll.u32 %v7494_v39, 16  ;;  %v1602_v4 = vld [vmem:[#allocation2 + $0x14] sm:$0x1] }
 0x19b   :  { %v1661_v2 = vrot.slane %v1659_v48, 5  ;;  %v1196_v63 = vor.u32 %v1194_v54, %v1193_v50  ;;  %v1197_v6 = vrot.slane %v1193_v50, 4  ;;  %v1734_v17 = vshrl.u32 %v7501_v49, 16  ;;  %v1603_v12 = vld [vmem:[#allocation2 + $0x1c] sm:$0x1]  ;;  %v6575_v54 = vpop.f32.mrf.mxu1  ;;  %v6934_v52 = vld [vmem:[#allocation6 + $0xa0] sm:$0xff]  }
 0x19c   :  { %v1643_v43 = vrot.slane %v1642_v57, 4  ;;  %v9018_v0 = vmov 0  ;;  %v1657_v7 = vrot.slane %v1656_v1, 4  ;;  %v6041_v9 = vcombine.low %v7494_v39, %v7501_v49  ;;  %v7531_v29 = vld [vmem:[#allocation2 + $0x40] sm:$0xf] }
 0x19d   :  { %v9019_v0 = vsel %vm7508_vm0, 4294967295, %v9018_v0  ;;  %v1666_v13 = vrot.slane %v1664_v25, 4  ;;  %v1669_v14 = vrot.slane %v1667_v22, 5  ;;  %v1475_v15 = vsel %vm7389_vm15, %v1196_v63, %v1474_v44  ;;  %v1465_v47 = vld [vmem:[#allocation2 + $0x8c] sm:$0x1] }
 0x19e   :  { %9020 = vst [vmem:[#allocation15_spill] sm:$0xff] %v9019_v0  ;;  %v1478_v16 = vsel %vm7193_vm2, %v1197_v6, %v1477_v56  ;;  %v1648_v18 = vsel %vm7508_vm0, %v1643_v43, %v1647_v62  ;;  %v1673_v19 = vshll.u32 %v1602_v4, 16  ;;  %1476 = vst [vmem:[#allocation2 + $0x98] sm:$0xf] %v1475_v15  ;;  %v1662_v21 = vsel %vm7508_vm0, %v1657_v7, %v1661_v2  ;;  %v1492_v61 = vld [vmem:[#allocation2 + $0xb0] sm:$0xf] }
 0x19f   :  { %1479 = vst [vmem:[#allocation2 + $0x9c] sm:$0x1] %v1478_v16  ;;  %6653 = vmatmul.mubr.bf16.gmra.mxu0 %v6041_v9  ;;  %v1670_v25 = vor.u32 %v1669_v14, %v1666_v13  ;;  %v1680_v10 = vrot.slane %v1678_v26, 4  ;;  %v1683_v22 = vrot.slane %v1681_v36, 5  ;;  %v6014_v23 = vcombine.low %v1648_v18, %v1662_v21  ;;  %v7533_v26 = vld [vmem:[#allocation2 + $0x48] sm:$0xf] }
 0x1a0   :  { %v1737_v24 = vshll.u32 %v7501_v49, 16  ;;  %v1687_v27 = vshll.u32 %v1603_v12, 16  ;;  %v6321_v28 = vpack.c.bf16 %v882_v32, %v882_v32  ;;  %v1675_v37 = vrot.slane %v1673_v19, 5  ;;  %v1462_v36 = vld [vmem:[#allocation2 + $0x88] sm:$0xf]  ;;  %v6928_v7 = vld [vmem:[#allocation6 + $0xb0] sm:$0xff]  }
 0x1a1   :  { %v1671_v30 = vrot.slane %v1670_v25, 4  ;;  %v1684_v31 = vor.u32 %v1683_v22, %v1680_v10  ;;  %6600 = vmatprep.mubr.bf16.mxu1 %v6014_v23  ;;  %v1215_v42 = vshrl.u32 %v6326_v33, 16  ;;  %v1218_v44 = vshll.u32 %v6326_v33, 16  ;;  %v1495_v6 = vld [vmem:[#allocation2 + $0xb4] sm:$0x1]  ;;  %v7548_v10 = vpop.f32.mrf.mxu1 }
 0x1a2   :  { %v1689_v38 = vrot.slane %v1687_v27, 5  ;;  %v1175_v40 = vshrl.u32 %v6321_v28, 16  ;;  %v1178_v41 = vshll.u32 %v6321_v28, 16  ;;  %v1748_v45 = vshrl.u32 %v7531_v29, 16  ;;  %v1480_v13 = vld [vmem:[#allocation2 + $0xa0] sm:$0xf] }
 0x1a3   :  { %v1685_v11 = vrot.slane %v1684_v31, 4  ;;  %v1676_v32 = vsel %vm7508_vm0, %v1671_v30, %v1675_v37  ;;  %v1199_v48 = vshrl.u32 %v6324_v34, 16  ;;  %v1202_v50 = vshll.u32 %v6324_v34, 16  ;;  %v1483_v14 = vld [vmem:[#allocation2 + $0xa4] sm:$0x1] }
 0x1a4   :  { %v1177_v46 = vrot.slane %v1175_v40, 7  ;;  %v1217_v57 = vrot.slane %v1215_v42, 7  ;;  %v1751_v62 = vshll.u32 %v7531_v29, 16  ;;  %v1762_v1 = vshrl.u32 %v7533_v26, 16  ;;  %v1604_v25 = vld [vmem:[#allocation2 + $0x24] sm:$0x1] }
 0x1a5   :  { %v1690_v56 = vsel %vm7508_vm0, %v1685_v11, %v1689_v38  ;;  %v1201_v43 = vrot.slane %v1199_v48, 7  ;;  %v6042_v15 = vcombine.low %v7531_v29, %v7533_v26  ;;  %v6327_v16 = vpack.c.bf16 %v6575_v54, %v6575_v54  ;;  %v7555_v30 = vld [vmem:[#allocation2 + $0x2c] sm:$0x1]  ;;  %v7557_v31 = vld [vmem:[#allocation2 + $0x50] sm:$0xf] }
 0x1a6   :  { %v6015_v2 = vcombine.low %v1676_v32, %v1690_v56  ;;  %v1180_v4 = vor.u32 %v1178_v41, %v1177_v46  ;;  %v1181_v63 = vrot.slane %v1177_v46, 4  ;;  %v1220_v9 = vor.u32 %v1218_v44, %v1217_v57  ;;  %v1498_v34 = vld [vmem:[#allocation2 + $0xb8] sm:$0xf]  ;;  %v6931_v40 = vld [vmem:[#allocation6 + $0xa8] sm:$0xff]  }
 0x1a7   :  { %v1221_v12 = vrot.slane %v1217_v57, 4  ;;  %v1204_v20 = vor.u32 %v1202_v50, %v1201_v43  ;;  %v1205_v21 = vrot.slane %v1201_v43, 4  ;;  %6656 = vmatprep.mubr.bf16.mxu0 %v6042_v15  ;;  %v1223_v27 = vshrl.u32 %v6327_v16, 16  ;;  %v7571_v44 = vld [vmem:[#allocation2 + $0x58] sm:$0xf] }
 0x1a8   :  { %6601 = vmatmul.mubr.bf16.vlgmr.msra.gmra.mxu1 %v6015_v2  ;;  %v1463_v18 = vsel %vm7389_vm15, %v1180_v4, %v1462_v36  ;;  %v1466_v19 = vsel %vm7193_vm2, %v1181_v63, %v1465_v47  ;;  %v1493_v22 = vsel %vm7389_vm15, %v1220_v9, %v1492_v61  ;;  %v1226_v28 = vshll.u32 %v6327_v16, 16  ;;  %v6578_v47 = vpop.f32.mrf.mxu1  ;;  %v7580_v4 = vld [vmem:[#allocation2 + $0x3c] sm:$0x1] }
 0x1a9   :  { %6681 = vmatpush3.bf16.msra.mxu1 %v7333_v58  ;;  %1464 = vst [vmem:[#allocation2 + $0x88] sm:$0xf] %v1463_v18  ;;  %1467 = vst [vmem:[#allocation2 + $0x8c] sm:$0x1] %v1466_v19  ;;  %v1496_v23 = vsel %vm7193_vm2, %v1221_v12, %v1495_v6  ;;  %v1481_v58 = vsel %vm7389_vm15, %v1204_v20, %v1480_v13  ;;  %v1484_v33 = vsel %vm7193_vm2, %v1205_v21, %v1483_v14 }
 0x1aa   :  { %1494 = vst [vmem:[#allocation2 + $0xb0] sm:$0xf] %v1493_v22  ;;  %1497 = vst [vmem:[#allocation2 + $0xb4] sm:$0x1] %v1496_v23  ;;  %v1694_v37 = vrot.slane %v1692_v53, 4  ;;  %v1697_v38 = vrot.slane %v1695_v55, 5  ;;  %6682 = vmatprep.subr.bf16.mxu1 %v6928_v7  ;;  %v6043_v9 = vcombine.low %v7557_v31, %v7571_v44  ;;  %v911_v15 = vpop.f32.mrf.mxu1  ;;  %v6325_v21 = vpack.c.bf16 %v7548_v10, %v7548_v10 }
 0x1ab   :  { %1482 = vst [vmem:[#allocation2 + $0xa0] sm:$0xf] %v1481_v58  ;;  %1485 = vst [vmem:[#allocation2 + $0xa4] sm:$0x1] %v1484_v33  ;;  %v1225_v41 = vrot.slane %v1223_v27, 7  ;;  %v1701_v11 = vshll.u32 %v1604_v25, 16  ;;  %v6330_v27 = vpack.c.bf16 %v6578_v47, %v6578_v47 }
 0x1ac   :  { %v1708_v36 = vrot.slane %v1706_v8, 4  ;;  %v1711_v42 = vrot.slane %v1709_v5, 5  ;;  %v1765_v32 = vshll.u32 %v7533_v26, 16  ;;  %v1501_v53 = vld [vmem:[#allocation2 + $0xbc] sm:$0x1]  ;;  %v1698_v46 = vor.u32 %v1697_v38, %v1694_v37  ;;  %6657 = vmatmul.mubr.bf16.gmra.mxu0 %v6043_v9  ;;  %v6579_v47 = vpop.f32.mrf.mxu1 }
 0x1ad   :  { %v1715_v35 = vshll.u32 %v7555_v30, 16  ;;  %v1776_v55 = vshrl.u32 %v7557_v31, 16  ;;  %v1228_v48 = vor.u32 %v1226_v28, %v1225_v41  ;;  %v1229_v50 = vrot.slane %v1225_v41, 4  ;;  %v7577_v8 = vld [vmem:[#allocation2 + $0x34] sm:$0x1]  ;;  %6683 = vmatpush3.bf16.msra.mxu1 %v6928_v7  ;;  %v6937_v25 = vld [vmem:[#allocation6 + $0x98] sm:$0xff]  }
 0x1ae   :  { %v1712_v54 = vor.u32 %v1711_v42, %v1708_v36  ;;  %v1779_v56 = vshll.u32 %v7557_v31, 16  ;;  %v1699_v5 = vrot.slane %v1698_v46, 4  ;;  %v1703_v57 = vrot.slane %v1701_v11, 5  ;;  %6684 = vmatprep.subr.bf16.mxu1 %v6931_v40  ;;  %v1486_v37 = vld [vmem:[#allocation2 + $0xa8] sm:$0xf] }
 0x1af   :  { %v1717_v61 = vrot.slane %v1715_v35, 5  ;;  %v1790_v2 = vshrl.u32 %v7571_v44, 16  ;;  %v1499_v63 = vsel %vm7389_vm15, %v1228_v48, %v1498_v34  ;;  %v1502_v6 = vsel %vm7193_vm2, %v1229_v50, %v1501_v53  ;;  %v1489_v38 = vld [vmem:[#allocation2 + $0xac] sm:$0x1]  ;;  %v7607_v10 = vld [vmem:[#allocation2 + $0x68] sm:$0xf] }
 0x1b0   :  { %v1713_v43 = vrot.slane %v1712_v54, 4  ;;  %1500 = vst [vmem:[#allocation2 + $0xb8] sm:$0xf] %v1499_v63  ;;  %1503 = vst [vmem:[#allocation2 + $0xbc] sm:$0x1] %v1502_v6  ;;  %v1704_v7 = vsel %vm7508_vm0, %v1699_v5, %v1703_v57  ;;  %v1722_v12 = vrot.slane %v1720_v59, 4  ;;  %v6328_v28 = vpack.c.bf16 %v911_v15, %v911_v15 }
 0x1b1   :  { %v1725_v13 = vrot.slane %v1723_v3, 5  ;;  %v1729_v14 = vshll.u32 %v7577_v8, 16  ;;  %v1736_v18 = vrot.slane %v1734_v17, 4  ;;  %v1739_v19 = vrot.slane %v1737_v24, 5  ;;  %6685 = vmatpush3.bf16.msra.mxu1 %v6931_v40  ;;  %v7605_v17 = vld [vmem:[#allocation2 + $0x60] sm:$0xf] }
 0x1b2   :  { %v1718_v16 = vsel %vm7508_vm0, %v1713_v43, %v1717_v61  ;;  %v1743_v20 = vshll.u32 %v7580_v4, 16  ;;  %v1793_v39 = vshll.u32 %v7571_v44, 16  ;;  %6686 = vmatprep.subr.bf16.mxu1 %v6934_v52  ;;  %v1207_v58 = vshrl.u32 %v6325_v21, 16  ;;  %v1516_v53 = vld [vmem:[#allocation2 + $0xd0] sm:$0xf] }
 0x1b3   :  { %v6016_v59 = vcombine.low %v1704_v7, %v1718_v16  ;;  %v1726_v3 = vor.u32 %v1725_v13, %v1722_v12  ;;  %v1731_v22 = vrot.slane %v1729_v14, 5  ;;  %v1740_v23 = vor.u32 %v1739_v19, %v1736_v18  ;;  %v1519_v54 = vld [vmem:[#allocation2 + $0xd4] sm:$0x1]  ;;  %v1504_v43 = vld [vmem:[#allocation2 + $0xc0] sm:$0xf] }
 0x1b4   :  { %v1745_v24 = vrot.slane %v1743_v20, 5  ;;  %v1210_v33 = vshll.u32 %v6325_v21, 16  ;;  %v1247_v40 = vshrl.u32 %v6330_v27, 16  ;;  %v1250_v41 = vshll.u32 %v6330_v27, 16  ;;  %v6940_v61 = vld [vmem:[#allocation6 + $0x90] sm:$0xff]   ;;  %v7626_v21 = vpop.f32.mrf.mxu1 }
 0x1b5   :  { %6604 = vmatprep.mubr.bf16.mxu1 %v6016_v59  ;;  %v1727_v49 = vrot.slane %v1726_v3, 4  ;;  %v1741_v34 = vrot.slane %v1740_v23, 4  ;;  %v1231_v11 = vshrl.u32 %v6328_v28, 16  ;;  %6687 = vmatpush3.bf16.msra.mxu1 %v6934_v52  ;;  %v1209_v42 = vrot.slane %v1207_v58, 7  ;;  %v1507_v9 = vld [vmem:[#allocation2 + $0xc4] sm:$0x1] }
 0x1b6   :  { %v1234_v46 = vshll.u32 %v6328_v28, 16  ;;  %v1804_v35 = vshrl.u32 %v7605_v17, 16  ;;  %6688 = vmatprep.subr.bf16.mxu1 %v6937_v25  ;;  %v1249_v50 = vrot.slane %v1247_v40, 7  ;;  %v1807_v57 = vshll.u32 %v7605_v17, 16  ;;  %v7622_v59 = vld [vmem:[#allocation2 + $0x44] sm:$0x1] }
 0x1b7   :  { %v1732_v36 = vsel %vm7508_vm0, %v1727_v49, %v1731_v22  ;;  %v1746_v48 = vsel %vm7508_vm0, %v1741_v34, %v1745_v24  ;;  %v1233_v5 = vrot.slane %v1231_v11, 7  ;;  %v1212_v63 = vor.u32 %v1210_v33, %v1209_v42  ;;  %v7624_v3 = vld [vmem:[#allocation2 + $0x4c] sm:$0x1]  ;;  %v7636_v49 = vld [vmem:[#allocation2 + $0x70] sm:$0xf] }
 0x1b8   :  { %v6017_v52 = vcombine.low %v1732_v36, %v1746_v48  ;;  %v1213_v6 = vrot.slane %v1209_v42, 4  ;;  %v1818_v7 = vshrl.u32 %v7607_v10, 16  ;;  %v1252_v12 = vor.u32 %v1250_v41, %v1249_v50  ;;  %v6943_v22 = vld [vmem:[#allocation6 + $0x88] sm:$0xff]   ;;  %v7649_v36 = vld [vmem:[#allocation2 + $0x78] sm:$0xf] }
 0x1b9   :  { %v1253_v13 = vrot.slane %v1249_v50, 4  ;;  %v1236_v14 = vor.u32 %v1234_v46, %v1233_v5  ;;  %v1237_v15 = vrot.slane %v1233_v5, 4  ;;  %6689 = vmatpush3.bf16.msra.mxu1 %v6937_v25  ;;  %v1487_v16 = vsel %vm7389_vm15, %v1212_v63, %v1486_v37  ;;  %v1522_v37 = vld [vmem:[#allocation2 + $0xd8] sm:$0xf] }
 0x1ba   :  { %6605 = vmatmul.mubr.bf16.gmra.mxu1 %v6017_v52  ;;  %v1490_v18 = vsel %vm7193_vm2, %v1213_v6, %v1489_v38  ;;  %v6044_v19 = vcombine.low %v7605_v17, %v7607_v10  ;;  %v6331_v20 = vpack.c.bf16 %v6579_v47, %v6579_v47  ;;  %1488 = vst [vmem:[#allocation2 + $0xa8] sm:$0xf] %v1487_v16  ;;  %v1821_v24 = vshll.u32 %v7607_v10, 16  ;;  %v6944_v47 = vld [vmem:[#allocation6 + $0x80] sm:$0xff]  }
 0x1bb   :  { %1491 = vst [vmem:[#allocation2 + $0xac] sm:$0x1] %v1490_v18  ;;  %v1517_v25 = vsel %vm7389_vm15, %v1252_v12, %v1516_v53  ;;  %v1520_v23 = vsel %vm7193_vm2, %v1253_v13, %v1519_v54  ;;  %v1505_v27 = vsel %vm7389_vm15, %v1236_v14, %v1504_v43  ;;  %v1508_v28 = vsel %vm7193_vm2, %v1237_v15, %v1507_v9  ;;  %v7658_v43 = vld [vmem:[#allocation2 + $0x5c] sm:$0x1] }
 0x1bc   :  { %6690 = vmatprep.subr.bf16.mxu1 %v6940_v61  ;;  %1518 = vst [vmem:[#allocation2 + $0xd0] sm:$0xf] %v1517_v25  ;;  %1521 = vst [vmem:[#allocation2 + $0xd4] sm:$0x1] %v1520_v23  ;;  %6660 = vmatprep.mubr.bf16.mxu0 %v6044_v19  ;;  %v1255_v58 = vshrl.u32 %v6331_v20, 16  ;;  %v1750_v33 = vrot.slane %v1748_v45, 4  ;;  %v6045_v6 = vcombine.low %v7636_v49, %v7649_v36 }
 0x1bd   :  { %1506 = vst [vmem:[#allocation2 + $0xc0] sm:$0xf] %v1505_v27  ;;  %1509 = vst [vmem:[#allocation2 + $0xc4] sm:$0x1] %v1508_v28  ;;  %v1753_v34 = vrot.slane %v1751_v62, 5  ;;  %v1757_v38 = vshll.u32 %v7622_v59, 16  ;;  %6691 = vmatpush3.bf16.msra.mxu1 %v6940_v61  ;;  %v6582_v62 = vpop.f32.mrf.mxu1  ;;  %v6329_v23 = vpack.c.bf16 %v7626_v21, %v7626_v21 }
 0x1be   :  { %v1764_v40 = vrot.slane %v1762_v1, 4  ;;  %v1767_v41 = vrot.slane %v1765_v32, 5  ;;  %v1771_v11 = vshll.u32 %v7624_v3, 16  ;;  %v1257_v42 = vrot.slane %v1255_v58, 7  ;;  %v1525_v45 = vld [vmem:[#allocation2 + $0xdc] sm:$0x1]  ;;  %6692 = vmatprep.subr.bf16.mxu1 %v6943_v22  ;;  %6661 = vmatmul.mubr.bf16.gmra.mxu0 %v6045_v6 }
 0x1bf   :  { %v1258_v53 = vshll.u32 %v6331_v20, 16  ;;  %v1754_v46 = vor.u32 %v1753_v34, %v1750_v33  ;;  %v1832_v29 = vshrl.u32 %v7636_v49, 16  ;;  %v1759_v48 = vrot.slane %v1757_v38, 5  ;;  %v7653_v32 = vld [vmem:[#allocation2 + $0x54] sm:$0x1]  ;;  %v927_v18 = vpop.f32.mrf.mxu1 }
 0x1c0   :  { %v1768_v50 = vor.u32 %v1767_v41, %v1764_v40  ;;  %v1773_v1 = vrot.slane %v1771_v11, 5  ;;  %v1835_v26 = vshll.u32 %v7636_v49, 16  ;;  %v1261_v5 = vrot.slane %v1257_v42, 4  ;;  %v7681_v27 = vld [vmem:[#allocation2 + $0x80] sm:$0xf] }
 0x1c1   :  { %v1260_v54 = vor.u32 %v1258_v53, %v1257_v42  ;;  %v1755_v52 = vrot.slane %v1754_v46, 4  ;;  %v1846_v61 = vshrl.u32 %v7649_v36, 16  ;;  %v1778_v9 = vrot.slane %v1776_v55, 4  ;;  %6693 = vmatpush3.bf16.msra.mxu1 %v6943_v22  ;;  %v7683_v38 = vld [vmem:[#allocation2 + $0x88] sm:$0xf] }
 0x1c2   :  { %v1769_v63 = vrot.slane %v1768_v50, 4  ;;  %v1781_v12 = vrot.slane %v1779_v56, 5  ;;  %v1526_v14 = vsel %vm7193_vm2, %v1261_v5, %v1525_v45  ;;  %v1785_v16 = vshll.u32 %v7653_v32, 16  ;;  %6694 = vmatprep.subr.bf16.mxu1 %v6944_v47  ;;  %v1510_v45 = vld [vmem:[#allocation2 + $0xc8] sm:$0xf] }
 0x1c3   :  { %v1523_v13 = vsel %vm7389_vm15, %v1260_v54, %v1522_v37  ;;  %v1760_v15 = vsel %vm7508_vm0, %v1755_v52, %v1759_v48  ;;  %1527 = vst [vmem:[#allocation2 + $0xdc] sm:$0x1] %v1526_v14  ;;  %v1792_v56 = vrot.slane %v1790_v2, 4  ;;  %v1795_v19 = vrot.slane %v1793_v39, 5  ;;  %v1513_v50 = vld [vmem:[#allocation2 + $0xcc] sm:$0x1] }
 0x1c4   :  { %1524 = vst [vmem:[#allocation2 + $0xd8] sm:$0xf] %v1523_v13  ;;  %v1774_v31 = vsel %vm7508_vm0, %v1769_v63, %v1773_v1  ;;  %v1782_v55 = vor.u32 %v1781_v12, %v1778_v9  ;;  %v1849_v22 = vshll.u32 %v7649_v36, 16  ;;  %v1799_v25 = vshll.u32 %v7658_v43, 16  ;;  %v1540_v9 = vld [vmem:[#allocation2 + $0xf0] sm:$0xf] }
 0x1c5   :  { %v6018_v20 = vcombine.low %v1760_v15, %v1774_v31  ;;  %v1796_v58 = vor.u32 %v1795_v19, %v1792_v56  ;;  %v6334_v33 = vpack.c.bf16 %v6582_v62, %v6582_v62  ;;  %v6332_v34 = vpack.c.bf16 %v927_v18, %v927_v18  ;;  %6695 = vmatpush3.bf16.msra.mxu1 %v6944_v47  ;;  %v6583_v47 = vpop.f32.mrf.mxu1  ;;  %v1543_v12 = vld [vmem:[#allocation2 + $0xf4] sm:$0x1]  ;;  %v1531_v18 = vld [vmem:[#allocation2 + $0xe4] sm:$0x1] }
 0x1c6   :  { %v1783_v28 = vrot.slane %v1782_v55, 4  ;;  %v1787_v2 = vrot.slane %v1785_v16, 5  ;;  %v1801_v37 = vrot.slane %v1799_v25, 5  ;;  %v1239_v44 = vshrl.u32 %v6329_v23, 16  ;;  %v1528_v16 = vld [vmem:[#allocation2 + $0xe0] sm:$0xf] }
 0x1c7   :  { %6608 = vmatprep.mubr.bf16.mxu1 %v6018_v20  ;;  %v1242_v39 = vshll.u32 %v6329_v23, 16  ;;  %v1797_v40 = vrot.slane %v1796_v58, 4  ;;  %v1279_v41 = vshrl.u32 %v6334_v33, 16  ;;  %v1282_v11 = vshll.u32 %v6334_v33, 16  ;;  %v7698_v23 = vld [vmem:[#allocation2 + $0x64] sm:$0x1] }
 0x1c8   :  { %v1860_v42 = vshrl.u32 %v7681_v27, 16  ;;  %v1788_v21 = vsel %vm7508_vm0, %v1783_v28, %v1787_v2  ;;  %v1241_v53 = vrot.slane %v1239_v44, 7  ;;  %v1263_v46 = vshrl.u32 %v6332_v34, 16  ;;  %v7704_v2 = vld [vmem:[#allocation2 + $0x6c] sm:$0x1] }
 0x1c9   :  { %v1266_v62 = vshll.u32 %v6332_v34, 16  ;;  %v1802_v48 = vsel %vm7508_vm0, %v1797_v40, %v1801_v37  ;;  %v1281_v1 = vrot.slane %v1279_v41, 7  ;;  %v1863_v54 = vshll.u32 %v7681_v27, 16  ;;  %v7706_v37 = vld [vmem:[#allocation2 + $0x90] sm:$0xf] }
 0x1ca   :  { %v1874_v5 = vshrl.u32 %v7683_v38, 16  ;;  %v6019_v52 = vcombine.low %v1788_v21, %v1802_v48  ;;  %v1244_v63 = vor.u32 %v1242_v39, %v1241_v53  ;;  %v1245_v6 = vrot.slane %v1241_v53, 4  ;;  %v1546_v40 = vld [vmem:[#allocation2 + $0xf8] sm:$0xf]  ;;  %v1549_v48 = vld [vmem:[#allocation2 + $0xfc] sm:$0x1] }
 0x1cb   :  { %v1265_v13 = vrot.slane %v1263_v46, 7  ;;  %v1284_v14 = vor.u32 %v1282_v11, %v1281_v1  ;;  %v1285_v15 = vrot.slane %v1281_v1, 4  ;;  %v6046_v31 = vcombine.low %v7681_v27, %v7683_v38  ;;  %v7780_v27 = vld [vmem:[#allocation2 + $0xb8] sm:$0xf] }
 0x1cc   :  { %v6335_v55 = vpack.c.bf16 %v6583_v47, %v6583_v47  ;;  %6609 = vmatmul.mubr.bf16.gmra.mxu1 %v6019_v52  ;;  %v1511_v56 = vsel %vm7389_vm15, %v1244_v63, %v1510_v45  ;;  %v1514_v19 = vsel %vm7193_vm2, %v1245_v6, %v1513_v50  ;;  %v1806_v41 = vrot.slane %v1804_v35, 4  ;;  %v7727_v6 = vld [vmem:[#allocation2 + $0x74] sm:$0x1] }
 0x1cd   :  { %v1268_v20 = vor.u32 %v1266_v62, %v1265_v13  ;;  %v1269_v25 = vrot.slane %v1265_v13, 4  ;;  %1512 = vst [vmem:[#allocation2 + $0xc8] sm:$0xf] %v1511_v56  ;;  %1515 = vst [vmem:[#allocation2 + $0xcc] sm:$0x1] %v1514_v19  ;;  %v1541_v28 = vsel %vm7389_vm15, %v1284_v14, %v1540_v9  ;;  %v1544_v58 = vsel %vm7193_vm2, %v1285_v15, %v1543_v12 }
 0x1ce   :  { %6664 = vmatprep.mubr.bf16.mxu0 %v6046_v31  ;;  %v1287_v33 = vshrl.u32 %v6335_v55, 16  ;;  %v1290_v34 = vshll.u32 %v6335_v55, 16  ;;  %1542 = vst [vmem:[#allocation2 + $0xf0] sm:$0xf] %v1541_v28  ;;  %1545 = vst [vmem:[#allocation2 + $0xf4] sm:$0x1] %v1544_v58 }
 0x1cf   :  { %v1529_v44 = vsel %vm7389_vm15, %v1268_v20, %v1528_v16  ;;  %v1532_v39 = vsel %vm7193_vm2, %v1269_v25, %v1531_v18  ;;  %v1809_v11 = vrot.slane %v1807_v57, 5  ;;  %v1813_v53 = vshll.u32 %v7698_v23, 16  ;;  %v7721_v62 = vld [vmem:[#allocation2 + $0x98] sm:$0xf]  ;;  %v7730_v12 = vld [vmem:[#allocation2 + $0x7c] sm:$0x1]  ;;  %v930_v18 = vpop.f32.mrf.mxu1 }
 0x1d0   :  { %1530 = vst [vmem:[#allocation2 + $0xe0] sm:$0xf] %v1529_v44  ;;  %1533 = vst [vmem:[#allocation2 + $0xe4] sm:$0x1] %v1532_v39  ;;  %v1289_v21 = vrot.slane %v1287_v33, 7  ;;  %v1820_v45 = vrot.slane %v1818_v7, 4  ;;  %v6047_v16 = vcombine.low %v7706_v37, %v7721_v62 }
 0x1d1   :  { %v1823_v46 = vrot.slane %v1821_v24, 5  ;;  %v1877_v47 = vshll.u32 %v7683_v38, 16  ;;  %v1810_v35 = vor.u32 %v1809_v11, %v1806_v41  ;;  %v1827_v17 = vshll.u32 %v7704_v2, 16  ;;  %v7745_v20 = vld [vmem:[#allocation2 + $0xa0] sm:$0xf] }
 0x1d2   :  { %v1888_v57 = vshrl.u32 %v7706_v37, 16  ;;  %v1292_v50 = vor.u32 %v1290_v34, %v1289_v21  ;;  %v1293_v1 = vrot.slane %v1289_v21, 4  ;;  %v1891_v63 = vshll.u32 %v7706_v37, 16  ;;  %6665 = vmatmul.mubr.bf16.gmra.mxu0 %v6047_v16  ;;  %v7755_v44 = vld [vmem:[#allocation2 + $0xa8] sm:$0xf] }
 0x1d3   :  { %v1824_v52 = vor.u32 %v1823_v46, %v1820_v45  ;;  %v1811_v7 = vrot.slane %v1810_v35, 4  ;;  %v1815_v10 = vrot.slane %v1813_v53, 5  ;;  %v1829_v24 = vrot.slane %v1827_v17, 5  ;;  %v7758_v21 = vld [vmem:[#allocation2 + $0x84] sm:$0x1] }
 0x1d4   :  { %v1902_v9 = vshrl.u32 %v7721_v62, 16  ;;  %v1547_v13 = vsel %vm7389_vm15, %v1292_v50, %v1546_v40  ;;  %v1550_v14 = vsel %vm7193_vm2, %v1293_v1, %v1549_v48  ;;  %v1834_v55 = vrot.slane %v1832_v29, 4  ;;  %v7761_v45 = vld [vmem:[#allocation2 + $0x8c] sm:$0x1]  ;;  %v1534_v48 = vld [vmem:[#allocation2 + $0xe8] sm:$0xf] }
 0x1d5   :  { %v1825_v15 = vrot.slane %v1824_v52, 4  ;;  %1548 = vst [vmem:[#allocation2 + $0xf8] sm:$0xf] %v1547_v13  ;;  %1551 = vst [vmem:[#allocation2 + $0xfc] sm:$0x1] %v1550_v14  ;;  %v1816_v31 = vsel %vm7508_vm0, %v1811_v7, %v1815_v10  ;;  %v1837_v56 = vrot.slane %v1835_v26, 5  ;;  %v6333_v34 = vpack.c.bf16 %v930_v18, %v930_v18 }
 0x1d6   :  { %v1841_v19 = vshll.u32 %v7727_v6, 16  ;;  %v1848_v28 = vrot.slane %v1846_v61, 4  ;;  %v1851_v58 = vrot.slane %v1849_v22, 5  ;;  %v1855_v33 = vshll.u32 %v7730_v12, 16  ;;  %v1537_v7 = vld [vmem:[#allocation2 + $0xec] sm:$0x1] }
 0x1d7   :  { %v1830_v25 = vsel %vm7508_vm0, %v1825_v15, %v1829_v24  ;;  %v1905_v49 = vshll.u32 %v7721_v62, 16  ;;  %v1838_v26 = vor.u32 %v1837_v56, %v1834_v55  ;;  %v1916_v11 = vshrl.u32 %v7745_v20, 16  ;;  %v7778_v16 = vld [vmem:[#allocation2 + $0xb0] sm:$0xf]  ;;  %v7817_v62 = vld [vmem:[#allocation2 + $0xac] sm:$0x1] }
 0x1d8   :  { %v6020_v29 = vcombine.low %v1816_v31, %v1830_v25  ;;  %v1843_v39 = vrot.slane %v1841_v19, 5  ;;  %v1852_v40 = vor.u32 %v1851_v58, %v1848_v28  ;;  %v1857_v41 = vrot.slane %v1855_v33, 5  ;;  %v7783_v58 = vld [vmem:[#allocation2 + $0x94] sm:$0x1] }
 0x1d9   :  { %v1839_v61 = vrot.slane %v1838_v26, 4  ;;  %v1271_v36 = vshrl.u32 %v6333_v34, 16  ;;  %v1274_v22 = vshll.u32 %v6333_v34, 16  ;;  %v1919_v53 = vshll.u32 %v7745_v20, 16 }
 0x1da   :  { %6612 = vmatprep.mubr.bf16.mxu1 %v6020_v29  ;;  %v1853_v46 = vrot.slane %v1852_v40, 4  ;;  %v1930_v35 = vshrl.u32 %v7755_v44, 16  ;;  %v6048_v17 = vcombine.low %v7745_v20, %v7755_v44  ;;  %v1862_v50 = vrot.slane %v1860_v42, 4  ;;  %v7790_v29 = vld [vmem:[#allocation2 + $0x9c] sm:$0x1] }
 0x1db   :  { %v1844_v1 = vsel %vm7508_vm0, %v1839_v61, %v1843_v39  ;;  %v1273_v52 = vrot.slane %v1271_v36, 7  ;;  %v1865_v10 = vrot.slane %v1863_v54, 5  ;;  %v1869_v24 = vshll.u32 %v7758_v21, 16 }
 0x1dc   :  { %v1858_v13 = vsel %vm7508_vm0, %v1853_v46, %v1857_v41  ;;  %6668 = vmatprep.mubr.bf16.mxu0 %v6048_v17  ;;  %v1876_v14 = vrot.slane %v1874_v5, 4  ;;  %v1879_v15 = vrot.slane %v1877_v47, 5  ;;  %v1883_v42 = vshll.u32 %v7761_v45, 16  ;;  %v7803_v46 = vld [vmem:[#allocation2 + $0xc0] sm:$0xf] }
 0x1dd   :  { %v6021_v18 = vcombine.low %v1844_v1, %v1858_v13  ;;  %v1276_v31 = vor.u32 %v1274_v22, %v1273_v52  ;;  %v1277_v55 = vrot.slane %v1273_v52, 4  ;;  %v1866_v56 = vor.u32 %v1865_v10, %v1862_v50  ;;  %v7810_v52 = vld [vmem:[#allocation2 + $0xc8] sm:$0xf]  ;;  %v7813_v10 = vld [vmem:[#allocation2 + $0xa4] sm:$0x1] }
 0x1de   :  { %v1933_v54 = vshll.u32 %v7755_v44, 16  ;;  %v1871_v19 = vrot.slane %v1869_v24, 5  ;;  %v1880_v25 = vor.u32 %v1879_v15, %v1876_v14  ;;  %v1885_v28 = vrot.slane %v1883_v42, 5  ;;  %v7840_v44 = vld [vmem:[#allocation2 + $0xb4] sm:$0x1] }
 0x1df   :  { %6613 = vmatmul.mubr.bf16.gmra.mxu1 %v6021_v18  ;;  %v1535_v38 = vsel %vm7389_vm15, %v1276_v31, %v1534_v48  ;;  %v1538_v5 = vsel %vm7193_vm2, %v1277_v55, %v1537_v7  ;;  %v1867_v47 = vrot.slane %v1866_v56, 4  ;;  %v1944_v33 = vshrl.u32 %v7778_v16, 16  ;;  %v7824_v18 = vld [vmem:[#allocation2 + $0xd0] sm:$0xf] }
 0x1e0   :  { %1536 = vst [vmem:[#allocation2 + $0xe8] sm:$0xf] %v1535_v38  ;;  %1539 = vst [vmem:[#allocation2 + $0xec] sm:$0x1] %v1538_v5  ;;  %v1881_v26 = vrot.slane %v1880_v25, 4  ;;  %v1947_v34 = vshll.u32 %v7778_v16, 16  ;;  %v6049_v40 = vcombine.low %v7778_v16, %v7780_v27  ;;  %v6050_v42 = vcombine.low %v7803_v46, %v7810_v52 }
 0x1e1   :  { %v1958_v39 = vshrl.u32 %v7780_v27, 16  ;;  %v1872_v41 = vsel %vm7508_vm0, %v1867_v47, %v1871_v19  ;;  %v1890_v61 = vrot.slane %v1888_v57, 4  ;;  %v1893_v36 = vrot.slane %v1891_v63, 5  ;;  %v7835_v38 = vld [vmem:[#allocation2 + $0xd8] sm:$0xf] }
 0x1e2   :  { %v1897_v22 = vshll.u32 %v7783_v58, 16  ;;  %v1886_v48 = vsel %vm7508_vm0, %v1881_v26, %v1885_v28  ;;  %6669 = vmatmul.mubr.bf16.gmra.mxu0 %v6049_v40  ;;  %v1904_v17 = vrot.slane %v1902_v9, 4  ;;  %v1907_v50 = vrot.slane %v1905_v49, 5 }
 0x1e3   :  { %v1911_v1 = vshll.u32 %v7790_v29, 16  ;;  %v6022_v57 = vcombine.low %v1872_v41, %v1886_v48  ;;  %v1961_v37 = vshll.u32 %v7780_v27, 16  ;;  %v1894_v63 = vor.u32 %v1893_v36, %v1890_v61  ;;  %6672 = vmatprep.mubr.bf16.mxu0 %v6050_v42  ;;  %v7843_v61 = vld [vmem:[#allocation2 + $0xbc] sm:$0x1]  ;;  %v7848_v48 = vld [vmem:[#allocation2 + $0xe0] sm:$0xf] }
 0x1e4   :  { %v1899_v7 = vrot.slane %v1897_v22, 5  ;;  %v1908_v24 = vor.u32 %v1907_v50, %v1904_v17  ;;  %v1972_v14 = vshrl.u32 %v7803_v46, 16  ;;  %v1975_v15 = vshll.u32 %v7803_v46, 16 }
 0x1e5   :  { %v1913_v13 = vrot.slane %v1911_v1, 5  ;;  %6616 = vmatprep.mubr.bf16.mxu1 %v6022_v57  ;;  %v1895_v9 = vrot.slane %v1894_v63, 4  ;;  %v1986_v49 = vshrl.u32 %v7810_v52, 16  ;;  %v1918_v16 = vrot.slane %v1916_v11, 4 }
 0x1e6   :  { %v1909_v31 = vrot.slane %v1908_v24, 4  ;;  %v1921_v55 = vrot.slane %v1919_v53, 5  ;;  %v1925_v56 = vshll.u32 %v7813_v10, 16  ;;  %v1932_v27 = vrot.slane %v1930_v35, 4 }
 0x1e7   :  { %v1900_v19 = vsel %vm7508_vm0, %v1895_v9, %v1899_v7  ;;  %v1989_v25 = vshll.u32 %v7810_v52, 16  ;;  %v1935_v28 = vrot.slane %v1933_v54, 5  ;;  %v1939_v11 = vshll.u32 %v7817_v62, 16 }
 0x1e8   :  { %v1914_v20 = vsel %vm7508_vm0, %v1909_v31, %v1913_v13  ;;  %v1922_v53 = vor.u32 %v1921_v55, %v1918_v16  ;;  %v1927_v5 = vrot.slane %v1925_v56, 5  ;;  %v2000_v47 = vshrl.u32 %v7824_v18, 16  ;;  %v7855_v13 = vld [vmem:[#allocation2 + $0xe8] sm:$0xf]  ;;  %v7860_v16 = vld [vmem:[#allocation2 + $0xc4] sm:$0x1] }
 0x1e9   :  { %v6023_v35 = vcombine.low %v1900_v19, %v1914_v20  ;;  %v1936_v26 = vor.u32 %v1935_v28, %v1932_v27  ;;  %v1941_v40 = vrot.slane %v1939_v11, 5  ;;  %v2003_v41 = vshll.u32 %v7824_v18, 16  ;;  %v7863_v56 = vld [vmem:[#allocation2 + $0xcc] sm:$0x1]  ;;  %v1582_v11 = vld [vmem:[#allocation2 + $0xf0] sm:$0xf] }
 0x1ea   :  { %v1923_v54 = vrot.slane %v1922_v53, 4  ;;  %v2014_v36 = vshrl.u32 %v7835_v38, 16  ;;  %v6051_v22 = vcombine.low %v7824_v18, %v7835_v38  ;;  %v1946_v46 = vrot.slane %v1944_v33, 4 }
 0x1eb   :  { %6617 = vmatmul.mubr.bf16.gmra.mxu1 %v6023_v35  ;;  %v1937_v17 = vrot.slane %v1936_v26, 4  ;;  %v1949_v50 = vrot.slane %v1947_v34, 5  ;;  %v1953_v1 = vshll.u32 %v7840_v44, 16  ;;  %v1960_v52 = vrot.slane %v1958_v39, 4 }
 0x1ec   :  { %v1928_v57 = vsel %vm7508_vm0, %v1923_v54, %v1927_v5  ;;  %v2017_v63 = vshll.u32 %v7835_v38, 16  ;;  %6673 = vmatmul.mubr.bf16.gmra.mxu0 %v6051_v22  ;;  %v1963_v7 = vrot.slane %v1961_v37, 5  ;;  %v1967_v24 = vshll.u32 %v7843_v61, 16  ;;  %v1583_v22 = vld [vmem:[#allocation2 + $0xf8] sm:$0xf] }
 0x1ed   :  { %v1942_v33 = vsel %vm7508_vm0, %v1937_v17, %v1941_v40  ;;  %v1950_v9 = vor.u32 %v1949_v50, %v1946_v46  ;;  %v1955_v42 = vrot.slane %v1953_v1, 5  ;;  %v2028_v34 = vshrl.u32 %v7848_v48, 16 }
 0x1ee   :  { %v6024_v39 = vcombine.low %v1928_v57, %v1942_v33  ;;  %v1964_v18 = vor.u32 %v1963_v7, %v1960_v52  ;;  %v1969_v31 = vrot.slane %v1967_v24, 5  ;;  %v2031_v55 = vshll.u32 %v7848_v48, 16  ;;  %v7877_v57 = vld [vmem:[#allocation2 + $0xdc] sm:$0x1] }
 0x1ef   :  { %v1951_v37 = vrot.slane %v1950_v9, 4  ;;  %v2042_v27 = vshrl.u32 %v7855_v13, 16  ;;  %v6052_v19 = vcombine.low %v7848_v48, %v7855_v13  ;;  %v1974_v28 = vrot.slane %v1972_v14, 4 }
 0x1f0   :  { %6620 = vmatprep.mubr.bf16.mxu1 %v6024_v39  ;;  %v1965_v38 = vrot.slane %v1964_v18, 4  ;;  %v1977_v20 = vrot.slane %v1975_v15, 5  ;;  %v1981_v53 = vshll.u32 %v7860_v16, 16  ;;  %v1988_v5 = vrot.slane %v1986_v49, 4  ;;  %v7875_v15 = vld [vmem:[#allocation2 + $0xd4] sm:$0x1] }
 0x1f1   :  { %v1956_v35 = vsel %vm7508_vm0, %v1951_v37, %v1955_v42  ;;  %v2045_v26 = vshll.u32 %v7855_v13, 16  ;;  %6676 = vmatprep.mubr.bf16.mxu0 %v6052_v19  ;;  %v1991_v40 = vrot.slane %v1989_v25, 5  ;;  %v1995_v54 = vshll.u32 %v7863_v56, 16  ;;  %v7880_v18 = vld [vmem:[#allocation2 + $0xe4] sm:$0x1] }
 0x1f2   :  { %v1970_v14 = vsel %vm7508_vm0, %v1965_v38, %v1969_v31  ;;  %v1978_v46 = vor.u32 %v1977_v20, %v1974_v28  ;;  %v1983_v48 = vrot.slane %v1981_v53, 5  ;;  %v2056_v17 = vshrl.u32 %v1582_v11, 16  ;;  %v7887_v20 = vld [vmem:[#allocation2 + $0xec] sm:$0x1] }
 0x1f3   :  { %v6025_v50 = vcombine.low %v1956_v35, %v1970_v14  ;;  %v1992_v49 = vor.u32 %v1991_v40, %v1988_v5  ;;  %v1997_v1 = vrot.slane %v1995_v54, 5  ;;  %v2059_v52 = vshll.u32 %v1582_v11, 16 }
 0x1f4   :  { %v1979_v7 = vrot.slane %v1978_v46, 4  ;;  %v2070_v24 = vshrl.u32 %v1583_v22, 16  ;;  %v6053_v25 = vcombine.low %v1582_v11, %v1583_v22  ;;  %v2002_v13 = vrot.slane %v2000_v47, 4 }
 0x1f5   :  { %6621 = vmatmul.mubr.bf16.gmra.mxu1 %v6025_v50  ;;  %v1993_v33 = vrot.slane %v1992_v49, 4  ;;  %v2005_v9 = vrot.slane %v2003_v41, 5  ;;  %v2009_v42 = vshll.u32 %v7875_v15, 16  ;;  %v2016_v39 = vrot.slane %v2014_v36, 4 }
 0x1f6   :  { %v2073_v31 = vshll.u32 %v1583_v22, 16  ;;  %6677 = vmatmul.mubr.bf16.gmra.mxu0 %v6053_v25  ;;  %v2019_v37 = vrot.slane %v2017_v63, 5  ;;  %v2023_v19 = vshll.u32 %v7877_v57, 16  ;;  %v2030_v28 = vrot.slane %v2028_v34, 4 }
 0x1f7   :  { %v1984_v38 = vsel %vm7508_vm0, %v1979_v7, %v1983_v48  ;;  %v1998_v47 = vsel %vm7508_vm0, %v1993_v33, %v1997_v1  ;;  %v2006_v11 = vor.u32 %v2005_v9, %v2002_v13  ;;  %v2033_v41 = vrot.slane %v2031_v55, 5  ;;  %v7891_v1 = vld [vmem:[#allocation2 + $0xf4] sm:$0x1]  ;;  %v7893_v55 = vld [vmem:[#allocation2 + $0xfc] sm:$0x1] }
 0x1f8   :  { %v6026_v53 = vcombine.low %v1984_v38, %v1998_v47  ;;  %v2011_v36 = vrot.slane %v2009_v42, 5  ;;  %v2020_v5 = vor.u32 %v2019_v37, %v2016_v39  ;;  %v2037_v35 = vshll.u32 %v7880_v18, 16  ;;  %v2678_v33 = vld [vmem:[#allocation2 + $0x8] sm:$0xe]  ;;  %v2677_v38 = vld [vmem:[#allocation2] sm:$0xe] }
 0x1f9   :  { %v2007_v40 = vrot.slane %v2006_v11, 4  ;;  %v2034_v63 = vor.u32 %v2033_v41, %v2030_v28  ;;  %v2044_v54 = vrot.slane %v2042_v27, 4  ;;  %v2047_v22 = vrot.slane %v2045_v26, 5 }
 0x1fa   :  { %6624 = vmatprep.mubr.bf16.mxu1 %v6026_v53  ;;  %v2021_v34 = vrot.slane %v2020_v5, 4  ;;  %v2025_v14 = vrot.slane %v2023_v19, 5  ;;  %v2051_v46 = vshll.u32 %v7887_v20, 16  ;;  %v2058_v48 = vrot.slane %v2056_v17, 4 }
 0x1fb   :  { %v2035_v50 = vrot.slane %v2034_v63, 4  ;;  %v2048_v49 = vor.u32 %v2047_v22, %v2044_v54  ;;  %v2061_v7 = vrot.slane %v2059_v52, 5  ;;  %v2012_v25 = vsel %vm7508_vm0, %v2007_v40, %v2011_v36  ;;  %v6985_v36 = vld [vmem:[#allocation2 + $0xc] sm:$0x1] }
 0x1fc   :  { %v2026_v27 = vsel %vm7508_vm0, %v2021_v34, %v2025_v14  ;;  %v2039_v26 = vrot.slane %v2037_v35, 5  ;;  %v2072_v13 = vrot.slane %v2070_v24, 4  ;;  %v2053_v39 = vrot.slane %v2051_v46, 5  ;;  %v2680_v46 = vld [vmem:[#allocation2 + $0x18] sm:$0xe] }
 0x1fd   :  { %v6027_v9 = vcombine.low %v2012_v25, %v2026_v27  ;;  %v2049_v42 = vrot.slane %v2048_v49, 4  ;;  %v2062_v17 = vor.u32 %v2061_v7, %v2058_v48  ;;  %v2065_v37 = vshll.u32 %v7891_v1, 16  ;;  %v2682_v49 = vld [vmem:[#allocation2 + $0x28] sm:$0xe]  ;;  %v2679_v27 = vld [vmem:[#allocation2 + $0x10] sm:$0xe] }
 0x1fe   :  { %v2075_v19 = vrot.slane %v2073_v31, 5  ;;  %v2079_v28 = vshll.u32 %v7893_v55, 16  ;;  %v2040_v52 = vsel %vm7508_vm0, %v2035_v50, %v2039_v26  ;;  %v6063_v24 = vrot.slane %v2678_v33, 9  ;;  %v6986_v31 = vld [vmem:[#allocation2 + $0x4] sm:$0x1] }
 0x1ff   :  { %6625 = vmatmul.mubr.bf16.gmra.mxu1 %v6027_v9  ;;  %v2054_v47 = vsel %vm7508_vm0, %v2049_v42, %v2053_v39  ;;  %v2063_v41 = vrot.slane %v2062_v17, 4  ;;  %v2782_v5 = vrot.slane %v6985_v36, 5  ;;  %v6062_v35 = vrot.slane %v2677_v38, 9  ;;  %v6987_v33 = vld [vmem:[#allocation2 + $0x1c] sm:$0x1] }
 0x200   :  { %v6028_v11 = vcombine.low %v2040_v52, %v2054_v47  ;;  %v2076_v53 = vor.u32 %v2075_v19, %v2072_v13  ;;  %v2778_v40 = vrot.slane %v6986_v31, 5  ;;  %v2067_v63 = vrot.slane %v2065_v37, 5  ;;  %v2681_v42 = vld [vmem:[#allocation2 + $0x20] sm:$0xe]  ;;  %v6988_v19 = vld [vmem:[#allocation2 + $0x14] sm:$0x1] }
 0x201   :  { %v2081_v22 = vrot.slane %v2079_v28, 5  ;;  %v9021_v34 = vmov 0  ;;  %v2783_v14 = vsel %vm7906_vm6, %v6063_v24, %v2782_v5  ;;  %v6065_v13 = vrot.slane %v2680_v46, 9  ;;  %v6989_v52 = vld [vmem:[#allocation2 + $0x24] sm:$0x1] }
 0x202   :  { %6628 = vmatprep.mubr.bf16.mxu1 %v6028_v11  ;;  %v2077_v54 = vrot.slane %v2076_v53, 4  ;;  %v9022_v34 = vsel %vm7906_vm6, 4294967295, %v9021_v34  ;;  %v2068_v48 = vsel %vm7508_vm0, %v2063_v41, %v2067_v63  ;;  %v2779_v25 = vsel %vm7906_vm6, %v6062_v35, %v2778_v40  ;;  %v2684_v41 = vld [vmem:[#allocation2 + $0x38] sm:$0xe]  ;;  %v2686_v36 = vld [vmem:[#allocation2 + $0x48] sm:$0xe] }
 0x203   :  { %9023 = vst [vmem:[#allocation16_spill] sm:$0xff] %v9022_v34  ;;  %v6094_v26 = vcombine.low %v2779_v25, %v2783_v14  ;;  %v2790_v9 = vrot.slane %v6987_v33, 5  ;;  %v6067_v39 = vrot.slane %v2682_v49, 9  ;;  %v2798_v17 = vrot.slane %v7555_v30, 5  ;;  %v2683_v35 = vld [vmem:[#allocation2 + $0x30] sm:$0xe] }
 0x204   :  { %v2082_v50 = vsel %vm7508_vm0, %v2077_v54, %v2081_v22  ;;  %v6064_v37 = vrot.slane %v2679_v27, 9  ;;  %v2786_v28 = vrot.slane %v6988_v19, 5  ;;  %v6066_v38 = vrot.slane %v2681_v42, 9  ;;  %v2685_v54 = vld [vmem:[#allocation2 + $0x40] sm:$0xe] }
 0x205   :  { %v6029_v7 = vcombine.low %v2068_v48, %v2082_v50  ;;  %v2794_v47 = vrot.slane %v6989_v52, 5  ;;  %v2791_v24 = vsel %vm7906_vm6, %v6065_v13, %v2790_v9  ;;  %v2799_v11 = vsel %vm7906_vm6, %v6067_v39, %v2798_v17  ;;  %v2688_v27 = vld [vmem:[#allocation2 + $0x58] sm:$0xe]  ;;  %v2687_v33 = vld [vmem:[#allocation2 + $0x50] sm:$0xe] }
 0x206   :  { %v2787_v53 = vsel %vm7906_vm6, %v6064_v37, %v2786_v28  ;;  %v6069_v40 = vrot.slane %v2684_v41, 9  ;;  %v2806_v63 = vrot.slane %v7580_v4, 5  ;;  %v6071_v22 = vrot.slane %v2686_v36, 9  ;;  %v2689_v42 = vld [vmem:[#allocation2 + $0x60] sm:$0xe] }
 0x207   :  { %6629 = vmatmul.mubr.bf16.gmra.mxu1 %v6029_v7  ;;  %v6095_v5 = vcombine.low %v2787_v53, %v2791_v24  ;;  %v2795_v30 = vsel %vm7906_vm6, %v6066_v38, %v2794_v47  ;;  %v2814_v14 = vrot.slane %v7624_v3, 5  ;;  %v6068_v46 = vrot.slane %v2683_v35, 9  ;;  %v2692_v24 = vld [vmem:[#allocation2 + $0x78] sm:$0xe]  ;;  %v2691_v53 = vld [vmem:[#allocation2 + $0x70] sm:$0xe] }
 0x208   :  { %6696 = vmatprep.mubr.bf16.mxu1 %v6094_v26  ;;  %v6096_v31 = vcombine.low %v2795_v30, %v2799_v11  ;;  %v2802_v48 = vrot.slane %v7577_v8, 5  ;;  %v6070_v50 = vrot.slane %v2685_v54, 9  ;;  %v2810_v49 = vrot.slane %v7622_v59, 5  ;;  %v2690_v26 = vld [vmem:[#allocation2 + $0x68] sm:$0xe] }
 0x209   :  { %v2807_v7 = vsel %vm7906_vm6, %v6069_v40, %v2806_v63  ;;  %v2815_v25 = vsel %vm7906_vm6, %v6071_v22, %v2814_v14  ;;  %v6073_v9 = vrot.slane %v2688_v27, 9  ;;  %v2822_v59 = vrot.slane %v7658_v43, 5  ;;  %v2694_v11 = vld [vmem:[#allocation2 + $0x88] sm:$0xe] }
 0x20a   :  { %v2803_v4 = vsel %vm7906_vm6, %v6068_v46, %v2802_v48  ;;  %v2811_v3 = vsel %vm7906_vm6, %v6070_v50, %v2810_v49  ;;  %v6075_v39 = vrot.slane %v2690_v26, 9  ;;  %v2830_v17 = vrot.slane %v7704_v2, 5  ;;  %v2696_v46 = vld [vmem:[#allocation2 + $0x98] sm:$0xe]  ;;  %v2698_v48 = vld [vmem:[#allocation2 + $0xa8] sm:$0xe] }
 0x20b   :  { %v6097_v13 = vcombine.low %v2803_v4, %v2807_v7  ;;  %v6098_v8 = vcombine.low %v2811_v3, %v2815_v25  ;;  %v6072_v37 = vrot.slane %v2687_v33, 9  ;;  %v2818_v19 = vrot.slane %v7653_v32, 5  ;;  %v2695_v49 = vld [vmem:[#allocation2 + $0x90] sm:$0xe]  ;;  %v2697_v25 = vld [vmem:[#allocation2 + $0xa0] sm:$0xe] }
 0x20c   :  { %v6074_v28 = vrot.slane %v2689_v42, 9  ;;  %v2826_v38 = vrot.slane %v7698_v23, 5  ;;  %v2823_v52 = vsel %vm7906_vm6, %v6073_v9, %v2822_v59  ;;  %v2831_v47 = vsel %vm7906_vm6, %v6075_v39, %v2830_v17  ;;  %v2700_v59 = vld [vmem:[#allocation2 + $0xb8] sm:$0xe]  ;;  %v2702_v42 = vld [vmem:[#allocation2 + $0xc8] sm:$0xe] }
 0x20d   :  { %v2819_v43 = vsel %vm7906_vm6, %v6072_v37, %v2818_v19  ;;  %v6077_v36 = vrot.slane %v2692_v24, 9  ;;  %v2838_v23 = vrot.slane %v7730_v12, 5  ;;  %v6079_v30 = vrot.slane %v2694_v11, 9  ;;  %v2699_v17 = vld [vmem:[#allocation2 + $0xb0] sm:$0xe] }
 0x20e   :  { %v6099_v41 = vcombine.low %v2819_v43, %v2823_v52  ;;  %v2827_v2 = vsel %vm7906_vm6, %v6074_v28, %v2826_v38  ;;  %v2846_v35 = vrot.slane %v7761_v45, 5  ;;  %v2834_v40 = vrot.slane %v7727_v6, 5  ;;  %v2701_v19 = vld [vmem:[#allocation2 + $0xc0] sm:$0xe] }
 0x20f   :  { %6697 = vmatmul.mubr.bf16.vlgmr.msra.gmra.mxu1 %v6095_v5  ;;  %v6100_v32 = vcombine.low %v2827_v2, %v2831_v47  ;;  %v2693_v5 = vld [vmem:[#allocation2 + $0x80] sm:$0xe]  ;;  %v2842_v54 = vrot.slane %v7758_v21, 5  ;;  %v2839_v22 = vsel %vm7906_vm6, %v6077_v36, %v2838_v23  ;;  %v6081_v7 = vrot.slane %v2696_v46, 9  ;;  %v2704_v2 = vld [vmem:[#allocation2 + $0xd8] sm:$0xe] }
 0x210   :  { %6700 = vmatprep.mubr.bf16.mxu1 %v6096_v31  ;;  %v6076_v31 = vrot.slane %v2691_v53, 9  ;;  %v6078_v63 = vrot.slane %v2693_v5, 9  ;;  %v2847_v14 = vsel %vm7906_vm6, %v6079_v30, %v2846_v35  ;;  %v2854_v21 = vrot.slane %v7790_v29, 5  ;;  %v2706_v53 = vld [vmem:[#allocation2 + $0xe8] sm:$0xe]  ;;  %v6945_v30 = vld [vmem:[#allocation8 + $0x78] sm:$0xff]  }
 0x211   :  { %v6083_v27 = vrot.slane %v2698_v48, 9  ;;  %v2862_v4 = vrot.slane %v7817_v62, 5  ;;  %v6080_v26 = vrot.slane %v2695_v49, 9  ;;  %v6082_v3 = vrot.slane %v2697_v25, 9  ;;  %v2703_v36 = vld [vmem:[#allocation2 + $0xd0] sm:$0xe]  ;;  %6728 = vmatprep.subr.bf16.mxu0 %v6945_v30 }
 0x212   :  { %v2835_v12 = vsel %vm7906_vm6, %v6076_v31, %v2834_v40  ;;  %v2843_v45 = vsel %vm7906_vm6, %v6078_v63, %v2842_v54  ;;  %v2858_v33 = vrot.slane %v7813_v10, 5  ;;  %v6085_v37 = vrot.slane %v2700_v59, 9  ;;  %v2705_v5 = vld [vmem:[#allocation2 + $0xe0] sm:$0xe]  ;;  %6729 = vmatpush3.bf16.msra.mxu0 %v6945_v30  ;;  %v2708_v46 = vld [vmem:[#allocation2 + $0xf8] sm:$0xe] }
 0x213   :  { %v6101_v50 = vcombine.low %v2835_v12, %v2839_v22  ;;  %v6102_v6 = vcombine.low %v2843_v45, %v2847_v14  ;;  %v2863_v9 = vsel %vm7906_vm6, %v6083_v27, %v2862_v4  ;;  %v2870_v10 = vrot.slane %v7843_v61, 5  ;;  %v6947_v4 = vld [vmem:[#allocation8 + $0x68] sm:$0xff]  }
 0x214   :  { %v2859_v62 = vsel %vm7906_vm6, %v6082_v3, %v2858_v33  ;;  %v6087_v28 = vrot.slane %v2702_v42, 9  ;;  %v2878_v38 = vrot.slane %v7863_v56, 5  ;;  %v6084_v52 = vrot.slane %v2699_v17, 9  ;;  %v6950_v33 = vld [vmem:[#allocation8 + $0x30] sm:$0xff]   ;;  %v6952_v59 = vld [vmem:[#allocation8 + $0x28] sm:$0xff]  }
 0x215   :  { %v2866_v47 = vrot.slane %v7840_v44, 5  ;;  %v6086_v24 = vrot.slane %v2701_v19, 9  ;;  %v2874_v43 = vrot.slane %v7860_v16, 5  ;;  %v2871_v11 = vsel %vm7906_vm6, %v6085_v37, %v2870_v10  ;;  %v6954_v37 = vld [vmem:[#allocation8 + $0x50] sm:$0xff]   ;;  %v6955_v10 = vld [vmem:[#allocation8 + $0x18] sm:$0xff]  }
 0x216   :  { %v6089_v23 = vrot.slane %v2704_v2, 9  ;;  %v2886_v16 = vrot.slane %v7877_v57, 5  ;;  %v6091_v35 = vrot.slane %v2706_v53, 9  ;;  %v2894_v31 = vrot.slane %v7887_v20, 5  ;;  %v6959_v53 = vld [vmem:[#allocation8] sm:$0xff]  }
 0x217   :  { %6701 = vmatmul.mubr.bf16.gmra.mxu1 %v6097_v13  ;;  %v2850_v13 = vrot.slane %v7783_v58, 5  ;;  %v6104_v58 = vcombine.low %v2859_v62, %v2863_v9  ;;  %v2867_v61 = vsel %vm7906_vm6, %v6084_v52, %v2866_v47  ;;  %v2875_v56 = vsel %vm7906_vm6, %v6086_v24, %v2874_v43  ;;  %v6951_v9 = vld [vmem:[#allocation8 + $0x58] sm:$0xff]   ;;  %v6953_v62 = vld [vmem:[#allocation8 + $0x20] sm:$0xff]  }
 0x218   :  { %6704 = vmatprep.mubr.bf16.mxu1 %v6098_v8  ;;  %v2855_v8 = vsel %vm7906_vm6, %v6081_v7, %v2854_v21  ;;  %v6088_v40 = vrot.slane %v2703_v36, 9  ;;  %v2882_v63 = vrot.slane %v7875_v15, 5  ;;  %v6090_v54 = vrot.slane %v2705_v5, 9  ;;  %v2707_v15 = vld [vmem:[#allocation2 + $0xf0] sm:$0xe]  ;;  %v6961_v36 = vld [vmem:[#allocation8 + $0x40] sm:$0xff]  }
 0x219   :  { %v2851_v29 = vsel %vm7906_vm6, %v6080_v26, %v2850_v13  ;;  %v2890_v22 = vrot.slane %v7880_v18, 5  ;;  %v2887_v14 = vsel %vm7906_vm6, %v6089_v23, %v2886_v16  ;;  %v2895_v57 = vsel %vm7906_vm6, %v6091_v35, %v2894_v31  ;;  %v6946_v7 = vld [vmem:[#allocation8 + $0x70] sm:$0xff]   ;;  %v6948_v26 = vld [vmem:[#allocation8 + $0x60] sm:$0xff]   ;;  %v6949_v13 = vld [vmem:[#allocation8 + $0x38] sm:$0xff]  }
 0x21a   :  { %v6103_v39 = vcombine.low %v2851_v29, %v2855_v8  ;;  %v2883_v12 = vsel %vm7906_vm6, %v6088_v40, %v2882_v63  ;;  %v6093_v45 = vrot.slane %v2708_v46, 9  ;;  %v2902_v18 = vrot.slane %v7893_v55, 5  ;;  %6730 = vmatprep.subr.bf16.mxu0 %v6946_v7  ;;  %6776 = vmatprep.subr.bf16.mxu1 %v6949_v13 }
 0x21b   :  { %v6107_v20 = vcombine.low %v2883_v12, %v2887_v14  ;;  %v2891_v48 = vsel %vm7906_vm6, %v6090_v54, %v2890_v22  ;;  %v6092_v49 = vrot.slane %v2707_v15, 9  ;;  %6731 = vmatpush3.bf16.msra.mxu0 %v6946_v7  ;;  %6777 = vmatpush3.bf16.msra.mxu1 %v6949_v13  ;;  %v8041_v22 = vld [vmem:[#allocation8 + $0xb8] sm:$0xff]  }
 0x21c   :  { %v2903_v21 = vsel %vm7906_vm6, %v6093_v45, %v2902_v18  ;;  %6732 = vmatprep.subr.bf16.mxu0 %v6947_v4  ;;  %6778 = vmatprep.subr.bf16.mxu1 %v6950_v33  ;;  %9029 = vst [vmem:[#allocation22_spill] sm:$0xff] %v8041_v22 }
 0x21f   :  { %6705 = vmatmul.mubr.bf16.gmra.mxu1 %v6099_v41  ;;  %v2879_v41 = vsel %vm7906_vm6, %v6087_v28, %v2878_v38  ;;  %6733 = vmatpush3.bf16.msra.mxu0 %v6947_v4  ;;  %v6956_v38 = vld [vmem:[#allocation8 + $0x10] sm:$0xff]  }
 0x220   :  { %6708 = vmatprep.mubr.bf16.mxu1 %v6100_v32  ;;  %v6105_v32 = vcombine.low %v2867_v61, %v2871_v11  ;;  %v6106_v44 = vcombine.low %v2875_v56, %v2879_v41  ;;  %6734 = vmatprep.subr.bf16.mxu0 %v6948_v26  ;;  %v6957_v11 = vld [vmem:[#allocation8 + $0x48] sm:$0xff]  }
 0x221   :  { %6779 = vmatpush3.bf16.msra.mxu1 %v6950_v33  ;;  %v6958_v41 = vld [vmem:[#allocation8 + $0x8] sm:$0xff]  }
 0x222   :  { %6780 = vmatprep.subr.bf16.mxu1 %v6952_v59 }
 0x223   :  { %6735 = vmatpush3.bf16.msra.mxu0 %v6948_v26 }
 0x224   :  { %6736 = vmatprep.subr.bf16.mxu0 %v6951_v9 }
 0x225   :  { %6781 = vmatpush3.bf16.msra.mxu1 %v6952_v59 }
 0x226   :  { %6782 = vmatprep.subr.bf16.mxu1 %v6953_v62 }
 0x227   :  { %6709 = vmatmul.mubr.bf16.gmra.mxu1 %v6101_v50  ;;  %v6108_v50 = vcombine.low %v2891_v48, %v2895_v57  ;;  %6737 = vmatpush3.bf16.msra.mxu0 %v6951_v9 }
 0x228   :  { %6712 = vmatprep.mubr.bf16.mxu1 %v6102_v6  ;;  %v2898_v6 = vrot.slane %v7891_v1, 5  ;;  %6738 = vmatprep.subr.bf16.mxu0 %v6954_v37 }
 0x229   :  { %6783 = vmatpush3.bf16.msra.mxu1 %v6953_v62 }
 0x22a   :  { %v2899_v25 = vsel %vm7906_vm6, %v6092_v49, %v2898_v6  ;;  %6784 = vmatprep.subr.bf16.mxu1 %v6955_v10 }
 0x22b   :  { %v6109_v27 = vcombine.low %v2899_v25, %v2903_v21  ;;  %6739 = vmatpush3.bf16.msra.mxu0 %v6954_v37 }
 0x22c   :  { %6740 = vmatprep.subr.bf16.mxu0 %v6957_v11 }
 0x22d   :  { %6785 = vmatpush3.bf16.msra.mxu1 %v6955_v10 }
 0x22e   :  { %6786 = vmatprep.subr.bf16.mxu1 %v6956_v38 }
 0x22f   :  { %6713 = vmatmul.mubr.bf16.gmra.mxu1 %v6103_v39  ;;  %6741 = vmatpush3.bf16.msra.mxu0 %v6957_v11 }
 0x230   :  { %6716 = vmatprep.mubr.bf16.mxu1 %v6104_v58  ;;  %6742 = vmatprep.subr.bf16.mxu0 %v6961_v36 }
 0x231   :  { %6787 = vmatpush3.bf16.msra.mxu1 %v6956_v38 }
 0x232   :  { %6788 = vmatprep.subr.bf16.mxu1 %v6958_v41 }
 0x233   :  { %6743 = vmatpush3.bf16.msra.mxu0 %v6961_v36 }
 0x234   :  { %6824 = vmatprep.subr.bf16.mxu0 %v8041_v22 }
 0x235   :  { %6789 = vmatpush3.bf16.msra.mxu1 %v6958_v41 }
 0x236   :  { %6790 = vmatprep.subr.bf16.mxu1 %v6959_v53 }
 0x237   :  { %6717 = vmatmul.mubr.bf16.gmra.mxu1 %v6105_v32 }
 0x238   :  { %6720 = vmatprep.mubr.bf16.mxu1 %v6106_v44 }
 0x239   :  { %6791 = vmatpush3.bf16.msra.mxu1 %v6959_v53 }
 0x23f   :  { %6721 = vmatmul.mubr.bf16.gmra.mxu1 %v6107_v20 }
 0x240   :  { %6724 = vmatprep.mubr.bf16.mxu1 %v6108_v50 }
 0x247   :  { %6725 = vmatmul.mubr.bf16.gmra.mxu1 %v6109_v27 }
 0x24a   :  { %v8005_v55 = vpop.f32.mrf.mxu0 }
 0x24c   :  { %v8007_v3 = vpop.f32.mrf.mxu0 }
 0x24e   :  { %v8009_v1 = vpop.f32.mrf.mxu0 }
 0x250   :  { %v8011_v8 = vpop.f32.mrf.mxu0 }
 0x25f   :  { %v8013_v29 = vpop.f32.mrf.mxu0 }
 0x261   :  { %v8017_v39 = vpop.f32.mrf.mxu0 }
 0x263   :  { %v8021_v58 = vpop.f32.mrf.mxu0 }
 0x265   :  { %v8025_v28 = vpop.f32.mrf.mxu0 }
 0x266   :  { %9024 = vst [vmem:[#allocation17_spill] sm:$0xff] %v8025_v28 }
 0x268   :  { %v8015_v42 = vpop.f32.mrf.mxu1 }
 0x269   :  { %v2559_v0 = vadd.f32 %v8005_v55, %v8015_v42  ;;  %v8062_v55 = vld [vmem:[%s8997_s3] ss:$0 sm:$0xff] }
 0x26a   :  { %v8019_v17 = vpop.f32.mrf.mxu1 }
 0x26b   :  { %v2551_v51 = vadd.f32 %v8007_v3, %v8019_v17 }
 0x26c   :  { %v8023_v19 = vpop.f32.mrf.mxu1  ;;  %v8029_v47 = vpop.f32.mrf.mxu0 }
 0x26d   :  { %9025 = vst [vmem:[#allocation18_spill] sm:$0xff] %v8029_v47  ;;  %v2562_v60 = vadd.f32 %v8009_v1, %v8023_v19  ;;  %v9031_v3 = vld [vmem:[#allocation17_spill] sm:$0xff] }
 0x26e   :  { %v8027_v52 = vpop.f32.mrf.mxu1  ;;  %v8033_v43 = vpop.f32.mrf.mxu0 }
 0x26f   :  { %9026 = vst [vmem:[#allocation19_spill] sm:$0xff] %v8033_v43 }
 0x270   :  { %v8037_v61 = vpop.f32.mrf.mxu0 }
 0x271   :  { %9027 = vst [vmem:[#allocation20_spill] sm:$0xff] %v8037_v61 }
 0x272   :  { %v8039_v56 = vpop.f32.mrf.mxu0 }
 0x273   :  { %9028 = vst [vmem:[#allocation21_spill] sm:$0xff] %v8039_v56  ;;  %v2554_v56 = vadd.f32 %v8011_v8, %v8027_v52 }
 0x274   :  { %v9032_v42 = vld [vmem:[#allocation18_spill] sm:$0xff] }
 0x276   :  { %v9033_v17 = vld [vmem:[#allocation19_spill] sm:$0xff] }
 0x278   :  { %v9034_v52 = vld [vmem:[#allocation20_spill] sm:$0xff] }
 0x27a   :  { %v8031_v24 = vpop.f32.mrf.mxu1 }
 0x27b   :  { %v2575_v61 = vadd.f32 %v8013_v29, %v8031_v24  ;;  %v9035_v24 = vld [vmem:[#allocation21_spill] sm:$0xff] }
 0x27c   :  { %v8035_v2 = vpop.f32.mrf.mxu1 }
 0x27d   :  { %v2567_v43 = vadd.f32 %v8017_v39, %v8035_v2 }
 0x27e   :  { %v6607_v32 = vpop.f32.mrf.mxu1  ;;  %v6662_v23 = vpop.f32.mrf.mxu0 }
 0x27f   :  { %v8057_v47 = vadd.f32 %v8021_v58, %v6607_v32 }
 0x280   :  { %v2264_v44 = vpop.f32.mrf.mxu1  ;;  %v2598_v5 = vpop.f32.mrf.mxu0 }
 0x281   :  { %9030 = vst [vmem:[#allocation23_spill] sm:$0xff] %v8057_v47  ;;  %v8065_v1 = vadd.f32 %v9031_v3, %v2264_v44 }
 0x282   :  { %v6663_v35 = vpop.f32.mrf.mxu0 }
 0x284   :  { %v2601_v40 = vpop.f32.mrf.mxu0 }
 0x28c   :  { %v6610_v16 = vpop.f32.mrf.mxu1 }
 0x28d   :  { %v8068_v8 = vadd.f32 %v9032_v42, %v6610_v16 }
 0x28e   :  { %v2277_v30 = vpop.f32.mrf.mxu1 }
 0x28f   :  { %v8071_v29 = vadd.f32 %v9033_v17, %v2277_v30 }
 0x290   :  { %v6611_v31 = vpop.f32.mrf.mxu1 }
 0x291   :  { %v8074_v58 = vadd.f32 %v9034_v52, %v6611_v31 }
 0x292   :  { %v2280_v63 = vpop.f32.mrf.mxu1  ;;  %v6666_v54 = vpop.f32.mrf.mxu0 }
 0x293   :  { %v8077_v2 = vadd.f32 %v9035_v24, %v2280_v63  ;;  %v3726_v24 = vld [vmem:[#allocation2 + $0x14] sm:$0x1] }
 0x294   :  { %v2614_v57 = vpop.f32.mrf.mxu0 }
 0x296   :  { %v6667_v20 = vpop.f32.mrf.mxu0 }
 0x298   :  { %v2617_v15 = vpop.f32.mrf.mxu0 }
 0x29f   :  { %v6614_v14 = vpop.f32.mrf.mxu1 }
 0x2a0   :  { %v8079_v32 = vadd.f32 %v6662_v23, %v6614_v14 }
 0x2a1   :  { %v2293_v46 = vpop.f32.mrf.mxu1 }
 0x2a2   :  { %v6670_v45 = vpop.f32.mrf.mxu0  ;;  %v8081_v47 = vadd.f32 %v2598_v5, %v2293_v46 }
 0x2a3   :  { %v6615_v12 = vpop.f32.mrf.mxu1 }
 0x2a4   :  { %v2630_v6 = vpop.f32.mrf.mxu0  ;;  %v8083_v3 = vadd.f32 %v6663_v35, %v6615_v12 }
 0x2a5   :  { %v2296_v48 = vpop.f32.mrf.mxu1 }
 0x2a6   :  { %v6671_v21 = vpop.f32.mrf.mxu0  ;;  %v8085_v16 = vadd.f32 %v2601_v40, %v2296_v48 }
 0x2a8   :  { %v2633_v4 = vpop.f32.mrf.mxu0 }
 0x2ab   :  { %v6618_v50 = vpop.f32.mrf.mxu1 }
 0x2ac   :  { %v6674_v33 = vpop.f32.mrf.mxu0  ;;  %v8088_v17 = vadd.f32 %v6666_v54, %v6618_v50 }
 0x2ad   :  { %v2309_v18 = vpop.f32.mrf.mxu1 }
 0x2ae   :  { %v2646_v59 = vpop.f32.mrf.mxu0 }
 0x2af   :  { %v6619_v49 = vpop.f32.mrf.mxu1 }
 0x2b0   :  { %v6675_v10 = vpop.f32.mrf.mxu0 }
 0x2b1   :  { %v2312_v7 = vpop.f32.mrf.mxu1 }
 0x2b2   :  { %v2649_v41 = vpop.f32.mrf.mxu0  ;;  %v8094_v31 = vadd.f32 %v2617_v15, %v2312_v7 }
 0x2b5   :  { %v6622_v25 = vpop.f32.mrf.mxu1 }
 0x2b6   :  { %v6678_v34 = vpop.f32.mrf.mxu0  ;;  %v8096_v63 = vadd.f32 %v6670_v45, %v6622_v25 }
 0x2b7   :  { %v2325_v27 = vpop.f32.mrf.mxu1 }
 0x2b8   :  { %v2662_v19 = vpop.f32.mrf.mxu0  ;;  %v8099_v46 = vadd.f32 %v2630_v6, %v2325_v27 }
 0x2b9   :  { %v6623_v26 = vpop.f32.mrf.mxu1 }
 0x2ba   :  { %v6679_v5 = vpop.f32.mrf.mxu0  ;;  %v8101_v12 = vadd.f32 %v6671_v21, %v6623_v26 }
 0x2bb   :  { %v2328_v13 = vpop.f32.mrf.mxu1 }
 0x2bc   :  { %v2665_v7 = vpop.f32.mrf.mxu0 }
 0x2bf   :  { %v6626_v9 = vpop.f32.mrf.mxu1 }
 0x2c0   :  { %v8105_v54 = vadd.f32 %v6674_v33, %v6626_v9 }
 0x2c1   :  { %v2341_v62 = vpop.f32.mrf.mxu1 }
 0x2c2   :  { %v8108_v45 = vadd.f32 %v2646_v59, %v2341_v62 }
 0x2c3   :  { %v6627_v37 = vpop.f32.mrf.mxu1 }
 0x2c5   :  { %v2344_v38 = vpop.f32.mrf.mxu1 }
 0x2c7   :  { %v6630_v11 = vpop.f32.mrf.mxu1 }
 0x2c9   :  { %v2357_v53 = vpop.f32.mrf.mxu1 }
 0x2ca   :  { %v8116_v21 = vadd.f32 %v2662_v19, %v2357_v53 }
 0x2cb   :  { %v6631_v36 = vpop.f32.mrf.mxu1 }
 0x2cc   :  { %v8118_v26 = vadd.f32 %v6679_v5, %v6631_v36 }
 0x2cd   :  { %v2360_v22 = vpop.f32.mrf.mxu1 }
 0x2cf   :  { %v6698_v28 = vpop.f32.mrf.mxu1 }
 0x2d0   :  { %v3195_v39 = vadd.f32 %v6698_v28, %v2559_v0  ;;  %v8090_v0 = vadd.f32 %v2614_v57, %v2309_v18  ;;  %v8092_v28 = vadd.f32 %v6667_v20, %v6619_v49  ;;  %v8110_v18 = vadd.f32 %v6675_v10, %v6627_v37 }
 0x2d1   :  { %v3066_v44 = vpop.f32.mrf.mxu1  ;;  %v8112_v49 = vadd.f32 %v2649_v41, %v2344_v38 }
 0x2d2   :  { %v3234_v30 = vadd.f32 %v8062_v55, %v3195_v39  ;;  %v3193_v42 = vadd.f32 %v3066_v44, %v2551_v51  ;;  %v8103_v51 = vadd.f32 %v2633_v4, %v2328_v13  ;;  %v8120_v13 = vadd.f32 %v2665_v7, %v2360_v22  ;;  %v3723_v22 = vld [vmem:[#allocation2 + $0x10] sm:$0xf] }
 0x2d3   :  { %v6699_v23 = vpop.f32.mrf.mxu1 }
 0x2d4   :  { %v3266_v14 = vmax.f32 %v3234_v30, 0.0  ;;  %v3232_v35 = vadd.f32 %v8062_v55, %v3193_v42  ;;  %v3196_v40 = vadd.f32 %v6699_v23, %v2562_v60  ;;  %v8114_v60 = vadd.f32 %v6678_v34, %v6630_v11 }
 0x2d5   :  { %v3069_v57 = vpop.f32.mrf.mxu1 }
 0x2d6   :  { %v6338_v20 = vpack.c.bf16 %v3266_v14, %v3266_v14  ;;  %v3264_v48 = vmax.f32 %v3232_v35, 0.0  ;;  %v3235_v15 = vadd.f32 %v8062_v55, %v3196_v40  ;;  %v3194_v50 = vadd.f32 %v3069_v57, %v2554_v56 }
 0x2d7   :  { %v6702_v6 = vpop.f32.mrf.mxu1 }
 0x2d8   :  { %v3409_v25 = vshrl.u32 %v6338_v20, 16  ;;  %v6336_v27 = vpack.c.bf16 %v3264_v48, %v3264_v48  ;;  %v3267_v4 = vmax.f32 %v3235_v15, 0.0  ;;  %v3233_v56 = vadd.f32 %v8062_v55, %v3194_v50 }
 0x2d9   :  { %v3199_v33 = vadd.f32 %v6702_v6, %v2575_v61  ;;  %v3082_v9 = vpop.f32.mrf.mxu1  ;;  %v3412_v62 = vshll.u32 %v6338_v20, 16  ;;  %v3714_v20 = vld [vmem:[#allocation2 + $0x4] sm:$0x1] }
 0x2da   :  { %v3411_v59 = vrot.slane %v3409_v25, 7  ;;  %v3393_v37 = vshrl.u32 %v6336_v27, 16  ;;  %v6339_v34 = vpack.c.bf16 %v3267_v4, %v3267_v4  ;;  %v3396_v10 = vshll.u32 %v6336_v27, 16  ;;  %v6990_v25 = vld [vmem:[#allocation2] sm:$0xf] }
 0x2db   :  { %v3265_v38 = vmax.f32 %v3233_v56, 0.0  ;;  %v3238_v11 = vadd.f32 %v8062_v55, %v3199_v33  ;;  %v3197_v41 = vadd.f32 %v3082_v9, %v2567_v43  ;;  %v6703_v53 = vpop.f32.mrf.mxu1  ;;  %v9038_v33 = vld [vmem:[#allocation23_spill] sm:$0xff] }
 0x2dc   :  { %v3414_v19 = vor.u32 %v3412_v62, %v3411_v59  ;;  %v3415_v39 = vrot.slane %v3411_v59, 4  ;;  %v3395_v36 = vrot.slane %v3393_v37, 7  ;;  %v3417_v52 = vshrl.u32 %v6339_v34, 16 }
 0x2dd   :  { %v3420_v44 = vshll.u32 %v6339_v34, 16  ;;  %v6337_v30 = vpack.c.bf16 %v3265_v38, %v3265_v38  ;;  %v3270_v61 = vmax.f32 %v3238_v11, 0.0  ;;  %v3236_v42 = vadd.f32 %v8062_v55, %v3197_v41  ;;  %v3085_v23 = vpop.f32.mrf.mxu1  ;;  %v3729_v38 = vld [vmem:[#allocation2 + $0x18] sm:$0xf]  ;;  %v3732_v11 = vld [vmem:[#allocation2 + $0x1c] sm:$0x1] }
 0x2de   :  { %v3724_v14 = vsel %vm7389_vm15, %v3414_v19, %v3723_v22  ;;  %v3727_v40 = vsel %vm7193_vm2, %v3415_v39, %v3726_v24  ;;  %v3398_v43 = vor.u32 %v3396_v10, %v3395_v36  ;;  %v3399_v57 = vrot.slane %v3395_v36, 4 }
 0x2df   :  { %3725 = vst [vmem:[#allocation2 + $0x10] sm:$0xf] %v3724_v14  ;;  %3728 = vst [vmem:[#allocation2 + $0x14] sm:$0x1] %v3727_v40  ;;  %v3419_v48 = vrot.slane %v3417_v52, 7  ;;  %v3401_v15 = vshrl.u32 %v6337_v30, 16  ;;  %v6342_v6 = vpack.c.bf16 %v3270_v61, %v3270_v61  ;;  %v6706_v7 = vpop.f32.mrf.mxu1  ;;  %v3200_v9 = vadd.f32 %v6703_v53, %v9038_v33 }
 0x2e0   :  { %v3404_v50 = vshll.u32 %v6337_v30, 16  ;;  %v3712_v27 = vsel %vm7389_vm15, %v3398_v43, %v6990_v25  ;;  %v3715_v4 = vsel %vm7193_vm2, %v3399_v57, %v3714_v20  ;;  %v3268_v56 = vmax.f32 %v3236_v42, 0.0  ;;  %v3720_v61 = vld [vmem:[#allocation2 + $0xc] sm:$0x1] }
 0x2e1   :  { %3713 = vst [vmem:[#allocation2] sm:$0xf] %v3712_v27  ;;  %3716 = vst [vmem:[#allocation2 + $0x4] sm:$0x1] %v3715_v4  ;;  %v3422_v59 = vor.u32 %v3420_v44, %v3419_v48  ;;  %v3423_v62 = vrot.slane %v3419_v48, 4  ;;  %v3403_v37 = vrot.slane %v3401_v15, 7  ;;  %v3098_v10 = vpop.f32.mrf.mxu1  ;;  %v3239_v39 = vadd.f32 %v8062_v55, %v3200_v9 }
 0x2e2   :  { %v3441_v34 = vshrl.u32 %v6342_v6, 16  ;;  %v3444_v41 = vshll.u32 %v6342_v6, 16  ;;  %v6340_v19 = vpack.c.bf16 %v3268_v56, %v3268_v56  ;;  %v3198_v36 = vadd.f32 %v3085_v23, %v8065_v1  ;;  %v3717_v44 = vld [vmem:[#allocation2 + $0x8] sm:$0xf]  ;;  %v3747_v27 = vld [vmem:[#allocation2 + $0x30] sm:$0xf] }
 0x2e3   :  { %v3730_v52 = vsel %vm7389_vm15, %v3422_v59, %v3729_v38  ;;  %v3733_v53 = vsel %vm7193_vm2, %v3423_v62, %v3732_v11  ;;  %v3406_v22 = vor.u32 %v3404_v50, %v3403_v37  ;;  %v3407_v24 = vrot.slane %v3403_v37, 4  ;;  %v6707_v30 = vpop.f32.mrf.mxu1  ;;  %v3750_v4 = vld [vmem:[#allocation2 + $0x34] sm:$0x1]  ;;  %v3735_v38 = vld [vmem:[#allocation2 + $0x20] sm:$0xf] }
 0x2e4   :  { %3731 = vst [vmem:[#allocation2 + $0x18] sm:$0xf] %v3730_v52  ;;  %3734 = vst [vmem:[#allocation2 + $0x1c] sm:$0x1] %v3733_v53  ;;  %v3443_v42 = vrot.slane %v3441_v34, 7  ;;  %v3425_v14 = vshrl.u32 %v6340_v19, 16  ;;  %v3237_v57 = vadd.f32 %v8062_v55, %v3198_v36  ;;  %v3203_v20 = vadd.f32 %v6706_v7, %v8068_v8 }
 0x2e5   :  { %v3428_v40 = vshll.u32 %v6340_v19, 16  ;;  %v3271_v43 = vmax.f32 %v3239_v39, 0.0  ;;  %v3718_v1 = vsel %vm7389_vm15, %v3406_v22, %v3717_v44  ;;  %v3721_v23 = vsel %vm7193_vm2, %v3407_v24, %v3720_v61  ;;  %v3101_v48 = vpop.f32.mrf.mxu1  ;;  %v3738_v11 = vld [vmem:[#allocation2 + $0x24] sm:$0x1] }
 0x2e6   :  { %3719 = vst [vmem:[#allocation2 + $0x8] sm:$0xf] %v3718_v1  ;;  %3722 = vst [vmem:[#allocation2 + $0xc] sm:$0x1] %v3721_v23  ;;  %v3446_v15 = vor.u32 %v3444_v41, %v3443_v42  ;;  %v3447_v50 = vrot.slane %v3443_v42, 4  ;;  %v3427_v6 = vrot.slane %v3425_v14, 7  ;;  %v3242_v33 = vadd.f32 %v8062_v55, %v3203_v20 }
 0x2e7   :  { %v6343_v25 = vpack.c.bf16 %v3271_v43, %v3271_v43  ;;  %v3269_v56 = vmax.f32 %v3237_v57, 0.0  ;;  %v3201_v9 = vadd.f32 %v3098_v10, %v8071_v29  ;;  %v3204_v59 = vadd.f32 %v6707_v30, %v8074_v58  ;;  %v6710_v62 = vpop.f32.mrf.mxu1 }
 0x2e8   :  { %v3748_v8 = vsel %vm7389_vm15, %v3446_v15, %v3747_v27  ;;  %v3751_v7 = vsel %vm7193_vm2, %v3447_v50, %v3750_v4  ;;  %v3430_v37 = vor.u32 %v3428_v40, %v3427_v6  ;;  %v3431_v34 = vrot.slane %v3427_v6, 4  ;;  %v3753_v15 = vld [vmem:[#allocation2 + $0x38] sm:$0xf]  ;;  %v3756_v50 = vld [vmem:[#allocation2 + $0x3c] sm:$0x1] }
 0x2e9   :  { %3749 = vst [vmem:[#allocation2 + $0x30] sm:$0xf] %v3748_v8  ;;  %3752 = vst [vmem:[#allocation2 + $0x34] sm:$0x1] %v3751_v7  ;;  %v3449_v41 = vshrl.u32 %v6343_v25, 16  ;;  %v3452_v19 = vshll.u32 %v6343_v25, 16  ;;  %v6341_v39 = vpack.c.bf16 %v3269_v56, %v3269_v56  ;;  %v3114_v29 = vpop.f32.mrf.mxu1  ;;  %v3240_v52 = vadd.f32 %v8062_v55, %v3201_v9 }
 0x2ea   :  { %v3274_v36 = vmax.f32 %v3242_v33, 0.0  ;;  %v3736_v58 = vsel %vm7389_vm15, %v3430_v37, %v3735_v38  ;;  %v3739_v10 = vsel %vm7193_vm2, %v3431_v34, %v3738_v11  ;;  %v3243_v53 = vadd.f32 %v8062_v55, %v3204_v59  ;;  %v3741_v33 = vld [vmem:[#allocation2 + $0x28] sm:$0xf]  ;;  %v3744_v9 = vld [vmem:[#allocation2 + $0x2c] sm:$0x1] }
 0x2eb   :  { %3737 = vst [vmem:[#allocation2 + $0x20] sm:$0xf] %v3736_v58  ;;  %3740 = vst [vmem:[#allocation2 + $0x24] sm:$0x1] %v3739_v10  ;;  %v3451_v22 = vrot.slane %v3449_v41, 7  ;;  %v3433_v24 = vshrl.u32 %v6341_v39, 16  ;;  %v3202_v14 = vadd.f32 %v3101_v48, %v8077_v2  ;;  %v3207_v40 = vadd.f32 %v6710_v62, %v8079_v32  ;;  %v6711_v20 = vpop.f32.mrf.mxu1 }
 0x2ec   :  { %v3436_v44 = vshll.u32 %v6341_v39, 16  ;;  %v6346_v30 = vpack.c.bf16 %v3274_v36, %v3274_v36  ;;  %v3272_v61 = vmax.f32 %v3240_v52, 0.0  ;;  %v3275_v42 = vmax.f32 %v3243_v53, 0.0  ;;  %v3771_v10 = vld [vmem:[#allocation2 + $0x50] sm:$0xf] }
 0x2ed   :  { %v3454_v43 = vor.u32 %v3452_v19, %v3451_v22  ;;  %v3455_v1 = vrot.slane %v3451_v22, 4  ;;  %v3435_v23 = vrot.slane %v3433_v24, 7  ;;  %v3241_v4 = vadd.f32 %v8062_v55, %v3202_v14  ;;  %v3117_v41 = vpop.f32.mrf.mxu1  ;;  %v3774_v52 = vld [vmem:[#allocation2 + $0x54] sm:$0x1] }
 0x2ee   :  { %v3473_v57 = vshrl.u32 %v6346_v30, 16  ;;  %v3476_v6 = vshll.u32 %v6346_v30, 16  ;;  %v6344_v25 = vpack.c.bf16 %v3272_v61, %v3272_v61  ;;  %v6347_v27 = vpack.c.bf16 %v3275_v42, %v3275_v42 }
 0x2ef   :  { %v3754_v56 = vsel %vm7389_vm15, %v3454_v43, %v3753_v15  ;;  %v3757_v2 = vsel %vm7193_vm2, %v3455_v1, %v3756_v50  ;;  %v3438_v48 = vor.u32 %v3436_v44, %v3435_v23  ;;  %v3439_v32 = vrot.slane %v3435_v23, 4  ;;  %v3759_v43 = vld [vmem:[#allocation2 + $0x40] sm:$0xf]  ;;  %v3762_v1 = vld [vmem:[#allocation2 + $0x44] sm:$0x1] }
 0x2f0   :  { %3755 = vst [vmem:[#allocation2 + $0x38] sm:$0xf] %v3754_v56  ;;  %3758 = vst [vmem:[#allocation2 + $0x3c] sm:$0x1] %v3757_v2  ;;  %v3475_v59 = vrot.slane %v3473_v57, 7  ;;  %v3457_v62 = vshrl.u32 %v6344_v25, 16  ;;  %v3246_v22 = vadd.f32 %v8062_v55, %v3207_v40  ;;  %v3205_v24 = vadd.f32 %v3114_v29, %v8081_v47  ;;  %v6714_v47 = vpop.f32.mrf.mxu1 }
 0x2f1   :  { %v3460_v8 = vshll.u32 %v6344_v25, 16  ;;  %v3481_v7 = vshrl.u32 %v6347_v27, 16  ;;  %v3742_v37 = vsel %vm7389_vm15, %v3438_v48, %v3741_v33  ;;  %v3745_v34 = vsel %vm7193_vm2, %v3439_v32, %v3744_v9  ;;  %v3777_v15 = vld [vmem:[#allocation2 + $0x58] sm:$0xf] }
 0x2f2   :  { %v3484_v38 = vshll.u32 %v6347_v27, 16  ;;  %v3273_v11 = vmax.f32 %v3241_v4, 0.0  ;;  %3743 = vst [vmem:[#allocation2 + $0x28] sm:$0xf] %v3742_v37  ;;  %3746 = vst [vmem:[#allocation2 + $0x2c] sm:$0x1] %v3745_v34  ;;  %v3478_v19 = vor.u32 %v3476_v6, %v3475_v59  ;;  %v3208_v44 = vadd.f32 %v6711_v20, %v8083_v3 }
 0x2f3   :  { %v3479_v39 = vrot.slane %v3475_v59, 4  ;;  %v3459_v36 = vrot.slane %v3457_v62, 7  ;;  %v3483_v58 = vrot.slane %v3481_v7, 7  ;;  %v3780_v20 = vld [vmem:[#allocation2 + $0x5c] sm:$0x1]  ;;  %v3278_v6 = vmax.f32 %v3246_v22, 0.0 }
 0x2f4   :  { %v6345_v53 = vpack.c.bf16 %v3273_v11, %v3273_v11  ;;  %v3772_v30 = vsel %vm7389_vm15, %v3478_v19, %v3771_v10  ;;  %v3244_v25 = vadd.f32 %v8062_v55, %v3205_v24  ;;  %v8182_v27 = vld [vmem:[#allocation2] sm:$0xf]  ;;  %v3247_v48 = vadd.f32 %v8062_v55, %v3208_v44  ;;  %v3765_v34 = vld [vmem:[#allocation2 + $0x48] sm:$0xf]  ;;  %v8198_v10 = vpop.f32.mrf.mxu1 }
 0x2f5   :  { %v3775_v61 = vsel %vm7193_vm2, %v3479_v39, %v3774_v52  ;;  %v3462_v42 = vor.u32 %v3460_v8, %v3459_v36  ;;  %v3463_v14 = vrot.slane %v3459_v36, 4  ;;  %3773 = vst [vmem:[#allocation2 + $0x50] sm:$0xf] %v3772_v30  ;;  %v3486_v23 = vor.u32 %v3484_v38, %v3483_v58  ;;  %v3768_v38 = vld [vmem:[#allocation2 + $0x4c] sm:$0x1] }
 0x2f6   :  { %3776 = vst [vmem:[#allocation2 + $0x54] sm:$0x1] %v3775_v61  ;;  %v3487_v57 = vrot.slane %v3483_v58, 4  ;;  %v3465_v40 = vshrl.u32 %v6345_v53, 16  ;;  %v3468_v50 = vshll.u32 %v6345_v53, 16  ;;  %v6350_v32 = vpack.c.bf16 %v3278_v6, %v3278_v6 }
 0x2f7   :  { %v3760_v3 = vsel %vm7389_vm15, %v3462_v42, %v3759_v43  ;;  %v3763_v29 = vsel %vm7193_vm2, %v3463_v14, %v3762_v1  ;;  %v3778_v4 = vsel %vm7389_vm15, %v3486_v23, %v3777_v15  ;;  %v3276_v33 = vmax.f32 %v3244_v25, 0.0  ;;  %v3904_v44 = vld [vmem:[#allocation2 + $0x8] sm:$0xf]  ;;  %v3795_v23 = vld [vmem:[#allocation2 + $0x70] sm:$0xf] }
 0x2f8   :  { %3761 = vst [vmem:[#allocation2 + $0x40] sm:$0xf] %v3760_v3  ;;  %3764 = vst [vmem:[#allocation2 + $0x44] sm:$0x1] %v3763_v29  ;;  %v3781_v56 = vsel %vm7193_vm2, %v3487_v57, %v3780_v20  ;;  %v3467_v2 = vrot.slane %v3465_v40, 7  ;;  %v3206_v9 = vadd.f32 %v3117_v41, %v8085_v16  ;;  %v3211_v59 = vadd.f32 %v6714_v47, %v8088_v17  ;;  %v8203_v20 = vpop.f32.mrf.mxu1 }
 0x2f9   :  { %3779 = vst [vmem:[#allocation2 + $0x58] sm:$0xf] %v3778_v4  ;;  %3782 = vst [vmem:[#allocation2 + $0x5c] sm:$0x1] %v3781_v56  ;;  %v3279_v7 = vmax.f32 %v3247_v48, 0.0  ;;  %v3984_v37 = vshrl.u32 %v8182_v27, 16  ;;  %v6348_v39 = vpack.c.bf16 %v3276_v33, %v3276_v33 }
 0x2fa   :  { %v3470_v62 = vor.u32 %v3468_v50, %v3467_v2  ;;  %v3471_v8 = vrot.slane %v3467_v2, 4  ;;  %v3505_v11 = vshrl.u32 %v6350_v32, 16  ;;  %v3508_v19 = vshll.u32 %v6350_v32, 16  ;;  %v3798_v40 = vld [vmem:[#allocation2 + $0x74] sm:$0x1] }
 0x2fb   :  { %v3245_v36 = vadd.f32 %v8062_v55, %v3206_v9  ;;  %v6351_v41 = vpack.c.bf16 %v3279_v7, %v3279_v7  ;;  %v3250_v17 = vadd.f32 %v8062_v55, %v3211_v59  ;;  %v3489_v53 = vshrl.u32 %v6348_v39, 16  ;;  %v3783_v2 = vld [vmem:[#allocation2 + $0x60] sm:$0xf]  ;;  %v3786_v48 = vld [vmem:[#allocation2 + $0x64] sm:$0x1] }
 0x2fc   :  { %v3766_v58 = vsel %vm7389_vm15, %v3470_v62, %v3765_v34  ;;  %v3769_v16 = vsel %vm7193_vm2, %v3471_v8, %v3768_v38  ;;  %v3507_v52 = vrot.slane %v3505_v11, 7  ;;  %v3492_v22 = vshll.u32 %v6348_v39, 16  ;;  %v3801_v9 = vld [vmem:[#allocation2 + $0x78] sm:$0xf]  ;;  %v3905_v11 = vld [vmem:[#allocation2 + $0x10] sm:$0xf] }
 0x2fd   :  { %3767 = vst [vmem:[#allocation2 + $0x48] sm:$0xf] %v3766_v58  ;;  %3770 = vst [vmem:[#allocation2 + $0x4c] sm:$0x1] %v3769_v16  ;;  %v3277_v24 = vmax.f32 %v3245_v36, 0.0  ;;  %v3513_v30 = vshrl.u32 %v6351_v41, 16 }
 0x2fe   :  { %v3516_v61 = vshll.u32 %v6351_v41, 16  ;;  %v3282_v42 = vmax.f32 %v3250_v17, 0.0  ;;  %v8200_v14 = vrot.slane %v3984_v37, 4  ;;  %v3510_v43 = vor.u32 %v3508_v19, %v3507_v52  ;;  %v3804_v37 = vld [vmem:[#allocation2 + $0x7c] sm:$0x1]  ;;  %v3133_v41 = vpop.f32.mrf.mxu1 }
 0x2ff   :  { %v3511_v1 = vrot.slane %v3507_v52, 4  ;;  %v3491_v57 = vrot.slane %v3489_v53, 7  ;;  %v6349_v15 = vpack.c.bf16 %v3277_v24, %v3277_v24  ;;  %v3515_v50 = vrot.slane %v3513_v30, 7  ;;  %v3906_v16 = vld [vmem:[#allocation2 + $0x18] sm:$0xf] }
 0x300   :  { %v6354_v47 = vpack.c.bf16 %v3282_v42, %v3282_v42  ;;  %v3987_v3 = vshll.u32 %v8182_v27, 16  ;;  %v3998_v29 = vshrl.u32 %v3904_v44, 16  ;;  %v3796_v6 = vsel %vm7389_vm15, %v3510_v43, %v3795_v23  ;;  %v3789_v17 = vld [vmem:[#allocation2 + $0x68] sm:$0xf]  ;;  %v3792_v42 = vld [vmem:[#allocation2 + $0x6c] sm:$0x1] }
 0x301   :  { %v3799_v25 = vsel %vm7193_vm2, %v3511_v1, %v3798_v40  ;;  %v3494_v4 = vor.u32 %v3492_v22, %v3491_v57  ;;  %v3495_v56 = vrot.slane %v3491_v57, 4  ;;  %3797 = vst [vmem:[#allocation2 + $0x70] sm:$0xf] %v3796_v6  ;;  %v3518_v32 = vor.u32 %v3516_v61, %v3515_v50  ;;  %v6718_v6 = vpop.f32.mrf.mxu1 }
 0x302   :  { %3800 = vst [vmem:[#allocation2 + $0x74] sm:$0x1] %v3799_v25  ;;  %v3519_v33 = vrot.slane %v3515_v50, 4  ;;  %v3497_v59 = vshrl.u32 %v6349_v15, 16  ;;  %v3500_v62 = vshll.u32 %v6349_v15, 16  ;;  %v3537_v34 = vshrl.u32 %v6354_v47, 16 }
 0x303   :  { %v3784_v8 = vsel %vm7389_vm15, %v3494_v4, %v3783_v2  ;;  %v3787_v7 = vsel %vm7193_vm2, %v3495_v56, %v3786_v48  ;;  %v3540_v38 = vshll.u32 %v6354_v47, 16  ;;  %v3802_v19 = vsel %vm7389_vm15, %v3518_v32, %v3801_v9  ;;  %v3819_v15 = vld [vmem:[#allocation2 + $0x90] sm:$0xf]  ;;  %v3907_v25 = vld [vmem:[#allocation2 + $0x20] sm:$0xf] }
 0x304   :  { %3785 = vst [vmem:[#allocation2 + $0x60] sm:$0xf] %v3784_v8  ;;  %3788 = vst [vmem:[#allocation2 + $0x64] sm:$0x1] %v3787_v7  ;;  %v3805_v39 = vsel %vm7193_vm2, %v3519_v33, %v3804_v37  ;;  %v3499_v36 = vrot.slane %v3497_v59, 7  ;;  %v8217_v58 = vrot.slane %v3987_v3, 5  ;;  %v6175_v24 = vcombine.low %v8182_v27, %v3904_v44 }
 0x305   :  { %3803 = vst [vmem:[#allocation2 + $0x78] sm:$0xf] %v3802_v19  ;;  %3806 = vst [vmem:[#allocation2 + $0x7c] sm:$0x1] %v3805_v39  ;;  %v3539_v52 = vrot.slane %v3537_v34, 7  ;;  %v8219_v53 = vrot.slane %v3998_v29, 4  ;;  %v6176_v33 = vcombine.low %v3905_v11, %v3906_v16  ;;  %v3209_v9 = vadd.f32 %v8198_v10, %v8090_v0 }
 0x306   :  { %v4001_v22 = vshll.u32 %v3904_v44, 16  ;;  %v3502_v30 = vor.u32 %v3500_v62, %v3499_v36  ;;  %v3503_v61 = vrot.slane %v3499_v36, 4  ;;  %v4012_v43 = vshrl.u32 %v3905_v11, 16  ;;  %6792 = vmatprep.mubr.bf16.mxu1 %v6175_v24  ;;  %v3822_v29 = vld [vmem:[#allocation2 + $0x94] sm:$0x1] }
 0x307   :  { %v4015_v1 = vshll.u32 %v3905_v11, 16  ;;  %v3542_v23 = vor.u32 %v3540_v38, %v3539_v52  ;;  %v3543_v57 = vrot.slane %v3539_v52, 4  ;;  %v4026_v50 = vshrl.u32 %v3906_v16, 16  ;;  %v3908_v32 = vld [vmem:[#allocation2 + $0x28] sm:$0xf]  ;;  %6793 = vmatmul.mubr.bf16.vlgmr.msra.gmra.mxu1 %v6176_v33 }
 0x308   :  { %v8222_v40 = vrot.slane %v4001_v22, 5  ;;  %v3790_v47 = vsel %vm7389_vm15, %v3502_v30, %v3789_v17  ;;  %v3793_v3 = vsel %vm7193_vm2, %v3503_v61, %v3792_v42  ;;  %v8228_v27 = vrot.slane %v4012_v43, 4  ;;  %v3952_v17 = vld [vmem:[#allocation2 + $0xc] sm:$0x1] }
 0x309   :  { %v8230_v44 = vrot.slane %v4015_v1, 5  ;;  %3791 = vst [vmem:[#allocation2 + $0x68] sm:$0xf] %v3790_v47  ;;  %3794 = vst [vmem:[#allocation2 + $0x6c] sm:$0x1] %v3793_v3  ;;  %v3820_v4 = vsel %vm7389_vm15, %v3542_v23, %v3819_v15  ;;  %v3823_v56 = vsel %vm7193_vm2, %v3543_v57, %v3822_v29  ;;  %v8236_v2 = vrot.slane %v4026_v50, 4  ;;  %v8260_v23 = vpop.f32.mrf.mxu1 }
 0x30a   :  { %v4029_v48 = vshll.u32 %v3906_v16, 16  ;;  %3821 = vst [vmem:[#allocation2 + $0x90] sm:$0xf] %v3820_v4  ;;  %3824 = vst [vmem:[#allocation2 + $0x94] sm:$0x1] %v3823_v56  ;;  %v3212_v59 = vadd.f32 %v8203_v20, %v8092_v28  ;;  %v3210_v62 = vadd.f32 %v3133_v41, %v8094_v31  ;;  %v3215_v7 = vadd.f32 %v6718_v6, %v8096_v63 }
 0x30b   :  { %v4040_v37 = vshrl.u32 %v3907_v25, 16  ;;  %v4043_v34 = vshll.u32 %v3907_v25, 16  ;;  %v3248_v38 = vadd.f32 %v8062_v55, %v3209_v9  ;;  %v4054_v39 = vshrl.u32 %v3908_v32, 16  ;;  %v3951_v20 = vld [vmem:[#allocation2 + $0x4] sm:$0x1] }
 0x30c   :  { %v8243_v8 = vrot.slane %v4029_v48, 5  ;;  %v3251_v19 = vadd.f32 %v8062_v55, %v3212_v59  ;;  %v3249_v11 = vadd.f32 %v8062_v55, %v3210_v62  ;;  %v3254_v0 = vadd.f32 %v8062_v55, %v3215_v7  ;;  %v8264_v4 = vld [vmem:[#allocation2 + $0x30] sm:$0xf]  ;;  %v8266_v62 = vpop.f32.mrf.mxu1  ;;  %v3807_v7 = vld [vmem:[#allocation2 + $0x80] sm:$0xf] }
 0x30d   :  { %v8250_v10 = vrot.slane %v4040_v37, 4  ;;  %v8252_v28 = vrot.slane %v4043_v34, 5  ;;  %v4057_v31 = vshll.u32 %v3908_v32, 16  ;;  %v3280_v36 = vmax.f32 %v3248_v38, 0.0  ;;  %v3810_v37 = vld [vmem:[#allocation2 + $0x84] sm:$0x1] }
 0x30e   :  { %v3283_v63 = vmax.f32 %v3251_v19, 0.0  ;;  %v3281_v16 = vmax.f32 %v3249_v11, 0.0  ;;  %v8254_v41 = vrot.slane %v4054_v39, 4  ;;  %v3286_v52 = vmax.f32 %v3254_v0, 0.0 }
 0x30f   :  { %v8256_v22 = vrot.slane %v4057_v31, 5  ;;  %v6177_v24 = vcombine.low %v3907_v25, %v3908_v32  ;;  %v3990_v30 = vor.u32 %v8217_v58, %v8200_v14  ;;  %v6352_v61 = vpack.c.bf16 %v3280_v36, %v3280_v36  ;;  %v3825_v31 = vld [vmem:[#allocation2 + $0x98] sm:$0xf] }
 0x310   :  { %v6355_v42 = vpack.c.bf16 %v3283_v63, %v3283_v63  ;;  %v6353_v43 = vpack.c.bf16 %v3281_v16, %v3281_v16  ;;  %v3993_v1 = vshll.u32 %v3951_v20, 16  ;;  %v6358_v57 = vpack.c.bf16 %v3286_v52, %v3286_v52  ;;  %v3828_v20 = vld [vmem:[#allocation2 + $0x9c] sm:$0x1]  ;;  %v3813_v16 = vld [vmem:[#allocation2 + $0x88] sm:$0xf] }
 0x311   :  { %6796 = vmatprep.mubr.bf16.mxu1 %v6177_v24  ;;  %v3991_v15 = vrot.slane %v3990_v30, 4  ;;  %v4004_v50 = vor.u32 %v8222_v40, %v8219_v53  ;;  %v4007_v47 = vshll.u32 %v3952_v17, 16  ;;  %v3521_v3 = vshrl.u32 %v6352_v61, 16  ;;  %v3816_v17 = vld [vmem:[#allocation2 + $0x8c] sm:$0x1] }
 0x312   :  { %v3524_v29 = vshll.u32 %v6352_v61, 16  ;;  %v3545_v6 = vshrl.u32 %v6355_v42, 16  ;;  %v3548_v25 = vshll.u32 %v6355_v42, 16  ;;  %v3529_v14 = vshrl.u32 %v6353_v43, 16 }
 0x313   :  { %v3532_v58 = vshll.u32 %v6353_v43, 16  ;;  %v3569_v56 = vshrl.u32 %v6358_v57, 16  ;;  %v3572_v48 = vshll.u32 %v6358_v57, 16  ;;  %v3523_v32 = vrot.slane %v3521_v3, 7  ;;  %v3846_v57 = vld [vmem:[#allocation2 + $0xb4] sm:$0x1] }
 0x314   :  { %v3547_v33 = vrot.slane %v3545_v6, 7  ;;  %v3995_v9 = vrot.slane %v3993_v1, 5  ;;  %v4005_v59 = vrot.slane %v4004_v50, 4  ;;  %v3531_v53 = vrot.slane %v3529_v14, 7  ;;  %v3843_v1 = vld [vmem:[#allocation2 + $0xb0] sm:$0xf] }
 0x315   :  { %v3571_v40 = vrot.slane %v3569_v56, 7  ;;  %v4009_v34 = vrot.slane %v4007_v47, 5  ;;  %v4068_v38 = vshrl.u32 %v8264_v4, 16  ;;  %v3526_v19 = vor.u32 %v3524_v29, %v3523_v32  ;;  %v3910_v50 = vld [vmem:[#allocation2 + $0x38] sm:$0xf]  ;;  %v3149_v47 = vpop.f32.mrf.mxu1 }
 0x316   :  { %v3527_v11 = vrot.slane %v3523_v32, 4  ;;  %v3550_v39 = vor.u32 %v3548_v25, %v3547_v33  ;;  %v3551_v0 = vrot.slane %v3547_v33, 4  ;;  %v3534_v36 = vor.u32 %v3532_v58, %v3531_v53  ;;  %v3953_v14 = vld [vmem:[#allocation2 + $0x14] sm:$0x1] }
 0x317   :  { %v3535_v63 = vrot.slane %v3531_v53, 4  ;;  %v3574_v52 = vor.u32 %v3572_v48, %v3571_v40  ;;  %v3575_v24 = vrot.slane %v3571_v40, 4  ;;  %v3808_v30 = vsel %vm7389_vm15, %v3526_v19, %v3807_v7  ;;  %v3954_v7 = vld [vmem:[#allocation2 + $0x1c] sm:$0x1] }
 0x318   :  { %v3811_v61 = vsel %vm7193_vm2, %v3527_v11, %v3810_v37  ;;  %v3826_v42 = vsel %vm7389_vm15, %v3550_v39, %v3825_v31  ;;  %v3829_v43 = vsel %vm7193_vm2, %v3551_v0, %v3828_v20  ;;  %3809 = vst [vmem:[#allocation2 + $0x80] sm:$0xf] %v3808_v30  ;;  %v3814_v3 = vsel %vm7389_vm15, %v3534_v36, %v3813_v16  ;;  %v3911_v31 = vld [vmem:[#allocation2 + $0x40] sm:$0xf] }
 0x319   :  { %3812 = vst [vmem:[#allocation2 + $0x84] sm:$0x1] %v3811_v61  ;;  %3827 = vst [vmem:[#allocation2 + $0x98] sm:$0xf] %v3826_v42  ;;  %v3817_v29 = vsel %vm7193_vm2, %v3535_v63, %v3816_v17  ;;  %v3844_v6 = vsel %vm7389_vm15, %v3574_v52, %v3843_v1  ;;  %v3847_v25 = vsel %vm7193_vm2, %v3575_v24, %v3846_v57  ;;  %v8289_v32 = vrot.slane %v4068_v38, 4  ;;  %v6968_v1 = vld [vmem:[#allocation8 + $0xb0] sm:$0xff]  }
 0x31a   :  { %3830 = vst [vmem:[#allocation2 + $0x9c] sm:$0x1] %v3829_v43  ;;  %3815 = vst [vmem:[#allocation2 + $0x88] sm:$0xf] %v3814_v3  ;;  %v3996_v56 = vsel %vm7508_vm0, %v3991_v15, %v3995_v9  ;;  %v4010_v48 = vsel %vm7508_vm0, %v4005_v59, %v4009_v34  ;;  %v4071_v33 = vshll.u32 %v8264_v4, 16  ;;  %v4082_v53 = vshrl.u32 %v3910_v50, 16  ;;  %v6722_v59 = vpop.f32.mrf.mxu1 }
 0x31b   :  { %3818 = vst [vmem:[#allocation2 + $0x8c] sm:$0x1] %v3817_v29  ;;  %3845 = vst [vmem:[#allocation2 + $0xb0] sm:$0xf] %v3844_v6  ;;  %v6151_v37 = vcombine.low %v3996_v56, %v4010_v48  ;;  %v4085_v40 = vshll.u32 %v3910_v50, 16  ;;  %v6178_v19 = vcombine.low %v8264_v4, %v3910_v50  ;;  %v3213_v39 = vadd.f32 %v8260_v23, %v8099_v46  ;;  %v9040_v56 = vld [vmem:[#allocation22_spill] sm:$0xff] }
 0x31c   :  { %3848 = vst [vmem:[#allocation2 + $0xb4] sm:$0x1] %v3847_v25  ;;  %v8293_v11 = vrot.slane %v4071_v33, 5  ;;  %v4018_v15 = vor.u32 %v8230_v44, %v8228_v27  ;;  %v4021_v9 = vshll.u32 %v3953_v14, 16  ;;  %v8299_v34 = vrot.slane %v4082_v53, 4  ;;  %v6971_v53 = vld [vmem:[#allocation8 + $0xa8] sm:$0xff]  }
 0x31d   :  { %6744 = vmatprep.mubr.bf16.mxu0 %v6151_v37  ;;  %v8301_v38 = vrot.slane %v4085_v40, 5  ;;  %6797 = vmatmul.mubr.bf16.gmra.mxu1 %v6178_v19  ;;  %v4032_v0 = vor.u32 %v8243_v8, %v8236_v2  ;;  %v4035_v4 = vshll.u32 %v3954_v7, 16  ;;  %v3252_v20 = vadd.f32 %v8062_v55, %v3213_v39  ;;  %v3912_v8 = vld [vmem:[#allocation2 + $0x48] sm:$0xf]  ;;  %v8324_v37 = vpop.f32.mrf.mxu1 }
 0x31e   :  { %v4019_v36 = vrot.slane %v4018_v15, 4  ;;  %v4023_v46 = vrot.slane %v4021_v9, 5  ;;  %v3216_v27 = vadd.f32 %v8266_v62, %v8101_v12  ;;  %v3214_v63 = vadd.f32 %v3149_v47, %v8103_v51  ;;  %v3955_v9 = vld [vmem:[#allocation2 + $0x24] sm:$0x1] }
 0x31f   :  { %v4033_v44 = vrot.slane %v4032_v0, 4  ;;  %v4037_v23 = vrot.slane %v4035_v4, 5  ;;  %v3219_v16 = vadd.f32 %v6722_v59, %v8105_v54  ;;  %v3284_v17 = vmax.f32 %v3252_v20, 0.0 }
 0x320   :  { %v4024_v52 = vsel %vm7508_vm0, %v4019_v36, %v4023_v46  ;;  %v3255_v2 = vadd.f32 %v8062_v55, %v3216_v27  ;;  %v4096_v24 = vshrl.u32 %v3911_v31, 16  ;;  %v3253_v61 = vadd.f32 %v8062_v55, %v3214_v63  ;;  %v3831_v27 = vld [vmem:[#allocation2 + $0xa0] sm:$0xf]  ;;  %v3849_v63 = vld [vmem:[#allocation2 + $0xb8] sm:$0xf] }
 0x321   :  { %v4038_v30 = vsel %vm7508_vm0, %v4033_v44, %v4037_v23  ;;  %v3258_v12 = vadd.f32 %v8062_v55, %v3219_v16  ;;  %v4099_v62 = vshll.u32 %v3911_v31, 16  ;;  %v6356_v42 = vpack.c.bf16 %v3284_v17, %v3284_v17  ;;  %v3834_v44 = vld [vmem:[#allocation2 + $0xa4] sm:$0x1]  ;;  %v3852_v16 = vld [vmem:[#allocation2 + $0xbc] sm:$0x1] }
 0x322   :  { %v6152_v51 = vcombine.low %v4024_v52, %v4038_v30  ;;  %v3287_v43 = vmax.f32 %v3255_v2, 0.0  ;;  %v8317_v54 = vrot.slane %v4096_v24, 4  ;;  %v3285_v57 = vmax.f32 %v3253_v61, 0.0  ;;  %v8332_v24 = vpop.f32.mrf.mxu1 }
 0x323   :  { %v3290_v50 = vmax.f32 %v3258_v12, 0.0  ;;  %v8319_v47 = vrot.slane %v4099_v62, 5  ;;  %v4110_v3 = vshrl.u32 %v3912_v8, 16  ;;  %v3553_v29 = vshrl.u32 %v6356_v42, 16 }
 0x324   :  { %v3556_v6 = vshll.u32 %v6356_v42, 16  ;;  %6745 = vmatmul.mubr.bf16.vlgmr.msra.gmra.mxu0 %v6152_v51  ;;  %v6359_v25 = vpack.c.bf16 %v3287_v43, %v3287_v43  ;;  %v4113_v14 = vshll.u32 %v3912_v8, 16  ;;  %v6357_v55 = vpack.c.bf16 %v3285_v57, %v3285_v57  ;;  %v3867_v42 = vld [vmem:[#allocation2 + $0xd0] sm:$0xf]  ;;  %v6974_v51 = vld [vmem:[#allocation8 + $0xa0] sm:$0xff]  }
 0x325   :  { %6825 = vmatpush3.bf16.msra.mxu0 %v9040_v56  ;;  %v6362_v48 = vpack.c.bf16 %v3290_v50, %v3290_v50  ;;  %v8322_v33 = vrot.slane %v4110_v3, 4  ;;  %v6179_v7 = vcombine.low %v3911_v31, %v3912_v8  ;;  %v3555_v40 = vrot.slane %v3553_v29, 7  ;;  %v8338_v57 = vld [vmem:[#allocation2 + $0x2c] sm:$0x1]  ;;  %v3913_v50 = vld [vmem:[#allocation2 + $0x50] sm:$0xf] }
 0x326   :  { %v3577_v19 = vshrl.u32 %v6359_v25, 16  ;;  %v3580_v39 = vshll.u32 %v6359_v25, 16  ;;  %v8326_v15 = vrot.slane %v4113_v14, 5  ;;  %6826 = vmatprep.subr.bf16.mxu0 %v6968_v1  ;;  %v3561_v59 = vshrl.u32 %v6357_v55, 16  ;;  %v3914_v56 = vld [vmem:[#allocation2 + $0x58] sm:$0xf] }
 0x327   :  { %v3564_v0 = vshll.u32 %v6357_v55, 16  ;;  %v3601_v4 = vshrl.u32 %v6362_v48, 16  ;;  %v3604_v20 = vshll.u32 %v6362_v48, 16  ;;  %6800 = vmatprep.mubr.bf16.mxu1 %v6179_v7  ;;  %v3558_v36 = vor.u32 %v3556_v6, %v3555_v40  ;;  %v3870_v6 = vld [vmem:[#allocation2 + $0xd4] sm:$0x1] }
 0x328   :  { %v3559_v46 = vrot.slane %v3555_v40, 4  ;;  %v3579_v31 = vrot.slane %v3577_v19, 7  ;;  %v4046_v23 = vor.u32 %v8252_v28, %v8250_v10  ;;  %v3563_v17 = vrot.slane %v3561_v59, 7  ;;  %v3837_v10 = vld [vmem:[#allocation2 + $0xa8] sm:$0xf]  ;;  %v3165_v19 = vpop.f32.mrf.mxu1 }
 0x329   :  { %v3603_v52 = vrot.slane %v3601_v4, 7  ;;  %v4049_v2 = vshll.u32 %v3955_v9, 16  ;;  %v4060_v8 = vor.u32 %v8256_v22, %v8254_v41  ;;  %6827 = vmatpush3.bf16.msra.mxu0 %v6968_v1  ;;  %v3832_v30 = vsel %vm7389_vm15, %v3558_v36, %v3831_v27  ;;  %v3840_v28 = vld [vmem:[#allocation2 + $0xac] sm:$0x1]  ;;  %v8355_v4 = vld [vmem:[#allocation2 + $0x34] sm:$0x1] }
 0x32a   :  { %v3835_v61 = vsel %vm7193_vm2, %v3559_v46, %v3834_v44  ;;  %v3582_v12 = vor.u32 %v3580_v39, %v3579_v31  ;;  %v3583_v62 = vrot.slane %v3579_v31, 4  ;;  %6828 = vmatprep.subr.bf16.mxu0 %v6971_v53  ;;  %3833 = vst [vmem:[#allocation2 + $0xa0] sm:$0xf] %v3832_v30  ;;  %v3566_v43 = vor.u32 %v3564_v0, %v3563_v17  ;;  %v6726_v30 = vpop.f32.mrf.mxu1 }
 0x32b   :  { %3836 = vst [vmem:[#allocation2 + $0xa4] sm:$0x1] %v3835_v61  ;;  %v3567_v41 = vrot.slane %v3563_v17, 4  ;;  %v3606_v22 = vor.u32 %v3604_v20, %v3603_v52  ;;  %v3607_v1 = vrot.slane %v3603_v52, 4  ;;  %v4047_v25 = vrot.slane %v4046_v23, 4  ;;  %v6977_v20 = vld [vmem:[#allocation8 + $0x98] sm:$0xff]  }
 0x32c   :  { %v3850_v3 = vsel %vm7389_vm15, %v3582_v12, %v3849_v63  ;;  %v3853_v29 = vsel %vm7193_vm2, %v3583_v62, %v3852_v16  ;;  %v4051_v14 = vrot.slane %v4049_v2, 5  ;;  %v3838_v55 = vsel %vm7389_vm15, %v3566_v43, %v3837_v10  ;;  %v8361_v63 = vld [vmem:[#allocation2 + $0x3c] sm:$0x1]  ;;  %v3915_v12 = vld [vmem:[#allocation2 + $0x60] sm:$0xf]  ;;  %v6980_v62 = vld [vmem:[#allocation8 + $0x90] sm:$0xff]  }
 0x32d   :  { %3851 = vst [vmem:[#allocation2 + $0xb8] sm:$0xf] %v3850_v3  ;;  %3854 = vst [vmem:[#allocation2 + $0xbc] sm:$0x1] %v3853_v29  ;;  %v3841_v48 = vsel %vm7193_vm2, %v3567_v41, %v3840_v28  ;;  %v3868_v7 = vsel %vm7389_vm15, %v3606_v22, %v3867_v42  ;;  %v3871_v40 = vsel %vm7193_vm2, %v3607_v1, %v3870_v6  ;;  %6829 = vmatpush3.bf16.msra.mxu0 %v6971_v53 }
 0x32e   :  { %3839 = vst [vmem:[#allocation2 + $0xa8] sm:$0xf] %v3838_v55  ;;  %3842 = vst [vmem:[#allocation2 + $0xac] sm:$0x1] %v3841_v48  ;;  %v4052_v39 = vsel %vm7508_vm0, %v4047_v25, %v4051_v14  ;;  %v4061_v9 = vrot.slane %v4060_v8, 4  ;;  %v4063_v59 = vshll.u32 %v8338_v57, 16  ;;  %6830 = vmatprep.subr.bf16.mxu0 %v6974_v51  ;;  %v6180_v44 = vcombine.low %v3913_v50, %v3914_v56 }
 0x32f   :  { %3869 = vst [vmem:[#allocation2 + $0xd0] sm:$0xf] %v3868_v7  ;;  %3872 = vst [vmem:[#allocation2 + $0xd4] sm:$0x1] %v3871_v40  ;;  %v4124_v0 = vshrl.u32 %v3913_v50, 16  ;;  %v4127_v36 = vshll.u32 %v3913_v50, 16  ;;  %v3217_v23 = vadd.f32 %v8324_v37, %v8108_v45  ;;  %v4074_v16 = vor.u32 %v8293_v11, %v8289_v32 }
 0x330   :  { %v4138_v46 = vshrl.u32 %v3914_v56, 16  ;;  %v4141_v27 = vshll.u32 %v3914_v56, 16  ;;  %v4065_v53 = vrot.slane %v4063_v59, 5  ;;  %6801 = vmatmul.mubr.bf16.gmra.mxu1 %v6180_v44  ;;  %v4077_v8 = vshll.u32 %v8355_v4, 16  ;;  %v8377_v45 = vld [vmem:[%s8997_s3] ss:$0 sm:$0xff] }
 0x331   :  { %v8357_v31 = vrot.slane %v4124_v0, 4  ;;  %v8365_v17 = vrot.slane %v4127_v36, 5  ;;  %6831 = vmatpush3.bf16.msra.mxu0 %v6974_v51  ;;  %v3256_v32 = vadd.f32 %v8377_v45, %v3217_v23  ;;  %v4075_v11 = vrot.slane %v4074_v16, 4  ;;  %v3916_v50 = vld [vmem:[#allocation2 + $0x68] sm:$0xf]  ;;  %v6984_v44 = vld [vmem:[#allocation8 + $0x80] sm:$0xff]  }
 0x332   :  { %v8367_v52 = vrot.slane %v4138_v46, 4  ;;  %v8369_v2 = vrot.slane %v4141_v27, 5  ;;  %v4066_v61 = vsel %vm7508_vm0, %v4061_v9, %v4065_v53  ;;  %v4088_v37 = vor.u32 %v8301_v38, %v8299_v34  ;;  %6832 = vmatprep.subr.bf16.mxu0 %v6977_v20  ;;  %v3855_v53 = vld [vmem:[#allocation2 + $0xc0] sm:$0xf]  ;;  %v3858_v23 = vld [vmem:[#allocation2 + $0xc4] sm:$0x1] }
 0x333   :  { %v6153_v10 = vcombine.low %v4052_v39, %v4066_v61  ;;  %v4079_v28 = vrot.slane %v4077_v8, 5  ;;  %v4091_v42 = vshll.u32 %v8361_v63, 16  ;;  %v3220_v51 = vadd.f32 %v8332_v24, %v8110_v18 }
 0x334   :  { %v3288_v43 = vmax.f32 %v3256_v32, 0.0  ;;  %v4089_v41 = vrot.slane %v4088_v37, 4  ;;  %v3218_v22 = vadd.f32 %v3165_v19, %v8112_v49  ;;  %v3223_v1 = vadd.f32 %v6726_v30, %v8114_v60  ;;  %v6983_v49 = vld [vmem:[#allocation8 + $0x88] sm:$0xff]  }
 0x335   :  { %6748 = vmatprep.mubr.bf16.mxu0 %v6153_v10  ;;  %v4080_v34 = vsel %vm7508_vm0, %v4075_v11, %v4079_v28  ;;  %v4093_v38 = vrot.slane %v4091_v42, 5  ;;  %v3259_v3 = vadd.f32 %v8377_v45, %v3220_v51  ;;  %v4152_v29 = vshrl.u32 %v3915_v12, 16  ;;  %6833 = vmatpush3.bf16.msra.mxu0 %v6977_v20 }
 0x336   :  { %v6360_v6 = vpack.c.bf16 %v3288_v43, %v3288_v43  ;;  %v3257_v25 = vadd.f32 %v8377_v45, %v3218_v22  ;;  %v3262_v18 = vadd.f32 %v8377_v45, %v3223_v1  ;;  %v4155_v24 = vshll.u32 %v3915_v12, 16  ;;  %6834 = vmatprep.subr.bf16.mxu0 %v6980_v62  ;;  %v8406_v43 = vld [vmem:[#allocation2 + $0x4c] sm:$0x1] }
 0x337   :  { %v4094_v60 = vsel %vm7508_vm0, %v4089_v41, %v4093_v38  ;;  %v3291_v14 = vmax.f32 %v3259_v3, 0.0  ;;  %v8394_v56 = vrot.slane %v4152_v29, 4  ;;  %v4166_v55 = vshrl.u32 %v3916_v50, 16  ;;  %v3178_v41 = vpop.f32.mrf.mxu1  ;;  %v3876_v3 = vld [vmem:[#allocation2 + $0xdc] sm:$0x1] }
 0x338   :  { %v3585_v48 = vshrl.u32 %v6360_v6, 16  ;;  %v3588_v7 = vshll.u32 %v6360_v6, 16  ;;  %v6154_v40 = vcombine.low %v4080_v34, %v4094_v60  ;;  %v3289_v19 = vmax.f32 %v3257_v25, 0.0 }
 0x339   :  { %v6363_v39 = vpack.c.bf16 %v3291_v14, %v3291_v14  ;;  %v3294_v9 = vmax.f32 %v3262_v18, 0.0  ;;  %v8396_v59 = vrot.slane %v4155_v24, 5  ;;  %v8398_v0 = vrot.slane %v4166_v55, 4  ;;  %6835 = vmatpush3.bf16.msra.mxu0 %v6980_v62  ;;  %v8402_v62 = vld [vmem:[#allocation2 + $0x44] sm:$0x1] }
 0x33a   :  { %v3587_v20 = vrot.slane %v3585_v48, 7  ;;  %6749 = vmatmul.mubr.bf16.gmra.mxu0 %v6154_v40  ;;  %v6361_v36 = vpack.c.bf16 %v3289_v19, %v3289_v19  ;;  %v4169_v46 = vshll.u32 %v3916_v50, 16  ;;  %v6181_v27 = vcombine.low %v3915_v12, %v3916_v50  ;;  %6836 = vmatprep.subr.bf16.mxu0 %v6983_v49  ;;  %v3861_v24 = vld [vmem:[#allocation2 + $0xc8] sm:$0xf]  ;;  %v3917_v14 = vld [vmem:[#allocation2 + $0x70] sm:$0xf] }
 0x33b   :  { %v3609_v16 = vshrl.u32 %v6363_v39, 16  ;;  %v3612_v8 = vshll.u32 %v6363_v39, 16  ;;  %v6366_v30 = vpack.c.bf16 %v3294_v9, %v3294_v9  ;;  %v4102_v61 = vor.u32 %v8319_v47, %v8317_v54  ;;  %v3873_v47 = vld [vmem:[#allocation2 + $0xd8] sm:$0xf]  ;;  %v6727_v9 = vpop.f32.mrf.mxu1 }
 0x33c   :  { %v3590_v32 = vor.u32 %v3588_v7, %v3587_v20  ;;  %v3591_v11 = vrot.slane %v3587_v20, 4  ;;  %v3593_v37 = vshrl.u32 %v6361_v36, 16  ;;  %v3596_v10 = vshll.u32 %v6361_v36, 16  ;;  %6804 = vmatprep.mubr.bf16.mxu1 %v6181_v27  ;;  %v3864_v7 = vld [vmem:[#allocation2 + $0xcc] sm:$0x1] }
 0x33d   :  { %v3611_v28 = vrot.slane %v3609_v16, 7  ;;  %v3633_v42 = vshrl.u32 %v6366_v30, 16  ;;  %v3636_v12 = vshll.u32 %v6366_v30, 16  ;;  %v8404_v51 = vrot.slane %v4169_v46, 5  ;;  %6837 = vmatpush3.bf16.msra.mxu0 %v6983_v49  ;;  %v3918_v39 = vld [vmem:[#allocation2 + $0x78] sm:$0xf] }
 0x33e   :  { %v3856_v22 = vsel %vm7389_vm15, %v3590_v32, %v3855_v53  ;;  %v3859_v54 = vsel %vm7193_vm2, %v3591_v11, %v3858_v23  ;;  %v3595_v1 = vrot.slane %v3593_v37, 7  ;;  %v4103_v50 = vrot.slane %v4102_v61, 4  ;;  %6838 = vmatprep.subr.bf16.mxu0 %v6984_v44  ;;  %v3891_v20 = vld [vmem:[#allocation2 + $0xf0] sm:$0xf]  ;;  %v3894_v36 = vld [vmem:[#allocation2 + $0xf4] sm:$0x1] }
 0x33f   :  { %3857 = vst [vmem:[#allocation2 + $0xc0] sm:$0xf] %v3856_v22  ;;  %3860 = vst [vmem:[#allocation2 + $0xc4] sm:$0x1] %v3859_v54  ;;  %v3614_v34 = vor.u32 %v3612_v8, %v3611_v28  ;;  %v3615_v38 = vrot.slane %v3611_v28, 4  ;;  %v3635_v29 = vrot.slane %v3633_v42, 7  ;;  %v4116_v49 = vor.u32 %v8326_v15, %v8322_v33  ;;  %v3181_v22 = vpop.f32.mrf.mxu1 }
 0x340   :  { %v4105_v6 = vshll.u32 %v8402_v62, 16  ;;  %v3598_v25 = vor.u32 %v3596_v10, %v3595_v1  ;;  %v3599_v18 = vrot.slane %v3595_v1, 4  ;;  %v4119_v60 = vshll.u32 %v8406_v43, 16  ;;  %v8430_v11 = vld [vmem:[#allocation2 + $0x54] sm:$0x1] }
 0x341   :  { %v3874_v55 = vsel %vm7389_vm15, %v3614_v34, %v3873_v47  ;;  %v3877_v48 = vsel %vm7193_vm2, %v3615_v38, %v3876_v3  ;;  %v3638_v40 = vor.u32 %v3636_v12, %v3635_v29  ;;  %v3639_v19 = vrot.slane %v3635_v29, 4  ;;  %6839 = vmatpush3.bf16.msra.mxu0 %v6984_v44  ;;  %v8437_v12 = vld [vmem:[#allocation2 + $0x5c] sm:$0x1]  ;;  %v3919_v54 = vld [vmem:[#allocation2 + $0x80] sm:$0xf] }
 0x342   :  { %3875 = vst [vmem:[#allocation2 + $0xd8] sm:$0xf] %v3874_v55  ;;  %3878 = vst [vmem:[#allocation2 + $0xdc] sm:$0x1] %v3877_v48  ;;  %v3862_v33 = vsel %vm7389_vm15, %v3598_v25, %v3861_v24  ;;  %v3865_v15 = vsel %vm7193_vm2, %v3599_v18, %v3864_v7  ;;  %v4107_v46 = vrot.slane %v4105_v6, 5  ;;  %v4117_v27 = vrot.slane %v4116_v49, 4 }
 0x343   :  { %3863 = vst [vmem:[#allocation2 + $0xc8] sm:$0xf] %v3862_v33  ;;  %3866 = vst [vmem:[#allocation2 + $0xcc] sm:$0x1] %v3865_v15  ;;  %v3892_v53 = vsel %vm7389_vm15, %v3638_v40, %v3891_v20  ;;  %v3895_v44 = vsel %vm7193_vm2, %v3639_v19, %v3894_v36  ;;  %v4121_v23 = vrot.slane %v4119_v60, 5  ;;  %v4180_v16 = vshrl.u32 %v3917_v14, 16 }
 0x344   :  { %3893 = vst [vmem:[#allocation2 + $0xf0] sm:$0xf] %v3892_v53  ;;  %3896 = vst [vmem:[#allocation2 + $0xf4] sm:$0x1] %v3895_v44  ;;  %v4108_v8 = vsel %vm7508_vm0, %v4103_v50, %v4107_v46  ;;  %v4183_v30 = vshll.u32 %v3917_v14, 16  ;;  %v4194_v61 = vshrl.u32 %v3918_v39, 16  ;;  %v6182_v28 = vcombine.low %v3917_v14, %v3918_v39 }
 0x345   :  { %v4197_v32 = vshll.u32 %v3918_v39, 16  ;;  %v4122_v37 = vsel %vm7508_vm0, %v4117_v27, %v4121_v23  ;;  %v8434_v10 = vrot.slane %v4180_v16, 4  ;;  %v3221_v42 = vadd.f32 %v3178_v41, %v8116_v21  ;;  %v3920_v18 = vld [vmem:[#allocation2 + $0x88] sm:$0xf]  ;;  %v8462_v33 = vld [vmem:[#allocation2 + $0x64] sm:$0x1] }
 0x346   :  { %v6155_v47 = vcombine.low %v4108_v8, %v4122_v37  ;;  %v8439_v1 = vrot.slane %v4183_v30, 5  ;;  %v8441_v50 = vrot.slane %v4194_v61, 4  ;;  %6805 = vmatmul.mubr.bf16.gmra.mxu1 %v6182_v28  ;;  %v4130_v3 = vor.u32 %v8365_v17, %v8357_v31  ;;  %v8470_v8 = vld [vmem:[#allocation2 + $0x6c] sm:$0x1] }
 0x347   :  { %v8443_v34 = vrot.slane %v4197_v32, 5  ;;  %v3260_v38 = vadd.f32 %v8377_v45, %v3221_v42  ;;  %v4133_v29 = vshll.u32 %v8430_v11, 16  ;;  %v4144_v21 = vor.u32 %v8369_v2, %v8367_v52 }
 0x348   :  { %6752 = vmatprep.mubr.bf16.mxu0 %v6155_v47  ;;  %v4147_v41 = vshll.u32 %v8437_v12, 16  ;;  %v3224_v6 = vadd.f32 %v6727_v9, %v8118_v26  ;;  %v3222_v25 = vadd.f32 %v3181_v22, %v8120_v13  ;;  %v4208_v24 = vshrl.u32 %v3919_v54, 16  ;;  %v3921_v22 = vld [vmem:[#allocation2 + $0x90] sm:$0xf] }
 0x349   :  { %v3292_v49 = vmax.f32 %v3260_v38, 0.0  ;;  %v4131_v60 = vrot.slane %v4130_v3, 4  ;;  %v4135_v14 = vrot.slane %v4133_v29, 5  ;;  %v4145_v55 = vrot.slane %v4144_v21, 4  ;;  %v3879_v3 = vld [vmem:[#allocation2 + $0xe0] sm:$0xf] }
 0x34a   :  { %v4149_v48 = vrot.slane %v4147_v41, 5  ;;  %v3263_v31 = vadd.f32 %v8377_v45, %v3224_v6  ;;  %v3261_v17 = vadd.f32 %v8377_v45, %v3222_v25  ;;  %v8456_v7 = vrot.slane %v4208_v24, 4  ;;  %v3882_v41 = vld [vmem:[#allocation2 + $0xe4] sm:$0x1]  ;;  %v3897_v24 = vld [vmem:[#allocation2 + $0xf8] sm:$0xf] }
 0x34b   :  { %v6364_v52 = vpack.c.bf16 %v3292_v49, %v3292_v49  ;;  %v4136_v2 = vsel %vm7508_vm0, %v4131_v60, %v4135_v14  ;;  %v4211_v26 = vshll.u32 %v3919_v54, 16  ;;  %v4222_v40 = vshrl.u32 %v3920_v18, 16  ;;  %v3900_v49 = vld [vmem:[#allocation2 + $0xfc] sm:$0x1]  ;;  %v3885_v60 = vld [vmem:[#allocation2 + $0xe8] sm:$0xf] }
 0x34c   :  { %v4150_v13 = vsel %vm7508_vm0, %v4145_v55, %v4149_v48  ;;  %v3295_v19 = vmax.f32 %v3263_v31, 0.0  ;;  %v3293_v39 = vmax.f32 %v3261_v17, 0.0  ;;  %v4225_v9 = vshll.u32 %v3920_v18, 16  ;;  %v3888_v17 = vld [vmem:[#allocation2 + $0xec] sm:$0x1] }
 0x34d   :  { %v3617_v15 = vshrl.u32 %v6364_v52, 16  ;;  %v3620_v20 = vshll.u32 %v6364_v52, 16  ;;  %v6156_v36 = vcombine.low %v4136_v2, %v4150_v13  ;;  %v8464_v45 = vrot.slane %v4211_v26, 5  ;;  %v3922_v52 = vld [vmem:[#allocation2 + $0x98] sm:$0xf] }
 0x34e   :  { %v6367_v46 = vpack.c.bf16 %v3295_v19, %v3295_v19  ;;  %v6365_v27 = vpack.c.bf16 %v3293_v39, %v3293_v39  ;;  %v8466_v53 = vrot.slane %v4222_v40, 4  ;;  %v8468_v44 = vrot.slane %v4225_v9, 5  ;;  %v8486_v19 = vld [vmem:[#allocation2 + $0x74] sm:$0x1] }
 0x34f   :  { %v3619_v23 = vrot.slane %v3617_v15, 7  ;;  %6753 = vmatmul.mubr.bf16.gmra.mxu0 %v6156_v36  ;;  %v6183_v16 = vcombine.low %v3919_v54, %v3920_v18  ;;  %v4158_v30 = vor.u32 %v8396_v59, %v8394_v56  ;;  %v4161_v61 = vshll.u32 %v8462_v33, 16  ;;  %v8496_v36 = vld [vmem:[#allocation2 + $0x7c] sm:$0x1] }
 0x350   :  { %v3641_v32 = vshrl.u32 %v6367_v46, 16  ;;  %v3644_v37 = vshll.u32 %v6367_v46, 16  ;;  %v3625_v28 = vshrl.u32 %v6365_v27, 16  ;;  %v3628_v42 = vshll.u32 %v6365_v27, 16 }
 0x351   :  { %v3622_v47 = vor.u32 %v3620_v20, %v3619_v23  ;;  %v3623_v38 = vrot.slane %v3619_v23, 4  ;;  %6808 = vmatprep.mubr.bf16.mxu1 %v6183_v16  ;;  %v4159_v29 = vrot.slane %v4158_v30, 4  ;;  %v4163_v21 = vrot.slane %v4161_v61, 5  ;;  %v3923_v30 = vld [vmem:[#allocation2 + $0xa0] sm:$0xf] }
 0x352   :  { %v3643_v54 = vrot.slane %v3641_v32, 7  ;;  %v3627_v6 = vrot.slane %v3625_v28, 7  ;;  %v4172_v25 = vor.u32 %v8404_v51, %v8398_v0  ;;  %v4175_v56 = vshll.u32 %v8470_v8, 16 }
 0x353   :  { %v3880_v59 = vsel %vm7389_vm15, %v3622_v47, %v3879_v3  ;;  %v3883_v18 = vsel %vm7193_vm2, %v3623_v38, %v3882_v41  ;;  %v4164_v14 = vsel %vm7508_vm0, %v4159_v29, %v4163_v21  ;;  %v4236_v55 = vshrl.u32 %v3921_v22, 16  ;;  %v8512_v41 = vld [vmem:[#allocation2 + $0x84] sm:$0x1] }
 0x354   :  { %3881 = vst [vmem:[#allocation2 + $0xe0] sm:$0xf] %v3880_v59  ;;  %3884 = vst [vmem:[#allocation2 + $0xe4] sm:$0x1] %v3883_v18  ;;  %v3646_v48 = vor.u32 %v3644_v37, %v3643_v54  ;;  %v3647_v31 = vrot.slane %v3643_v54, 4  ;;  %v3630_v0 = vor.u32 %v3628_v42, %v3627_v6  ;;  %v3631_v51 = vrot.slane %v3627_v6, 4 }
 0x355   :  { %v4173_v2 = vrot.slane %v4172_v25, 4  ;;  %v4177_v26 = vrot.slane %v4175_v56, 5  ;;  %v8484_v40 = vrot.slane %v4236_v55, 4  ;;  %v4239_v13 = vshll.u32 %v3921_v22, 16  ;;  %v3924_v37 = vld [vmem:[#allocation2 + $0xa8] sm:$0xf] }
 0x356   :  { %v3898_v39 = vsel %vm7389_vm15, %v3646_v48, %v3897_v24  ;;  %v3901_v9 = vsel %vm7193_vm2, %v3647_v31, %v3900_v49  ;;  %v3886_v15 = vsel %vm7389_vm15, %v3630_v0, %v3885_v60  ;;  %v3889_v20 = vsel %vm7193_vm2, %v3631_v51, %v3888_v17  ;;  %v8514_v25 = vld [vmem:[#allocation2 + $0x8c] sm:$0x1]  ;;  %v3925_v18 = vld [vmem:[#allocation2 + $0xb0] sm:$0xf]  ;;  %v3926_v24 = vld [vmem:[#allocation2 + $0xb8] sm:$0xf] }
 0x357   :  { %3899 = vst [vmem:[#allocation2 + $0xf8] sm:$0xf] %v3898_v39  ;;  %3902 = vst [vmem:[#allocation2 + $0xfc] sm:$0x1] %v3901_v9  ;;  %v4178_v46 = vsel %vm7508_vm0, %v4173_v2, %v4177_v26  ;;  %v8500_v27 = vrot.slane %v4239_v13, 5  ;;  %v4250_v23 = vshrl.u32 %v3922_v52, 16  ;;  %v6184_v5 = vcombine.low %v3921_v22, %v3922_v52 }
 0x358   :  { %3887 = vst [vmem:[#allocation2 + $0xe8] sm:$0xf] %v3886_v15  ;;  %3890 = vst [vmem:[#allocation2 + $0xec] sm:$0x1] %v3889_v20  ;;  %v4253_v16 = vshll.u32 %v3922_v52, 16  ;;  %v6157_v61 = vcombine.low %v4164_v14, %v4178_v46  ;;  %v4186_v35 = vor.u32 %v8439_v1, %v8434_v10  ;;  %v4189_v32 = vshll.u32 %v8486_v19, 16 }
 0x359   :  { %v8505_v28 = vrot.slane %v4250_v23, 4  ;;  %v4200_v47 = vor.u32 %v8443_v34, %v8441_v50  ;;  %v4203_v38 = vshll.u32 %v8496_v36, 16  ;;  %6809 = vmatmul.mubr.bf16.gmra.mxu1 %v6184_v5  ;;  %v4264_v22 = vshrl.u32 %v3923_v30, 16  ;;  %v8534_v17 = vld [vmem:[#allocation2 + $0x94] sm:$0x1] }
 0x35a   :  { %v8507_v42 = vrot.slane %v4253_v16, 5  ;;  %6756 = vmatprep.mubr.bf16.mxu0 %v6157_v61  ;;  %v4187_v3 = vrot.slane %v4186_v35, 4  ;;  %v4191_v29 = vrot.slane %v4189_v32, 5  ;;  %v4267_v21 = vshll.u32 %v3923_v30, 16  ;;  %v8536_v39 = vld [vmem:[#allocation2 + $0x9c] sm:$0x1] }
 0x35b   :  { %v4201_v10 = vrot.slane %v4200_v47, 4  ;;  %v4205_v1 = vrot.slane %v4203_v38, 5  ;;  %v4278_v54 = vshrl.u32 %v3924_v37, 16  ;;  %v4281_v6 = vshll.u32 %v3924_v37, 16  ;;  %v3927_v20 = vld [vmem:[#allocation2 + $0xc0] sm:$0xf] }
 0x35c   :  { %v4192_v56 = vsel %vm7508_vm0, %v4187_v3, %v4191_v29  ;;  %v8518_v50 = vrot.slane %v4264_v22, 4  ;;  %v8520_v34 = vrot.slane %v4267_v21, 5  ;;  %v6185_v59 = vcombine.low %v3923_v30, %v3924_v37  ;;  %v3928_v16 = vld [vmem:[#allocation2 + $0xc8] sm:$0xf]  ;;  %v8556_v3 = vld [vmem:[#allocation2 + $0xa4] sm:$0x1] }
 0x35d   :  { %v4206_v49 = vsel %vm7508_vm0, %v4201_v10, %v4205_v1  ;;  %v8524_v60 = vrot.slane %v4278_v54, 4  ;;  %v8526_v14 = vrot.slane %v4281_v6, 5  ;;  %v4214_v55 = vor.u32 %v8464_v45, %v8456_v7  ;;  %v8558_v1 = vld [vmem:[#allocation2 + $0xac] sm:$0x1] }
 0x35e   :  { %v6158_v48 = vcombine.low %v4192_v56, %v4206_v49  ;;  %6812 = vmatprep.mubr.bf16.mxu1 %v6185_v59  ;;  %v4217_v31 = vshll.u32 %v8512_v41, 16  ;;  %v4228_v0 = vor.u32 %v8468_v44, %v8466_v53  ;;  %v4231_v51 = vshll.u32 %v8514_v25, 16  ;;  %v3929_v56 = vld [vmem:[#allocation2 + $0xd0] sm:$0xf] }
 0x35f   :  { %v4215_v52 = vrot.slane %v4214_v55, 4  ;;  %v4292_v2 = vshrl.u32 %v3925_v18, 16  ;;  %v4295_v26 = vshll.u32 %v3925_v18, 16  ;;  %v4306_v13 = vshrl.u32 %v3926_v24, 16 }
 0x360   :  { %6757 = vmatmul.mubr.bf16.gmra.mxu0 %v6158_v48  ;;  %v4219_v9 = vrot.slane %v4217_v31, 5  ;;  %v4229_v7 = vrot.slane %v4228_v0, 4  ;;  %v4233_v45 = vrot.slane %v4231_v51, 5  ;;  %v4309_v15 = vshll.u32 %v3926_v24, 16 }
 0x361   :  { %v8538_v46 = vrot.slane %v4292_v2, 4  ;;  %v8540_v23 = vrot.slane %v4295_v26, 5  ;;  %v8542_v53 = vrot.slane %v4306_v13, 4  ;;  %v6186_v44 = vcombine.low %v3925_v18, %v3926_v24  ;;  %v3930_v24 = vld [vmem:[#allocation2 + $0xd8] sm:$0xf] }
 0x362   :  { %v4220_v30 = vsel %vm7508_vm0, %v4215_v52, %v4219_v9  ;;  %v4234_v61 = vsel %vm7508_vm0, %v4229_v7, %v4233_v45  ;;  %v8548_v5 = vrot.slane %v4309_v15, 5  ;;  %v4242_v35 = vor.u32 %v8500_v27, %v8484_v40  ;;  %v8578_v26 = vld [vmem:[#allocation2 + $0xb4] sm:$0x1]  ;;  %v8580_v15 = vld [vmem:[#allocation2 + $0xbc] sm:$0x1] }
 0x363   :  { %v6159_v32 = vcombine.low %v4220_v30, %v4234_v61  ;;  %6813 = vmatmul.mubr.bf16.gmra.mxu1 %v6186_v44  ;;  %v4245_v37 = vshll.u32 %v8534_v17, 16  ;;  %v4256_v47 = vor.u32 %v8507_v42, %v8505_v28  ;;  %v4259_v38 = vshll.u32 %v8536_v39, 16 }
 0x364   :  { %v4243_v29 = vrot.slane %v4242_v35, 4  ;;  %v4320_v22 = vshrl.u32 %v3927_v20, 16  ;;  %v4323_v21 = vshll.u32 %v3927_v20, 16  ;;  %v4334_v10 = vshrl.u32 %v3928_v16, 16  ;;  %v3932_v35 = vld [vmem:[#allocation2 + $0xe8] sm:$0xf] }
 0x365   :  { %6760 = vmatprep.mubr.bf16.mxu0 %v6159_v32  ;;  %v4247_v54 = vrot.slane %v4245_v37, 5  ;;  %v4257_v40 = vrot.slane %v4256_v47, 4  ;;  %v4261_v27 = vrot.slane %v4259_v38, 5  ;;  %v4337_v6 = vshll.u32 %v3928_v16, 16 }
 0x366   :  { %v8560_v59 = vrot.slane %v4320_v22, 4  ;;  %v8562_v18 = vrot.slane %v4323_v21, 5  ;;  %v8564_v28 = vrot.slane %v4334_v10, 4  ;;  %v6187_v42 = vcombine.low %v3927_v20, %v3928_v16  ;;  %v3931_v16 = vld [vmem:[#allocation2 + $0xe0] sm:$0xf] }
 0x367   :  { %v4248_v49 = vsel %vm7508_vm0, %v4243_v29, %v4247_v54  ;;  %v4262_v55 = vsel %vm7508_vm0, %v4257_v40, %v4261_v27  ;;  %v8570_v48 = vrot.slane %v4337_v6, 5  ;;  %v4270_v31 = vor.u32 %v8520_v34, %v8518_v50  ;;  %v8600_v54 = vld [vmem:[#allocation2 + $0xc4] sm:$0x1] }
 0x368   :  { %v6160_v0 = vcombine.low %v4248_v49, %v4262_v55  ;;  %6816 = vmatprep.mubr.bf16.mxu1 %v6187_v42  ;;  %v4273_v51 = vshll.u32 %v8556_v3, 16  ;;  %v4284_v52 = vor.u32 %v8526_v14, %v8524_v60  ;;  %v4287_v2 = vshll.u32 %v8558_v1, 16  ;;  %v8602_v42 = vld [vmem:[#allocation2 + $0xcc] sm:$0x1]  ;;  %v3933_v55 = vld [vmem:[#allocation2 + $0xf0] sm:$0xf] }
 0x369   :  { %v4271_v13 = vrot.slane %v4270_v31, 4  ;;  %v4348_v9 = vshrl.u32 %v3929_v56, 16  ;;  %v4351_v7 = vshll.u32 %v3929_v56, 16  ;;  %v4362_v45 = vshrl.u32 %v3930_v24, 16 }
 0x36a   :  { %6761 = vmatmul.mubr.bf16.gmra.mxu0 %v6160_v0  ;;  %v4275_v20 = vrot.slane %v4273_v51, 5  ;;  %v4285_v50 = vrot.slane %v4284_v52, 4  ;;  %v4289_v34 = vrot.slane %v4287_v2, 5  ;;  %v4365_v44 = vshll.u32 %v3930_v24, 16 }
 0x36b   :  { %v8582_v30 = vrot.slane %v4348_v9, 4  ;;  %v8584_v61 = vrot.slane %v4351_v7, 5  ;;  %v8586_v60 = vrot.slane %v4362_v45, 4  ;;  %v6188_v14 = vcombine.low %v3929_v56, %v3930_v24 }
 0x36c   :  { %v4276_v32 = vsel %vm7508_vm0, %v4271_v13, %v4275_v20  ;;  %v4290_v37 = vsel %vm7508_vm0, %v4285_v50, %v4289_v34  ;;  %v8592_v47 = vrot.slane %v4365_v44, 5  ;;  %v4298_v38 = vor.u32 %v8540_v23, %v8538_v46 }
 0x36d   :  { %v6161_v29 = vcombine.low %v4276_v32, %v4290_v37  ;;  %6817 = vmatmul.mubr.bf16.gmra.mxu1 %v6188_v14  ;;  %v4301_v22 = vshll.u32 %v8578_v26, 16  ;;  %v4312_v21 = vor.u32 %v8548_v5, %v8542_v53  ;;  %v4315_v10 = vshll.u32 %v8580_v15, 16  ;;  %v3934_v5 = vld [vmem:[#allocation2 + $0xf8] sm:$0xf] }
 0x36e   :  { %v4299_v40 = vrot.slane %v4298_v38, 4  ;;  %v4376_v27 = vshrl.u32 %v3931_v16, 16  ;;  %v4379_v6 = vshll.u32 %v3931_v16, 16  ;;  %v4390_v56 = vshrl.u32 %v3932_v35, 16 }
 0x36f   :  { %6764 = vmatprep.mubr.bf16.mxu0 %v6161_v29  ;;  %v4303_v24 = vrot.slane %v4301_v22, 5  ;;  %v4313_v46 = vrot.slane %v4312_v21, 4  ;;  %v4317_v23 = vrot.slane %v4315_v10, 5  ;;  %v4393_v49 = vshll.u32 %v3932_v35, 16 }
 0x370   :  { %v4378_v31 = vrot.slane %v4376_v27, 4  ;;  %v4381_v0 = vrot.slane %v4379_v6, 5  ;;  %v4392_v51 = vrot.slane %v4390_v56, 4  ;;  %v6189_v53 = vcombine.low %v3931_v16, %v3932_v35  ;;  %v8614_v35 = vld [vmem:[#allocation2 + $0xd4] sm:$0x1] }
 0x371   :  { %v4304_v52 = vsel %vm7508_vm0, %v4299_v40, %v4303_v24  ;;  %v4318_v2 = vsel %vm7508_vm0, %v4313_v46, %v4317_v23  ;;  %v4395_v13 = vrot.slane %v4393_v49, 5  ;;  %v4326_v9 = vor.u32 %v8562_v18, %v8560_v59  ;;  %v8616_v18 = vld [vmem:[#allocation2 + $0xdc] sm:$0x1]  ;;  %v8626_v56 = vld [vmem:[#allocation2 + $0xec] sm:$0x1] }
 0x372   :  { %v6162_v7 = vcombine.low %v4304_v52, %v4318_v2  ;;  %6820 = vmatprep.mubr.bf16.mxu1 %v6189_v53  ;;  %v4329_v45 = vshll.u32 %v8600_v54, 16  ;;  %v4340_v20 = vor.u32 %v8570_v48, %v8564_v28  ;;  %v4343_v50 = vshll.u32 %v8602_v42, 16  ;;  %v8618_v28 = vld [vmem:[#allocation2 + $0xe4] sm:$0x1]  ;;  %v8633_v2 = vld [vmem:[#allocation2 + $0xf4] sm:$0x1] }
 0x373   :  { %v4327_v34 = vrot.slane %v4326_v9, 4  ;;  %v4404_v44 = vshrl.u32 %v3933_v55, 16  ;;  %v4407_v16 = vshll.u32 %v3933_v55, 16  ;;  %v4418_v14 = vshrl.u32 %v3934_v5, 16 }
 0x374   :  { %6765 = vmatmul.mubr.bf16.gmra.mxu0 %v6162_v7  ;;  %v4331_v32 = vrot.slane %v4329_v45, 5  ;;  %v4341_v37 = vrot.slane %v4340_v20, 4  ;;  %v4345_v38 = vrot.slane %v4343_v50, 5  ;;  %v4421_v59 = vshll.u32 %v3934_v5, 16  ;;  %v5025_v45 = vld [vmem:[#allocation2] sm:$0xe] }
 0x375   :  { %v4406_v29 = vrot.slane %v4404_v44, 4  ;;  %v4409_v22 = vrot.slane %v4407_v16, 5  ;;  %v4420_v21 = vrot.slane %v4418_v14, 4  ;;  %v6190_v10 = vcombine.low %v3933_v55, %v3934_v5  ;;  %v5026_v44 = vld [vmem:[#allocation2 + $0x8] sm:$0xe] }
 0x376   :  { %v4332_v48 = vsel %vm7508_vm0, %v4327_v34, %v4331_v32  ;;  %v4346_v40 = vsel %vm7508_vm0, %v4341_v37, %v4345_v38  ;;  %v4423_v27 = vrot.slane %v4421_v59, 5  ;;  %v4354_v6 = vor.u32 %v8584_v61, %v8582_v30  ;;  %v5027_v38 = vld [vmem:[#allocation2 + $0x10] sm:$0xe] }
 0x377   :  { %v6163_v24 = vcombine.low %v4332_v48, %v4346_v40  ;;  %6821 = vmatmul.mubr.bf16.gmra.mxu1 %v6190_v10  ;;  %v4357_v46 = vshll.u32 %v8614_v35, 16  ;;  %v4368_v23 = vor.u32 %v8592_v47, %v8586_v60  ;;  %v4371_v49 = vshll.u32 %v8616_v18, 16  ;;  %v8636_v60 = vld [vmem:[#allocation2 + $0xfc] sm:$0x1]  ;;  %v5028_v48 = vld [vmem:[#allocation2 + $0x18] sm:$0xe] }
 0x378   :  { %v4355_v55 = vrot.slane %v4354_v6, 4  ;;  %v4382_v53 = vor.u32 %v4381_v0, %v4378_v31  ;;  %v4385_v5 = vshll.u32 %v8618_v28, 16  ;;  %v4396_v52 = vor.u32 %v4395_v13, %v4392_v51 }
 0x379   :  { %6768 = vmatprep.mubr.bf16.mxu0 %v6163_v24  ;;  %v4359_v30 = vrot.slane %v4357_v46, 5  ;;  %v4369_v61 = vrot.slane %v4368_v23, 4  ;;  %v4373_v9 = vrot.slane %v4371_v49, 5  ;;  %v4399_v7 = vshll.u32 %v8626_v56, 16  ;;  %v6992_v24 = vld [vmem:[#allocation2 + $0x4] sm:$0x1] }
 0x37a   :  { %v4383_v20 = vrot.slane %v4382_v53, 4  ;;  %v4387_v50 = vrot.slane %v4385_v5, 5  ;;  %v4397_v34 = vrot.slane %v4396_v52, 4  ;;  %v4410_v47 = vor.u32 %v4409_v22, %v4406_v29  ;;  %v5029_v49 = vld [vmem:[#allocation2 + $0x20] sm:$0xe] }
 0x37b   :  { %v4360_v31 = vsel %vm7508_vm0, %v4355_v55, %v4359_v30  ;;  %v4374_v0 = vsel %vm7508_vm0, %v4369_v61, %v4373_v9  ;;  %v4401_v51 = vrot.slane %v4399_v7, 5  ;;  %v4413_v13 = vshll.u32 %v8633_v2, 16  ;;  %v6994_v61 = vld [vmem:[#allocation2 + $0x14] sm:$0x1] }
 0x37c   :  { %v6164_v16 = vcombine.low %v4360_v31, %v4374_v0  ;;  %v4388_v14 = vsel %vm7508_vm0, %v4383_v20, %v4387_v50  ;;  %v4411_v32 = vrot.slane %v4410_v47, 4  ;;  %v4424_v37 = vor.u32 %v4423_v27, %v4420_v21  ;;  %v6993_v27 = vld [vmem:[#allocation2 + $0xc] sm:$0x1]  ;;  %v5030_v50 = vld [vmem:[#allocation2 + $0x28] sm:$0xe] }
 0x37d   :  { %v4402_v59 = vsel %vm7508_vm0, %v4397_v34, %v4401_v51  ;;  %v4415_v29 = vrot.slane %v4413_v13, 5  ;;  %v4427_v22 = vshll.u32 %v8636_v60, 16  ;;  %v6199_v10 = vrot.slane %v5025_v45, 9  ;;  %v6995_v45 = vld [vmem:[#allocation2 + $0x1c] sm:$0x1] }
 0x37e   :  { %6769 = vmatmul.mubr.bf16.gmra.mxu0 %v6164_v16  ;;  %v6165_v40 = vcombine.low %v4388_v14, %v4402_v59  ;;  %v4425_v6 = vrot.slane %v4424_v37, 4  ;;  %v5123_v46 = vrot.slane %v6992_v24, 5  ;;  %v6200_v23 = vrot.slane %v5026_v44, 9  ;;  %v6996_v0 = vld [vmem:[#allocation2 + $0x24] sm:$0x1] }
 0x37f   :  { %v4416_v55 = vsel %vm7508_vm0, %v4411_v32, %v4415_v29  ;;  %v4429_v21 = vrot.slane %v4427_v22, 5  ;;  %v5127_v53 = vrot.slane %v6993_v27, 5  ;;  %v6201_v5 = vrot.slane %v5027_v38, 9  ;;  %v5031_v13 = vld [vmem:[#allocation2 + $0x30] sm:$0xe] }
 0x380   :  { %6772 = vmatprep.mubr.bf16.mxu0 %v6165_v40  ;;  %v5124_v30 = vsel %vm7906_vm6, %v6199_v10, %v5123_v46  ;;  %v5131_v9 = vrot.slane %v6994_v61, 5  ;;  %v6202_v7 = vrot.slane %v5028_v48, 9  ;;  %v5135_v20 = vrot.slane %v6995_v45, 5  ;;  %v5032_v44 = vld [vmem:[#allocation2 + $0x38] sm:$0xe] }
 0x381   :  { %v4430_v34 = vsel %vm7508_vm0, %v4425_v6, %v4429_v21  ;;  %v5128_v47 = vsel %vm7906_vm6, %v6200_v23, %v5127_v53  ;;  %v6203_v31 = vrot.slane %v5029_v49, 9  ;;  %v5139_v51 = vrot.slane %v6996_v0, 5  ;;  %v5033_v38 = vld [vmem:[#allocation2 + $0x40] sm:$0xe]  ;;  %v5034_v59 = vld [vmem:[#allocation2 + $0x48] sm:$0xe] }
 0x382   :  { %v6166_v16 = vcombine.low %v4416_v55, %v4430_v34  ;;  %v6231_v14 = vcombine.low %v5124_v30, %v5128_v47  ;;  %v5132_v32 = vsel %vm7906_vm6, %v6201_v5, %v5131_v9  ;;  %v5136_v37 = vsel %vm7906_vm6, %v6202_v7, %v5135_v20  ;;  %v5035_v48 = vld [vmem:[#allocation2 + $0x50] sm:$0xe]  ;;  %v5036_v23 = vld [vmem:[#allocation2 + $0x58] sm:$0xe]  ;;  %v5037_v53 = vld [vmem:[#allocation2 + $0x60] sm:$0xe] }
 0x383   :  { %v6232_v58 = vcombine.low %v5132_v32, %v5136_v37  ;;  %v8662_v29 = vsel %vm7906_vm6, %v6203_v31, %v5139_v51  ;;  %v6204_v22 = vrot.slane %v5030_v50, 9  ;;  %v5143_v10 = vrot.slane %v8338_v57, 5  ;;  %v5038_v30 = vld [vmem:[#allocation2 + $0x68] sm:$0xe]  ;;  %v5039_v45 = vld [vmem:[#allocation2 + $0x70] sm:$0xe] }
 0x384   :  { %v6205_v40 = vrot.slane %v5031_v13, 9  ;;  %v5147_v6 = vrot.slane %v8355_v4, 5  ;;  %v6206_v24 = vrot.slane %v5032_v44, 9  ;;  %v5151_v46 = vrot.slane %v8361_v63, 5  ;;  %v5040_v47 = vld [vmem:[#allocation2 + $0x78] sm:$0xe] }
 0x385   :  { %v5144_v49 = vsel %vm7906_vm6, %v6204_v22, %v5143_v10  ;;  %v6207_v55 = vrot.slane %v5033_v38, 9  ;;  %v5155_v21 = vrot.slane %v8402_v62, 5  ;;  %v6208_v27 = vrot.slane %v5034_v59, 9  ;;  %v5041_v13 = vld [vmem:[#allocation2 + $0x80] sm:$0xe] }
 0x386   :  { %6773 = vmatmul.mubr.bf16.gmra.mxu0 %v6166_v16  ;;  %v6233_v5 = vcombine.low %v8662_v29, %v5144_v49  ;;  %v8673_v57 = vsel %vm7906_vm6, %v6205_v40, %v5147_v6  ;;  %v8677_v4 = vsel %vm7906_vm6, %v6206_v24, %v5151_v46  ;;  %v5159_v63 = vrot.slane %v8406_v43, 5  ;;  %v5042_v32 = vld [vmem:[#allocation2 + $0x88] sm:$0xe]  ;;  %v5043_v29 = vld [vmem:[#allocation2 + $0x90] sm:$0xe] }
 0x387   :  { %6840 = vmatprep.mubr.bf16.mxu0 %v6231_v14  ;;  %v6234_v62 = vcombine.low %v8673_v57, %v8677_v4  ;;  %v8684_v61 = vsel %vm7906_vm6, %v6207_v55, %v5155_v21  ;;  %v6209_v9 = vrot.slane %v5035_v48, 9  ;;  %v5163_v7 = vrot.slane %v8430_v11, 5  ;;  %v5044_v48 = vld [vmem:[#allocation2 + $0x98] sm:$0xe]  ;;  %v5045_v40 = vld [vmem:[#allocation2 + $0xa0] sm:$0xe] }
 0x388   :  { %v8689_v20 = vsel %vm7906_vm6, %v6208_v27, %v5159_v63  ;;  %v6210_v50 = vrot.slane %v5036_v23, 9  ;;  %v5167_v43 = vrot.slane %v8437_v12, 5  ;;  %v6211_v34 = vrot.slane %v5037_v53, 9  ;;  %v5046_v23 = vld [vmem:[#allocation2 + $0xa8] sm:$0xe] }
 0x389   :  { %v6235_v31 = vcombine.low %v8684_v61, %v8689_v20  ;;  %v8696_v0 = vsel %vm7906_vm6, %v6209_v9, %v5163_v7  ;;  %v5171_v51 = vrot.slane %v8462_v33, 5  ;;  %v6212_v11 = vrot.slane %v5038_v30, 9  ;;  %v5047_v27 = vld [vmem:[#allocation2 + $0xb0] sm:$0xe]  ;;  %v5048_v30 = vld [vmem:[#allocation2 + $0xb8] sm:$0xe] }
 0x38a   :  { %v8701_v44 = vsel %vm7906_vm6, %v6210_v50, %v5167_v43  ;;  %v5175_v16 = vrot.slane %v8470_v8, 5  ;;  %v6213_v12 = vrot.slane %v5039_v45, 9  ;;  %v5179_v14 = vrot.slane %v8486_v19, 5  ;;  %v5049_v50 = vld [vmem:[#allocation2 + $0xc0] sm:$0xe] }
 0x38b   :  { %v6236_v37 = vcombine.low %v8696_v0, %v8701_v44  ;;  %v8709_v38 = vsel %vm7906_vm6, %v6211_v34, %v5171_v51  ;;  %v6214_v33 = vrot.slane %v5040_v47, 9  ;;  %v5183_v59 = vrot.slane %v8496_v36, 5  ;;  %v5050_v47 = vld [vmem:[#allocation2 + $0xc8] sm:$0xe] }
 0x38c   :  { %v8714_v22 = vsel %vm7906_vm6, %v6212_v11, %v5175_v16  ;;  %v8718_v8 = vsel %vm7906_vm6, %v6213_v12, %v5179_v14  ;;  %v6215_v19 = vrot.slane %v5041_v13, 9  ;;  %v5187_v10 = vrot.slane %v8512_v41, 5  ;;  %v5051_v12 = vld [vmem:[#allocation2 + $0xd0] sm:$0xe] }
 0x38d   :  { %v6237_v6 = vcombine.low %v8709_v38, %v8714_v22  ;;  %v8725_v36 = vsel %vm7906_vm6, %v6214_v33, %v5183_v59  ;;  %v6216_v24 = vrot.slane %v5042_v32, 9  ;;  %v5191_v46 = vrot.slane %v8514_v25, 5  ;;  %v5052_v33 = vld [vmem:[#allocation2 + $0xd8] sm:$0xe] }
 0x38e   :  { %6841 = vmatmul.mubr.bf16.vlgmr.msra.gmra.mxu0 %v6232_v58  ;;  %v6238_v49 = vcombine.low %v8718_v8, %v8725_v36  ;;  %v8732_v41 = vsel %vm7906_vm6, %v6215_v19, %v5187_v10  ;;  %v6217_v55 = vrot.slane %v5043_v29, 9  ;;  %v5195_v21 = vrot.slane %v8534_v17, 5 }
 0x38f   :  { %6844 = vmatprep.mubr.bf16.mxu0 %v6233_v5  ;;  %v8737_v53 = vsel %vm7906_vm6, %v6216_v24, %v5191_v46  ;;  %v6218_v63 = vrot.slane %v5044_v48, 9  ;;  %v5199_v25 = vrot.slane %v8536_v39, 5  ;;  %v6219_v58 = vrot.slane %v5045_v40, 9 }
 0x390   :  { %v6239_v9 = vcombine.low %v8732_v41, %v8737_v53  ;;  %v5196_v7 = vsel %vm7906_vm6, %v6217_v55, %v5195_v21  ;;  %v5203_v45 = vrot.slane %v8556_v3, 5  ;;  %v6220_v17 = vrot.slane %v5046_v23, 9  ;;  %v5055_v23 = vld [vmem:[#allocation2 + $0xf0] sm:$0xe]  ;;  %v5056_v21 = vld [vmem:[#allocation2 + $0xf8] sm:$0xe] }
 0x391   :  { %v5200_v5 = vsel %vm7906_vm6, %v6218_v63, %v5199_v25  ;;  %v5207_v43 = vrot.slane %v8558_v1, 5  ;;  %v6221_v34 = vrot.slane %v5047_v27, 9  ;;  %v5211_v39 = vrot.slane %v8578_v26, 5  ;;  %v5053_v26 = vld [vmem:[#allocation2 + $0xe0] sm:$0xe] }
 0x392   :  { %v6240_v51 = vcombine.low %v5196_v7, %v5200_v5  ;;  %v5204_v11 = vsel %vm7906_vm6, %v6219_v58, %v5203_v45  ;;  %v6222_v13 = vrot.slane %v5048_v30, 9  ;;  %v5215_v16 = vrot.slane %v8580_v15, 5  ;;  %v5054_v15 = vld [vmem:[#allocation2 + $0xe8] sm:$0xe] }
 0x393   :  { %v5208_v3 = vsel %vm7906_vm6, %v6220_v17, %v5207_v43  ;;  %v5212_v14 = vsel %vm7906_vm6, %v6221_v34, %v5211_v39  ;;  %v6223_v32 = vrot.slane %v5049_v50, 9  ;;  %v5219_v1 = vrot.slane %v8600_v54, 5 }
 0x394   :  { %v6241_v59 = vcombine.low %v5204_v11, %v5208_v3  ;;  %v5216_v29 = vsel %vm7906_vm6, %v6222_v13, %v5215_v16  ;;  %v6224_v19 = vrot.slane %v5050_v47, 9  ;;  %v5223_v10 = vrot.slane %v8602_v42, 5 }
 0x395   :  { %v6242_v48 = vcombine.low %v5212_v14, %v5216_v29  ;;  %v5220_v40 = vsel %vm7906_vm6, %v6223_v32, %v5219_v1  ;;  %v6225_v24 = vrot.slane %v5051_v12, 9  ;;  %v5227_v46 = vrot.slane %v8614_v35, 5 }
 0x396   :  { %6845 = vmatmul.mubr.bf16.gmra.mxu0 %v6234_v62  ;;  %v5224_v54 = vsel %vm7906_vm6, %v6224_v19, %v5223_v10  ;;  %v6226_v41 = vrot.slane %v5052_v33, 9  ;;  %v5231_v55 = vrot.slane %v8616_v18, 5  ;;  %v6227_v42 = vrot.slane %v5053_v26, 9 }
 0x397   :  { %6848 = vmatprep.mubr.bf16.mxu0 %v6235_v31  ;;  %v6243_v27 = vcombine.low %v5220_v40, %v5224_v54  ;;  %v5228_v35 = vsel %vm7906_vm6, %v6225_v24, %v5227_v46  ;;  %v5235_v53 = vrot.slane %v8618_v28, 5  ;;  %v6228_v57 = vrot.slane %v5054_v15, 9 }
 0x398   :  { %v5232_v4 = vsel %vm7906_vm6, %v6226_v41, %v5231_v55  ;;  %v5239_v62 = vrot.slane %v8626_v56, 5  ;;  %v6229_v63 = vrot.slane %v5055_v23, 9  ;;  %v5243_v18 = vrot.slane %v8633_v2, 5 }
 0x399   :  { %v6244_v25 = vcombine.low %v5228_v35, %v5232_v4  ;;  %v6230_v58 = vrot.slane %v5056_v21, 9  ;;  %v5247_v61 = vrot.slane %v8636_v60, 5  ;;  %v5236_v20 = vsel %vm7906_vm6, %v6227_v42, %v5235_v53 }
 0x39a   :  { %v5240_v31 = vsel %vm7906_vm6, %v6228_v57, %v5239_v62  ;;  %v5244_v30 = vsel %vm7906_vm6, %v6229_v63, %v5243_v18  ;;  %vm5865_vm2 = vcmask 1041409  }
 0x39b   :  { %v6245_v28 = vcombine.low %v5236_v20, %v5240_v31  ;;  %v5248_v56 = vsel %vm7906_vm6, %v6230_v58, %v5247_v61  ;;  %v8820_v20 = vld [vmem:[%s8999_s5] ss:$0 sm:$0xff]  ;;  %s7089_s5 = smov [#allocation9]  }
 0x39c   :  { %v6246_v7 = vcombine.low %v5244_v30, %v5248_v56  ;;  %s5913_s23 = sshll.u32 %s7089_s5, 4  ;;  %s5914_s23 = int_to_ptr.vmem [resolvable:$true] %s5913_s23 }
 0x39d   :  { %s7057_s24 = scalar_lea.vmem %s5914_s23, 512  ;;  %p7062_p2 = scmp.lt.s32.totalorder %s5914_s23, %s5914_s23 }
 0x39e   :  { %6849 = vmatmul.mubr.bf16.gmra.mxu0 %v6236_v37  ;;  %p7058_p1 = scmp.ne.s32.totalorder %s5914_s23, %s7057_s24  ;;  %p7063_p3 = scmp.lt.s32.totalorder %s7057_s24, %s7057_s24 }
 0x39f   :  { %6852 = vmatprep.mubr.bf16.mxu0 %v6237_v6 }
 0x3a0   :  { %p7064_p4 = por %p7063_p3, %p7062_p2 }
 0x3a2   :  { %p7065_p5 = pnand %p7064_p4, %p7058_p1 }
 0x3a6   :  { %6853 = vmatmul.mubr.bf16.gmra.mxu0 %v6238_v49 }
 0x3a7   :  { %6856 = vmatprep.mubr.bf16.mxu0 %v6239_v9 }
 0x3ae   :  { %6857 = vmatmul.mubr.bf16.gmra.mxu0 %v6240_v51 }
 0x3af   :  { %6860 = vmatprep.mubr.bf16.mxu0 %v6241_v59 }
 0x3b6   :  { %6861 = vmatmul.mubr.bf16.gmra.mxu0 %v6242_v48 }
 0x3b7   :  { %6864 = vmatprep.mubr.bf16.mxu0 %v6243_v27 }
 0x3be   :  { %6865 = vmatmul.mubr.bf16.gmra.mxu0 %v6244_v25 }
 0x3bf   :  { %6868 = vmatprep.mubr.bf16.mxu0 %v6245_v28 }
 0x3c6   :  { %6869 = vmatmul.mubr.bf16.gmra.mxu0 %v6246_v7 }
 0x3c7   :  { %v6794_v2 = vpop.f32.mrf.mxu1 }
 0x3c9   :  { %v4898_v52 = vpop.f32.mrf.mxu1 }
 0x3cb   :  { %v6795_v44 = vpop.f32.mrf.mxu1 }
 0x3cd   :  { %v4901_v38 = vpop.f32.mrf.mxu1 }
 0x3dd   :  { %v6798_v6 = vpop.f32.mrf.mxu1 }
 0x3df   :  { %v4914_v8 = vpop.f32.mrf.mxu1 }
 0x3e1   :  { %v6799_v49 = vpop.f32.mrf.mxu1 }
 0x3e3   :  { %v4917_v17 = vpop.f32.mrf.mxu1 }
 0x3e4   :  { %v6746_v60 = vpop.f32.mrf.mxu0 }
 0x3e5   :  { %v4907_v58 = vadd.f32 %v6794_v2, %v6746_v60 }
 0x3e6   :  { %v4593_v0 = vpop.f32.mrf.mxu0 }
 0x3e7   :  { %v4899_v31 = vadd.f32 %v4898_v52, %v4593_v0 }
 0x3e8   :  { %v6747_v37 = vpop.f32.mrf.mxu0 }
 0x3e9   :  { %v4910_v30 = vadd.f32 %v6795_v44, %v6747_v37 }
 0x3ea   :  { %v4596_v22 = vpop.f32.mrf.mxu0 }
 0x3eb   :  { %v4902_v56 = vadd.f32 %v4901_v38, %v4596_v22 }
 0x3f0   :  { %v6802_v5 = vpop.f32.mrf.mxu1 }
 0x3f2   :  { %v4930_v34 = vpop.f32.mrf.mxu1 }
 0x3f4   :  { %v6803_v47 = vpop.f32.mrf.mxu1 }
 0x3f6   :  { %v4933_v11 = vpop.f32.mrf.mxu1 }
 0x3fa   :  { %v6750_v45 = vpop.f32.mrf.mxu0 }
 0x3fc   :  { %v4609_v36 = vpop.f32.mrf.mxu0 }
 0x3fe   :  { %v6751_v9 = vpop.f32.mrf.mxu0 }
 0x400   :  { %v4612_v50 = vpop.f32.mrf.mxu0 }
 0x406   :  { %v6806_v16 = vpop.f32.mrf.mxu1 }
 0x408   :  { %v4946_v14 = vpop.f32.mrf.mxu1 }
 0x40a   :  { %v6807_v33 = vpop.f32.mrf.mxu1 }
 0x40c   :  { %v4949_v59 = vpop.f32.mrf.mxu1 }
 0x40f   :  { %v6754_v43 = vpop.f32.mrf.mxu0 }
 0x410   :  { %v8823_v2 = vadd.f32 %v6802_v5, %v6754_v43 }
 0x411   :  { %v4625_v39 = vpop.f32.mrf.mxu0 }
 0x412   :  { %v8825_v60 = vadd.f32 %v4930_v34, %v4625_v39 }
 0x413   :  { %v6755_v51 = vpop.f32.mrf.mxu0 }
 0x415   :  { %v4628_v13 = vpop.f32.mrf.mxu0 }
 0x416   :  { %v8830_v37 = vadd.f32 %v4933_v11, %v4628_v13 }
 0x419   :  { %v6810_v10 = vpop.f32.mrf.mxu1 }
 0x41b   :  { %v4962_v48 = vpop.f32.mrf.mxu1 }
 0x41d   :  { %v6811_v46 = vpop.f32.mrf.mxu1 }
 0x41f   :  { %v4965_v41 = vpop.f32.mrf.mxu1 }
 0x420   :  { %v6758_v12 = vpop.f32.mrf.mxu0 }
 0x421   :  { %v8832_v38 = vadd.f32 %v6806_v16, %v6758_v12 }
 0x422   :  { %v4641_v3 = vpop.f32.mrf.mxu0 }
 0x423   :  { %v6814_v42 = vpop.f32.mrf.mxu1  ;;  %v8834_v22 = vadd.f32 %v4946_v14, %v4641_v3 }
 0x424   :  { %v6759_v32 = vpop.f32.mrf.mxu0 }
 0x425   :  { %v4978_v35 = vpop.f32.mrf.mxu1 }
 0x426   :  { %v4644_v1 = vpop.f32.mrf.mxu0 }
 0x427   :  { %v6815_v4 = vpop.f32.mrf.mxu1 }
 0x429   :  { %v4981_v18 = vpop.f32.mrf.mxu1 }
 0x42a   :  { %v6762_v26 = vpop.f32.mrf.mxu0 }
 0x42b   :  { %v8841_v5 = vadd.f32 %v6810_v10, %v6762_v26 }
 0x42c   :  { %v4657_v29 = vpop.f32.mrf.mxu0 }
 0x42d   :  { %v6818_v7 = vpop.f32.mrf.mxu1  ;;  %v8843_v43 = vadd.f32 %v4962_v48, %v4657_v29 }
 0x42e   :  { %v6763_v19 = vpop.f32.mrf.mxu0 }
 0x42f   :  { %v8845_v34 = vadd.f32 %v6811_v46, %v6763_v19 }
 0x430   :  { %v4660_v15 = vpop.f32.mrf.mxu0 }
 0x431   :  { %v8848_v16 = vadd.f32 %v4965_v41, %v4660_v15 }
 0x434   :  { %v6766_v40 = vpop.f32.mrf.mxu0 }
 0x435   :  { %v8850_v12 = vadd.f32 %v6814_v42, %v6766_v40 }
 0x436   :  { %v4673_v24 = vpop.f32.mrf.mxu0 }
 0x437   :  { %v8852_v3 = vadd.f32 %v4978_v35, %v4673_v24 }
 0x438   :  { %v8797_v23 = vpop.f32.mrf.mxu0 }
 0x439   :  { %v8855_v19 = vadd.f32 %v6815_v4, %v8797_v23 }
 0x43a   :  { %v8799_v54 = vpop.f32.mrf.mxu0 }
 0x43b   :  { %9042 = vst [vmem:[#allocation17_spill] sm:$0xff] %v8799_v54  ;;  %v8827_v54 = vadd.f32 %v6803_v47, %v6755_v51 }
 0x43e   :  { %v8801_v55 = vpop.f32.mrf.mxu0 }
 0x43f   :  { %9043 = vst [vmem:[#allocation18_spill] sm:$0xff] %v8801_v55 }
 0x440   :  { %v8803_v21 = vpop.f32.mrf.mxu0 }
 0x441   :  { %9044 = vst [vmem:[#allocation19_spill] sm:$0xff] %v8803_v21  ;;  %v4926_v21 = vadd.f32 %v6799_v49, %v6751_v9 }
 0x442   :  { %v8805_v27 = vpop.f32.mrf.mxu0  ;;  %v9051_v10 = vld [vmem:[#allocation17_spill] sm:$0xff] }
 0x443   :  { %9045 = vst [vmem:[#allocation20_spill] sm:$0xff] %v8805_v27  ;;  %v8858_v48 = vadd.f32 %v4981_v18, %v9051_v10 }
 0x444   :  { %v8807_v53 = vpop.f32.mrf.mxu0 }
 0x445   :  { %9046 = vst [vmem:[#allocation21_spill] sm:$0xff] %v8807_v53  ;;  %v4923_v53 = vadd.f32 %v6798_v6, %v6750_v45  ;;  %v8836_v6 = vadd.f32 %v6807_v33, %v6759_v32  ;;  %v4994_v45 = vpop.f32.mrf.mxu1 }
 0x446   :  { %v8809_v57 = vpop.f32.mrf.mxu0  ;;  %v9052_v35 = vld [vmem:[#allocation18_spill] sm:$0xff] }
 0x447   :  { %9047 = vst [vmem:[#allocation14_spill] sm:$0xff] %v8809_v57  ;;  %v6819_v14 = vpop.f32.mrf.mxu1 }
 0x448   :  { %v8811_v62 = vpop.f32.mrf.mxu0  ;;  %v9053_v18 = vld [vmem:[#allocation19_spill] sm:$0xff] }
 0x449   :  { %9048 = vst [vmem:[#allocation13_spill] sm:$0xff] %v8811_v62  ;;  %v4915_v62 = vadd.f32 %v4914_v8, %v4609_v36 }
 0x44a   :  { %v8813_v63 = vpop.f32.mrf.mxu0 }
 0x44b   :  { %9049 = vst [vmem:[#allocation23_spill] sm:$0xff] %v8813_v63 }
 0x44c   :  { %v8815_v25 = vpop.f32.mrf.mxu0 }
 0x44d   :  { %9050 = vst [vmem:[#allocation15_spill] sm:$0xff] %v8815_v25  ;;  %v4918_v25 = vadd.f32 %v4917_v17, %v4612_v50  ;;  %v8839_v50 = vadd.f32 %v4949_v59, %v4644_v1 }
 0x44e   :  { %v6842_v61 = vpop.f32.mrf.mxu0 }
 0x44f   :  { %v5540_v28 = vadd.f32 %v6842_v61, %v4907_v58  ;;  %v8866_v58 = vadd.f32 %v4994_v45, %v9053_v18 }
 0x450   :  { %v5411_v57 = vpop.f32.mrf.mxu0 }
 0x451   :  { %v5579_v63 = vadd.f32 %v8820_v20, %v5540_v28  ;;  %v5538_v27 = vadd.f32 %v5411_v57, %v4899_v31  ;;  %v9054_v28 = vld [vmem:[#allocation20_spill] sm:$0xff] }
 0x452   :  { %v6843_v55 = vpop.f32.mrf.mxu0 }
 0x453   :  { %v5611_v52 = vmax.f32 %v5579_v63, 0.0  ;;  %v5577_v0 = vadd.f32 %v8820_v20, %v5538_v27  ;;  %v5541_v44 = vadd.f32 %v6843_v55, %v4910_v30  ;;  %v4997_v27 = vpop.f32.mrf.mxu1  ;;  %v8869_v30 = vadd.f32 %v6819_v14, %v9054_v28 }
 0x454   :  { %v5414_v8 = vpop.f32.mrf.mxu0 }
 0x455   :  { %v5653_v36 = vrot.slane %v5611_v52, 4  ;;  %v5609_v49 = vmax.f32 %v5577_v0, 0.0  ;;  %v5580_v9 = vadd.f32 %v8820_v20, %v5541_v44  ;;  %v5539_v17 = vadd.f32 %v5414_v8, %v4902_v56  ;;  %v6822_v45 = vpop.f32.mrf.mxu1 }
 0x456   :  { %v6846_v39 = vpop.f32.mrf.mxu0 }
 0x457   :  { %v5654_v47 = vmax.f32 %v5611_v52, %v5653_v36  ;;  %v5641_v51 = vrot.slane %v5609_v49, 4  ;;  %v5612_v11 = vmax.f32 %v5580_v9, 0.0  ;;  %v5578_v13 = vadd.f32 %v8820_v20, %v5539_v17  ;;  %v5010_v28 = vpop.f32.mrf.mxu1 }
 0x458   :  { %v5544_v32 = vadd.f32 %v6846_v39, %v4923_v53  ;;  %v5427_v1 = vpop.f32.mrf.mxu0  ;;  %v8862_v53 = vadd.f32 %v6818_v7, %v9052_v35 }
 0x459   :  { %v5655_v33 = vrot.slane %v5654_v47, 2  ;;  %v5642_v26 = vmax.f32 %v5609_v49, %v5641_v51  ;;  %v5659_v59 = vrot.slane %v5612_v11, 4  ;;  %v5610_v29 = vmax.f32 %v5578_v13, 0.0  ;;  %v9055_v51 = vld [vmem:[#allocation21_spill] sm:$0xff]  ;;  %v9056_v13 = vld [vmem:[#allocation14_spill] sm:$0xff] }
 0x45a   :  { %v5583_v15 = vadd.f32 %v8820_v20, %v5544_v32  ;;  %v5542_v46 = vadd.f32 %v5427_v1, %v4915_v62  ;;  %v6847_v40 = vpop.f32.mrf.mxu0  ;;  %v8879_v14 = vadd.f32 %v6822_v45, %v9056_v13 }
 0x45b   :  { %v5656_v41 = vmax.f32 %v5654_v47, %v5655_v33  ;;  %v5643_v24 = vrot.slane %v5642_v26, 2  ;;  %v5660_v55 = vmax.f32 %v5612_v11, %v5659_v59  ;;  %v5647_v42 = vrot.slane %v5610_v29, 4 }
 0x45c   :  { %v5615_v57 = vmax.f32 %v5583_v15, 0.0  ;;  %v5581_v23 = vadd.f32 %v8820_v20, %v5542_v46  ;;  %v5545_v4 = vadd.f32 %v6847_v40, %v4926_v21  ;;  %v5430_v63 = vpop.f32.mrf.mxu0  ;;  %v8876_v11 = vadd.f32 %v4997_v27, %v9055_v51 }
 0x45d   :  { %v5644_v61 = vmax.f32 %v5642_v26, %v5643_v24  ;;  %v5661_v62 = vrot.slane %v5660_v55, 2  ;;  %v5648_v31 = vmax.f32 %v5610_v29, %v5647_v42  ;;  %v5543_v7 = vadd.f32 %v5430_v63, %v4918_v25 }
 0x45e   :  { %v5677_v56 = vrot.slane %v5615_v57, 4  ;;  %v5613_v52 = vmax.f32 %v5581_v23, 0.0  ;;  %v6850_v0 = vpop.f32.mrf.mxu0  ;;  %v5657_v44 = vrot.slane %v5656_v41, 1  ;;  %v8872_v21 = vadd.f32 %v8820_v20, %v5545_v4 }
 0x45f   :  { %v5662_v8 = vmax.f32 %v5660_v55, %v5661_v62  ;;  %v5649_v36 = vrot.slane %v5648_v31, 2  ;;  %v5645_v49 = vrot.slane %v5644_v61, 1  ;;  %v5582_v39 = vadd.f32 %v8820_v20, %v5543_v7  ;;  %v9057_v7 = vld [vmem:[#allocation13_spill] sm:$0xff] }
 0x460   :  { %v5678_v9 = vmax.f32 %v5615_v57, %v5677_v56  ;;  %v5665_v17 = vrot.slane %v5613_v52, 4  ;;  %v5443_v47 = vpop.f32.mrf.mxu0  ;;  %v5548_v32 = vadd.f32 %v6850_v0, %v8823_v2  ;;  %v5658_v10 = vmax.f32 %v5656_v41, %v5657_v44 }
 0x461   :  { %v5650_v25 = vmax.f32 %v5648_v31, %v5649_v36  ;;  %v5663_v1 = vrot.slane %v5662_v8, 1  ;;  %v5614_v59 = vmax.f32 %v5582_v39, 0.0  ;;  %v5546_v40 = vadd.f32 %v5443_v47, %v8825_v60 }
 0x462   :  { %v5679_v33 = vrot.slane %v5678_v9, 2  ;;  %v5666_v26 = vmax.f32 %v5613_v52, %v5665_v17  ;;  %v6851_v29 = vpop.f32.mrf.mxu0  ;;  %v5587_v46 = vadd.f32 %v8820_v20, %v5548_v32  ;;  %v5646_v24 = vmax.f32 %v5644_v61, %v5645_v49 }
 0x463   :  { %v5651_v15 = vrot.slane %v5650_v25, 1  ;;  %v5616_v42 = vmax.f32 %v8872_v21, 0.0  ;;  %v5671_v27 = vrot.slane %v5614_v59, 4  ;;  %v5585_v2 = vadd.f32 %v8820_v20, %v5546_v40 }
 0x464   :  { %v5667_v55 = vrot.slane %v5666_v26, 2  ;;  %v5446_v35 = vpop.f32.mrf.mxu0  ;;  %v5619_v23 = vmax.f32 %v5587_v46, 0.0  ;;  %v5549_v4 = vadd.f32 %v6851_v29, %v8827_v54  ;;  %v5664_v63 = vmax.f32 %v5662_v8, %v5663_v1 }
 0x465   :  { %v5652_v57 = vmax.f32 %v5650_v25, %v5651_v15  ;;  %v5680_v18 = vmax.f32 %v5678_v9, %v5679_v33  ;;  %v5672_v62 = vmax.f32 %v5614_v59, %v5671_v27  ;;  %v5617_v56 = vmax.f32 %v5585_v2, 0.0  ;;  %v6823_v25 = vpop.f32.mrf.mxu1  ;;  %v9058_v59 = vld [vmem:[#allocation23_spill] sm:$0xff] }
 0x466   :  { %v5668_v41 = vmax.f32 %v5666_v26, %v5667_v55  ;;  %v6854_v31 = vpop.f32.mrf.mxu0  ;;  %v5701_v61 = vrot.slane %v5619_v23, 4  ;;  %v5588_v52 = vadd.f32 %v8820_v20, %v5549_v4  ;;  %v8890_v0 = vadd.f32 %v5010_v28, %v9057_v7 }
 0x467   :  { %v5866_v60 = vsel %vm5865_vm2, %v5652_v57, %v5646_v24  ;;  %v5683_v8 = vrot.slane %v5616_v42, 4  ;;  %v5673_v45 = vrot.slane %v5672_v62, 2  ;;  %v5689_v9 = vrot.slane %v5617_v56, 4 }
 0x468   :  { %v5868_v44 = vsel %vm5867_vm7, %v5658_v10, %v5866_v60  ;;  %v5669_v54 = vrot.slane %v5668_v41, 1  ;;  %v5459_v36 = vpop.f32.mrf.mxu0  ;;  %v5702_v49 = vmax.f32 %v5619_v23, %v5701_v61  ;;  %v5681_v17 = vrot.slane %v5680_v18, 1 }
 0x469   :  { %v5870_v21 = vsel %vm5869_vm8, %v5664_v63, %v5868_v44  ;;  %v5620_v47 = vmax.f32 %v5588_v52, 0.0  ;;  %v5547_v51 = vadd.f32 %v5446_v35, %v8830_v37  ;;  %v5674_v32 = vmax.f32 %v5672_v62, %v5673_v45 }
 0x46a   :  { %v5670_v39 = vmax.f32 %v5668_v41, %v5669_v54  ;;  %v6855_v13 = vpop.f32.mrf.mxu0  ;;  %v5703_v1 = vrot.slane %v5702_v49, 2  ;;  %v5690_v33 = vmax.f32 %v5617_v56, %v5689_v9  ;;  %v5552_v26 = vadd.f32 %v6854_v31, %v8832_v38  ;;  %v5013_v54 = vpop.f32.mrf.mxu1 }
 0x46b   :  { %v8897_v29 = vadd.f32 %v6823_v25, %v9058_v59  ;;  %v5707_v15 = vrot.slane %v5620_v47, 4  ;;  %v5586_v46 = vadd.f32 %v8820_v20, %v5547_v51  ;;  %v5675_v24 = vrot.slane %v5674_v32, 1 }
 0x46c   :  { %v5872_v10 = vsel %vm5871_vm9, %v5670_v39, %v5870_v21  ;;  %v5462_v40 = vpop.f32.mrf.mxu0  ;;  %v5704_v55 = vmax.f32 %v5702_v49, %v5703_v1  ;;  %v5691_v27 = vrot.slane %v5690_v33, 2  ;;  %v5591_v37 = vadd.f32 %v8820_v20, %v5552_v26  ;;  %v9059_v21 = vld [vmem:[#allocation15_spill] sm:$0xff] }
 0x46d   :  { %v5708_v35 = vmax.f32 %v5620_v47, %v5707_v15  ;;  %v5618_v57 = vmax.f32 %v5586_v46, 0.0  ;;  %v5550_v23 = vadd.f32 %v5459_v36, %v8834_v22  ;;  %v5553_v38 = vadd.f32 %v6855_v13, %v8836_v6 }
 0x46e   :  { %v6858_v2 = vpop.f32.mrf.mxu0  ;;  %v5682_v4 = vmax.f32 %v5680_v18, %v5681_v17  ;;  %v8904_v63 = vmax.f32 %v5616_v42, %v5683_v8  ;;  %v5676_v41 = vmax.f32 %v5674_v32, %v5675_v24  ;;  %v5623_v62 = vmax.f32 %v5591_v37, 0.0 }
 0x46f   :  { %v5709_v31 = vrot.slane %v5708_v35, 2  ;;  %v5695_v28 = vrot.slane %v5618_v57, 4  ;;  %v5589_v60 = vadd.f32 %v8820_v20, %v5550_v23  ;;  %v5592_v61 = vadd.f32 %v8820_v20, %v5553_v38 }
 0x470   :  { %v5475_v56 = vpop.f32.mrf.mxu0  ;;  %v5874_v52 = vsel %vm5873_vm10, %v5676_v41, %v5872_v10  ;;  %v5705_v7 = vrot.slane %v5704_v55, 1  ;;  %v5692_v44 = vmax.f32 %v5690_v33, %v5691_v27  ;;  %v5725_v22 = vrot.slane %v5623_v62, 4 }
 0x471   :  { %v8910_v6 = vsel %vm5875_vm11, %v5682_v4, %v5874_v52  ;;  %v5710_v42 = vmax.f32 %v5708_v35, %v5709_v31  ;;  %v5696_v18 = vmax.f32 %v5618_v57, %v5695_v28  ;;  %v5621_v8 = vmax.f32 %v5589_v60, 0.0 }
 0x472   :  { %v6859_v36 = vpop.f32.mrf.mxu0  ;;  %v8913_v45 = vadd.f32 %v5013_v54, %v9059_v21  ;;  %v5726_v49 = vmax.f32 %v5623_v62, %v5725_v22  ;;  %v5624_v9 = vmax.f32 %v5592_v61, 0.0  ;;  %v5551_v17 = vadd.f32 %v5462_v40, %v8839_v50 }
 0x473   :  { %v5685_v39 = vrot.slane %v8904_v63, 2  ;;  %v5697_v47 = vrot.slane %v5696_v18, 2  ;;  %v5713_v51 = vrot.slane %v5621_v8, 4  ;;  %v5556_v13 = vadd.f32 %v6858_v2, %v8841_v5 }
 0x474   :  { %v5478_v25 = vpop.f32.mrf.mxu0  ;;  %v5693_v32 = vrot.slane %v5692_v44, 1  ;;  %v5711_v1 = vrot.slane %v5710_v42, 1  ;;  %v5590_v33 = vadd.f32 %v8820_v20, %v5551_v17  ;;  %v5554_v26 = vadd.f32 %v5475_v56, %v8843_v43 }
 0x475   :  { %v5706_v59 = vmax.f32 %v5704_v55, %v5705_v7  ;;  %v5698_v10 = vmax.f32 %v5696_v18, %v5697_v47  ;;  %v5714_v15 = vmax.f32 %v5621_v8, %v5713_v51  ;;  %v5595_v46 = vadd.f32 %v8820_v20, %v5556_v13 }
 0x476   :  { %v6862_v24 = vpop.f32.mrf.mxu0  ;;  %v5727_v50 = vrot.slane %v5726_v49, 2  ;;  %v5731_v40 = vrot.slane %v5624_v9, 4  ;;  %v5622_v27 = vmax.f32 %v5590_v33, 0.0  ;;  %v5593_v37 = vadd.f32 %v8820_v20, %v5554_v26 }
 0x477   :  { %v5699_v35 = vrot.slane %v5698_v10, 1  ;;  %v5715_v5 = vrot.slane %v5714_v15, 2  ;;  %v5627_v57 = vmax.f32 %v5595_v46, 0.0  ;;  %v5557_v23 = vadd.f32 %v6859_v36, %v8845_v34 }
 0x478   :  { %v5491_v38 = vpop.f32.mrf.mxu0  ;;  %v5694_v2 = vmax.f32 %v5692_v44, %v5693_v32  ;;  %v5712_v4 = vmax.f32 %v5710_v42, %v5711_v1  ;;  %v5719_v43 = vrot.slane %v5622_v27, 4  ;;  %v5625_v55 = vmax.f32 %v5593_v37, 0.0 }
 0x479   :  { %v5700_v41 = vmax.f32 %v5698_v10, %v5699_v35  ;;  %v5716_v62 = vmax.f32 %v5714_v15, %v5715_v5  ;;  %v5749_v31 = vrot.slane %v5627_v57, 4  ;;  %v5596_v28 = vadd.f32 %v8820_v20, %v5557_v23 }
 0x47a   :  { %v6863_v60 = vpop.f32.mrf.mxu0  ;;  %v5728_v61 = vmax.f32 %v5726_v49, %v5727_v50  ;;  %v5732_v56 = vmax.f32 %v5624_v9, %v5731_v40  ;;  %v5720_v52 = vmax.f32 %v5622_v27, %v5719_v43  ;;  %v5737_v7 = vrot.slane %v5625_v55, 4 }
 0x47b   :  { %v5879_v22 = vsel %vm5865_vm2, %v5700_v41, %v5694_v2  ;;  %v5717_v54 = vrot.slane %v5716_v62, 1  ;;  %v5750_v18 = vmax.f32 %v5627_v57, %v5749_v31  ;;  %v5628_v34 = vmax.f32 %v5596_v28, 0.0 }
 0x47c   :  { %v5494_v8 = vpop.f32.mrf.mxu0  ;;  %v8926_v44 = vmax.f32 %v8904_v63, %v5685_v39  ;;  %v5880_v42 = vsel %vm5867_vm7, %v5706_v59, %v5879_v22  ;;  %v5721_v36 = vrot.slane %v5720_v52, 2  ;;  %v5738_v21 = vmax.f32 %v5625_v55, %v5737_v7 }
 0x47d   :  { %v5718_v17 = vmax.f32 %v5716_v62, %v5717_v54  ;;  %v5881_v47 = vsel %vm5869_vm8, %v5712_v4, %v5880_v42  ;;  %v5751_v49 = vrot.slane %v5750_v18, 2  ;;  %v5755_v9 = vrot.slane %v5628_v34, 4 }
 0x47e   :  { %v6866_v51 = vpop.f32.mrf.mxu0  ;;  %v5729_v13 = vrot.slane %v5728_v61, 1  ;;  %v5722_v32 = vmax.f32 %v5720_v52, %v5721_v36  ;;  %v5739_v1 = vrot.slane %v5738_v21, 2  ;;  %v5555_v33 = vadd.f32 %v5478_v25, %v8848_v16 }
 0x47f   :  { %v5882_v26 = vsel %vm5871_vm9, %v5718_v17, %v5881_v47  ;;  %v5733_v10 = vrot.slane %v5732_v56, 2  ;;  %v5756_v63 = vmax.f32 %v5628_v34, %v5755_v9  ;;  %v5560_v39 = vadd.f32 %v6862_v24, %v8850_v12 }
 0x480   :  { %v5507_v59 = vpop.f32.mrf.mxu0  ;;  %v5723_v15 = vrot.slane %v5722_v32, 1  ;;  %v8933_v46 = vmax.f32 %v5750_v18, %v5751_v49  ;;  %v5594_v50 = vadd.f32 %v8820_v20, %v5555_v33  ;;  %v5558_v40 = vadd.f32 %v5491_v38, %v8852_v3 }
 0x481   :  { %v5687_v27 = vrot.slane %v8926_v44, 1  ;;  %v5740_v37 = vmax.f32 %v5738_v21, %v5739_v1  ;;  %v5599_v35 = vadd.f32 %v8820_v20, %v5560_v39  ;;  %v5561_v16 = vadd.f32 %v6863_v60, %v8855_v19 }
 0x482   :  { %v6867_v25 = vpop.f32.mrf.mxu0  ;;  %v5730_v5 = vmax.f32 %v5728_v61, %v5729_v13  ;;  %v5724_v57 = vmax.f32 %v5722_v32, %v5723_v15  ;;  %v5626_v23 = vmax.f32 %v5594_v50, 0.0  ;;  %v5597_v12 = vadd.f32 %v8820_v20, %v5558_v40 }
 0x483   :  { %v8941_v24 = vmax.f32 %v5732_v56, %v5733_v10  ;;  %v5757_v2 = vrot.slane %v5756_v63, 2  ;;  %v5631_v4 = vmax.f32 %v5599_v35, 0.0  ;;  %v5600_v43 = vadd.f32 %v8820_v20, %v5561_v16 }
 0x484   :  { %v5883_v3 = vsel %vm5873_vm10, %v5724_v57, %v5882_v26  ;;  %v5753_v38 = vrot.slane %v8933_v46, 1  ;;  %v5743_v55 = vrot.slane %v5626_v23, 4  ;;  %v5629_v41 = vmax.f32 %v5597_v12, 0.0  ;;  %v5510_v60 = vpop.f32.mrf.mxu0 }
 0x485   :  { %v8947_v19 = vsel %vm5875_vm11, %v5730_v5, %v5883_v3  ;;  %v5741_v62 = vrot.slane %v5740_v37, 1  ;;  %v5773_v31 = vrot.slane %v5631_v4, 4  ;;  %v5632_v28 = vmax.f32 %v5600_v43, 0.0 }
 0x486   :  { %v5744_v61 = vmax.f32 %v5626_v23, %v5743_v55  ;;  %v5761_v56 = vrot.slane %v5629_v41, 4  ;;  %v5559_v52 = vadd.f32 %v5494_v8, %v8858_v48  ;;  %v5564_v7 = vadd.f32 %v6866_v51, %v8862_v53  ;;  %v6870_v48 = vpop.f32.mrf.mxu0 }
 0x487   :  { %v5758_v22 = vmax.f32 %v5756_v63, %v5757_v2  ;;  %v5774_v54 = vmax.f32 %v5631_v4, %v5773_v31  ;;  %v5779_v18 = vrot.slane %v5632_v28, 4  ;;  %v5562_v34 = vadd.f32 %v5507_v59, %v8866_v58 }
 0x488   :  { %v5745_v42 = vrot.slane %v5744_v61, 2  ;;  %v5762_v36 = vmax.f32 %v5629_v41, %v5761_v56  ;;  %v5598_v21 = vadd.f32 %v8820_v20, %v5559_v52  ;;  %v5603_v17 = vadd.f32 %v8820_v20, %v5564_v7  ;;  %v5523_v16 = vpop.f32.mrf.mxu0 }
 0x489   :  { %v5775_v47 = vrot.slane %v5774_v54, 2  ;;  %v5780_v49 = vmax.f32 %v5632_v28, %v5779_v18  ;;  %v5601_v9 = vadd.f32 %v8820_v20, %v5562_v34  ;;  %v5565_v13 = vadd.f32 %v6867_v25, %v8869_v30 }
 0x48a   :  { %v5746_v8 = vmax.f32 %v5744_v61, %v5745_v42  ;;  %v5763_v53 = vrot.slane %v5762_v36, 2  ;;  %v5630_v51 = vmax.f32 %v5598_v21, 0.0  ;;  %v5635_v32 = vmax.f32 %v5603_v17, 0.0  ;;  %v6871_v61 = vpop.f32.mrf.mxu0 }
 0x48b   :  { %v5759_v1 = vrot.slane %v5758_v22, 1  ;;  %v5781_v33 = vrot.slane %v5780_v49, 2  ;;  %v5633_v58 = vmax.f32 %v5601_v9, 0.0  ;;  %v5604_v26 = vadd.f32 %v8820_v20, %v5565_v13 }
 0x48c   :  { %v5747_v10 = vrot.slane %v5746_v8, 1  ;;  %v5764_v63 = vmax.f32 %v5762_v36, %v5763_v53  ;;  %v5767_v39 = vrot.slane %v5630_v51, 4  ;;  %v5797_v59 = vrot.slane %v5635_v32, 4 }
 0x48d   :  { %v5742_v15 = vmax.f32 %v5740_v37, %v5741_v62  ;;  %v5776_v50 = vmax.f32 %v5774_v54, %v5775_v47  ;;  %v5785_v40 = vrot.slane %v5633_v58, 4  ;;  %v5636_v35 = vmax.f32 %v5604_v26, 0.0 }
 0x48e   :  { %v5748_v30 = vmax.f32 %v5746_v8, %v5747_v10  ;;  %v5765_v25 = vrot.slane %v5764_v63, 1  ;;  %v5782_v5 = vmax.f32 %v5780_v49, %v5781_v33  ;;  %v5768_v57 = vmax.f32 %v5630_v51, %v5767_v39 }
 0x48f   :  { %v5735_v23 = vrot.slane %v8941_v24, 1  ;;  %v5754_v12 = vmax.f32 %v8933_v46, %v5753_v38  ;;  %v5798_v2 = vmax.f32 %v5635_v32, %v5797_v59  ;;  %v5803_v4 = vrot.slane %v5636_v35, 4 }
 0x490   :  { %v5760_v43 = vmax.f32 %v5758_v22, %v5759_v1  ;;  %v5886_v3 = vsel %vm5865_vm2, %v5748_v30, %v5742_v15  ;;  %v5766_v55 = vmax.f32 %v5764_v63, %v5765_v25  ;;  %v5769_v37 = vrot.slane %v5768_v57, 2 }
 0x491   :  { %v5688_v41 = vmax.f32 %v8926_v44, %v5687_v27  ;;  %v5887_v62 = vsel %vm5867_vm7, %v5754_v12, %v5886_v3  ;;  %v5777_v31 = vrot.slane %v5776_v50, 1  ;;  %v5786_v28 = vmax.f32 %v5633_v58, %v5785_v40 }
 0x492   :  { %v5888_v56 = vsel %vm5869_vm8, %v5760_v43, %v5887_v62  ;;  %v5783_v46 = vrot.slane %v5782_v5, 1  ;;  %v5770_v38 = vmax.f32 %v5768_v57, %v5769_v37  ;;  %v5563_v52 = vadd.f32 %v5510_v60, %v8876_v11  ;;  %v5526_v11 = vpop.f32.mrf.mxu0 }
 0x493   :  { %v5889_v7 = vsel %vm5871_vm9, %v5766_v55, %v5888_v56  ;;  %v5799_v22 = vrot.slane %v5798_v2, 2  ;;  %v5804_v54 = vmax.f32 %v5636_v35, %v5803_v4  ;;  %v5568_v18 = vadd.f32 %v6870_v48, %v8879_v14 }
 0x494   :  { %v5736_v34 = vmax.f32 %v8941_v24, %v5735_v23  ;;  %v5771_v44 = vrot.slane %v5770_v38, 1  ;;  %v5602_v27 = vadd.f32 %v8820_v20, %v5563_v52  ;;  %v5566_v42 = vadd.f32 %v5523_v16, %v8890_v0 }
 0x495   :  { %v5778_v36 = vmax.f32 %v5776_v50, %v5777_v31  ;;  %v5787_v21 = vrot.slane %v5786_v28, 2  ;;  %v5607_v17 = vadd.f32 %v8820_v20, %v5568_v18  ;;  %v5569_v47 = vadd.f32 %v6871_v61, %v8897_v29 }
 0x496   :  { %v5784_v60 = vmax.f32 %v5782_v5, %v5783_v46  ;;  %v5772_v49 = vmax.f32 %v5770_v38, %v5771_v44  ;;  %v5634_v9 = vmax.f32 %v5602_v27, 0.0  ;;  %v5605_v13 = vadd.f32 %v8820_v20, %v5566_v42 }
 0x497   :  { %v5800_v14 = vmax.f32 %v5798_v2, %v5799_v22  ;;  %v5805_v48 = vrot.slane %v5804_v54, 2  ;;  %v5639_v24 = vmax.f32 %v5607_v17, 0.0  ;;  %v5608_v8 = vadd.f32 %v8820_v20, %v5569_v47 }
 0x498   :  { %v5890_v53 = vsel %vm5873_vm10, %v5772_v49, %v5889_v7  ;;  %v5791_v0 = vrot.slane %v5634_v9, 4  ;;  %v5637_v51 = vmax.f32 %v5605_v13, 0.0  ;;  %v5567_v32 = vadd.f32 %v5526_v11, %v8913_v45 }
 0x499   :  { %v5891_v1 = vsel %vm5875_vm11, %v5778_v36, %v5890_v53  ;;  %v5788_v29 = vmax.f32 %v5786_v28, %v5787_v21  ;;  %v5821_v33 = vrot.slane %v5639_v24, 4  ;;  %v5640_v58 = vmax.f32 %v5608_v8, 0.0 }
 0x49a   :  { %v5792_v26 = vmax.f32 %v5634_v9, %v5791_v0  ;;  %v5809_v10 = vrot.slane %v5637_v51, 4  ;;  %v5606_v63 = vadd.f32 %v8820_v20, %v5567_v32  ;;  %v5878_v39 = vsel %vm5877_vm12, %v5688_v41, %v8910_v6 }
 0x49b   :  { %v5822_v59 = vmax.f32 %v5639_v24, %v5821_v33  ;;  %v5827_v15 = vrot.slane %v5640_v58, 4  ;;  %v5885_v50 = vsel %vm5877_vm12, %v5736_v34, %v8947_v19  ;;  %v5892_v40 = vsel %vm5877_vm12, %v5784_v60, %v5891_v1  ;;  %5904 = vst [vmem:[#allocation9] sm:$0xff] %v5878_v39 }
 0x49c   :  { %v5806_v45 = vmax.f32 %v5804_v54, %v5805_v48  ;;  %v5793_v35 = vrot.slane %v5792_v26, 2  ;;  %v5810_v16 = vmax.f32 %v5637_v51, %v5809_v10  ;;  %v5638_v30 = vmax.f32 %v5606_v63, 0.0  ;;  %5905 = vst [vmem:[#allocation9 + $0x8] sm:$0xff] %v5885_v50  ;;  %5906 = vst [vmem:[#allocation9 + $0x10] sm:$0xff] %v5892_v40 }
 0x49d   :  { %v5789_v25 = vrot.slane %v5788_v29, 1  ;;  %v5823_v5 = vrot.slane %v5822_v59, 2  ;;  %v5828_v20 = vmax.f32 %v5640_v58, %v5827_v15  ;;  %v5801_v12 = vrot.slane %v5800_v14, 1 }
 0x49e   :  { %v5794_v57 = vmax.f32 %v5792_v26, %v5793_v35  ;;  %v5811_v23 = vrot.slane %v5810_v16, 2  ;;  %v5815_v6 = vrot.slane %v5638_v30, 4  ;;  %v5807_v4 = vrot.slane %v5806_v45, 1 }
 0x49f   :  { %v5829_v2 = vrot.slane %v5828_v20, 2  ;;  %v5790_v55 = vmax.f32 %v5788_v29, %v5789_v25  ;;  %v5824_v37 = vmax.f32 %v5822_v59, %v5823_v5  ;;  %v5802_v61 = vmax.f32 %v5800_v14, %v5801_v12 }
 0x4a0   :  { %v5795_v43 = vrot.slane %v5794_v57, 1  ;;  %v5812_v19 = vmax.f32 %v5810_v16, %v5811_v23  ;;  %v5816_v3 = vmax.f32 %v5638_v30, %v5815_v6  ;;  %v5808_v56 = vmax.f32 %v5806_v45, %v5807_v4 }
 0x4a1   :  { %v5830_v31 = vmax.f32 %v5828_v20, %v5829_v2  ;;  %v5825_v22 = vrot.slane %v5824_v37, 1 }
 0x4a2   :  { %v5796_v41 = vmax.f32 %v5794_v57, %v5795_v43  ;;  %v5813_v62 = vrot.slane %v5812_v19, 1  ;;  %v5817_v28 = vrot.slane %v5816_v3, 2 }
 0x4a3   :  { %v5831_v18 = vrot.slane %v5830_v31, 1  ;;  %v5826_v42 = vmax.f32 %v5824_v37, %v5825_v22 }
 0x4a4   :  { %v5893_v46 = vsel %vm5865_vm2, %v5796_v41, %v5790_v55  ;;  %v5814_v38 = vmax.f32 %v5812_v19, %v5813_v62  ;;  %v5818_v52 = vmax.f32 %v5816_v3, %v5817_v28 }
 0x4a5   :  { %v5894_v7 = vsel %vm5867_vm7, %v5802_v61, %v5893_v46  ;;  %v5832_v36 = vmax.f32 %v5830_v31, %v5831_v18 }
 0x4a6   :  { %v5895_v54 = vsel %vm5869_vm8, %v5808_v56, %v5894_v7  ;;  %v5819_v34 = vrot.slane %v5818_v52, 1 }
 0x4a7   :  { %v5896_v44 = vsel %vm5871_vm9, %v5814_v38, %v5895_v54 }
 0x4a8   :  { %v5820_v27 = vmax.f32 %v5818_v52, %v5819_v34 }
 0x4aa   :  { %v5897_v21 = vsel %vm5873_vm10, %v5820_v27, %v5896_v44 }
 0x4ab   :  { %v5898_v17 = vsel %vm5875_vm11, %v5826_v42, %v5897_v21 }
 0x4ac   :  { %v5899_v47 = vsel %vm5877_vm12, %v5832_v36, %v5898_v17 }
 0x4ad   :  { %5907 = vst [vmem:[#allocation9 + $0x18] sm:$0xff] %v5899_v47 }
 0x4ae   :  { %7068 = shalt.err (!%p7065_p5)
}
 0x4af   :  { %s7090_s25 = smov 128   ;;  %s7091_s26 = smov 8  }
 0x4b0   :  { %5919 = dma.vmem_to_hbm [thread:$0]  %s5914_s23, 512, %s9000_s6, [#allocation5], %s7090_s25, %s7090_s25, %s7091_s26  }
 0x4b1   :  { %7081 = dma.done.wait [#allocation5], 512  }
 0x4b2   :  { %7082 = vsyncadd [#allocation5], 4294966784 }
 0x4b3   :  { %5923 = vsyncpa [#allocation4], 1 }
 0x4b4   :  { %5924 = vsyncpa [#allocation7], 1 }
 0x4b5   :  { %5925 = vsyncpa [#allocation5], 1 }

</bundles_post_ra>
